<compile_context>
chip_gen: v5e
topology: v5e:2x2
jax: 0.10.0
libtpu: 0.0.40
codegen_flags: <defaults>
</compile_context>

<pallas_src>
import jax
import jax.numpy as jnp
from jax.experimental import pallas as pl
from jax.experimental.pallas import tpu as pltpu

# ----- model dims (small, consistent with a BERT-like backbone) -----
B = 2          # batch
S = 8          # sequence length
H = 32         # hidden size
NH = 4         # attention heads
DH = H // NH   # head dim
FFN = 64       # intermediate size
NLAYERS = 2    # encoder layers
VOCAB = 100
EPS = 1e-12
NEG = -1e4     # BERT-style additive mask value

# ----- packed parameter slab layout: (P_ROWS, 128) f32, sliced by sublanes ----
ROW_WQKVO = 0                        # NLAYERS*H rows, cols 0:128  [Wq|Wk|Wv|Wo]
ROW_WO    = ROW_WQKVO + NLAYERS * H  # NLAYERS*H rows, cols 0:H    Wo (natural orient.)
ROW_W1    = ROW_WO + NLAYERS * H     # NLAYERS*H rows, cols 0:FFN  W1 (H,FFN)
ROW_W2    = ROW_W1 + NLAYERS * H     # NLAYERS*FFN rows, cols 0:H  W2 (FFN,H)
ROW_BQKVO = ROW_W2 + NLAYERS * FFN   # NLAYERS rows,   cols 0:128  [bq|bk|bv|bo]
ROW_B1    = ROW_BQKVO + NLAYERS      # NLAYERS rows,   cols 0:FFN
ROW_B2    = ROW_B1 + NLAYERS         # NLAYERS rows,   cols 0:H
ROW_BO    = ROW_B2 + NLAYERS         # NLAYERS rows,   cols 0:H
ROW_LN    = ROW_BO + NLAYERS         # NLAYERS*4 rows, cols 0:H (ln1_g,ln1_b,ln2_g,ln2_b)
ROW_EMBLN = ROW_LN + 4 * NLAYERS     # 2 rows,         cols 0:H (gamma, beta)
ROW_FC    = ROW_EMBLN + 2            # row ROW_FC: fc_w cols 0:H; row ROW_FC+1: fc_b col 0
P_ROWS    = ((ROW_FC + 2 + 7) // 8) * 8

# ----- single lane-dense output slab layout: (B*S, 128) -----
#   cols [0:H)                         last_hidden_state (flat)
#   cols [H : H + NLAYERS*NH*S)        attention probs, layer l at H + l*NH*S,
#                                      row b*S+q, col h*S+k
#   cols [H + NLAYERS*NH*S : 128)      per-row fc score broadcast over lanes
SCORE_COL = H + NLAYERS * NH * S
OUT_W = SCORE_COL + H
assert OUT_W == 128


# =====================================================================
# Fused Pallas kernel
# =====================================================================
def _layernorm(x, g, b):
    mu = jnp.mean(x, axis=-1, keepdims=True)
    var = jnp.mean((x - mu) ** 2, axis=-1, keepdims=True)
    return (x - mu) * jax.lax.rsqrt(var + EPS) * g + b


def _gelu_exact(x):
    # HF BERT default: exact erf GELU.
    return 0.5 * x * (1.0 + jax.lax.erf(x * 0.7071067811865476))


def ranker_kernel(x_ref, mask_ref, p_ref, out_ref):
    """Entire Ranker forward for the whole batch in one kernel invocation."""
    # ---- embedding LayerNorm on pre-flattened activations (B*S, H) ----
    xf = _layernorm(x_ref[...],
                    p_ref[ROW_EMBLN + 0:ROW_EMBLN + 1, :H],
                    p_ref[ROW_EMBLN + 1:ROW_EMBLN + 2, :H])

    # additive attention bias, computed once, folded-batch layout (B*NH, 1, S)
    bias = (1.0 - mask_ref[...]) * NEG                              # (B, S)
    bias = jnp.broadcast_to(bias[:, None, None, :],
                            (B, NH, 1, S)).reshape(B * NH, 1, S)

    scale = 1.0 / (DH ** 0.5)
    attn_slabs = []

    for l in range(NLAYERS):                                        # static unroll
        # ---- one full-128-lane MXU push produces Q, K, V ([..|O] cols unused) ----
        w4 = p_ref[ROW_WQKVO + l * H:ROW_WQKVO + (l + 1) * H, :]    # (H, 4H)
        b4 = p_ref[ROW_BQKVO + l:ROW_BQKVO + l + 1, :]              # (1, 4H)
        qkvo = jnp.dot(xf, w4, preferred_element_type=jnp.float32) + b4

        def heads(m):   # (B*S, H) -> (B*NH, S, DH)
            return m.reshape(B, S, NH, DH).transpose(0, 2, 1, 3).reshape(B * NH, S, DH)

        qh = heads(qkvo[:, 0 * H:1 * H])
        kh = heads(qkvo[:, 1 * H:2 * H])
        vh = heads(qkvo[:, 2 * H:3 * H])

        # ---- all heads at once: one score einsum, one softmax, one ctx einsum ----
        sc = jnp.einsum('bqd,bkd->bqk', qh, kh,
                        preferred_element_type=jnp.float32) * scale + bias
        sc = sc - jnp.max(sc, axis=-1, keepdims=True)
        e = jnp.exp(sc)
        p = e / jnp.sum(e, axis=-1, keepdims=True)                  # exact softmax
        # attention probs in the lane-dense store layout: row b*S+q, col h*S+k
        attn_slabs.append(
            p.reshape(B, NH, S, S).transpose(0, 2, 1, 3).reshape(B * S, NH * S))

        ctx = jnp.einsum('bqk,bkd->bqd', p, vh,
                         preferred_element_type=jnp.float32)
        ctx = ctx.reshape(B, NH, S, DH).transpose(0, 2, 1, 3).reshape(B * S, H)

        wo = p_ref[ROW_WO + l * H:ROW_WO + (l + 1) * H, :H]          # (H, H)
        bo = p_ref[ROW_BO + l:ROW_BO + l + 1, :H]                    # (1, H)
        attn_out = jnp.dot(ctx, wo, preferred_element_type=jnp.float32) + bo

        # ---- residual + LayerNorm 1 ----
        h1 = _layernorm(xf + attn_out,
                        p_ref[ROW_LN + 4 * l + 0:ROW_LN + 4 * l + 1, :H],
                        p_ref[ROW_LN + 4 * l + 1:ROW_LN + 4 * l + 2, :H])

        # ---- FFN (exact GELU); biases on their own sublane rows ----
        w1 = p_ref[ROW_W1 + l * H:ROW_W1 + (l + 1) * H, :FFN]        # (H, FFN)
        b1 = p_ref[ROW_B1 + l:ROW_B1 + l + 1, :FFN]                  # (1, FFN)
        w2 = p_ref[ROW_W2 + l * FFN:ROW_W2 + (l + 1) * FFN, :H]      # (FFN, H)
        b2 = p_ref[ROW_B2 + l:ROW_B2 + l + 1, :H]                    # (1, H)
        f = jnp.dot(h1, w1, preferred_element_type=jnp.float32) + b1
        f = _gelu_exact(f)
        f = jnp.dot(f, w2, preferred_element_type=jnp.float32) + b2

        # ---- residual + LayerNorm 2 ----
        xf = _layernorm(h1 + f,
                        p_ref[ROW_LN + 4 * l + 2:ROW_LN + 4 * l + 3, :H],
                        p_ref[ROW_LN + 4 * l + 3:ROW_LN + 4 * l + 4, :H])

    # ---- fc head on the VPU for every row; wrapper picks the CLS rows ----
    fcw = p_ref[ROW_FC:ROW_FC + 1, :H]                               # (1, H)
    fcb = p_ref[ROW_FC + 1:ROW_FC + 2, 0:1]                          # (1, 1)
    score = jnp.sum(xf * fcw, axis=-1, keepdims=True) + fcb          # (B*S, 1)

    # ---- single lane-dense (B*S, 128) output store ----
    out_ref[...] = jnp.concatenate(
        [xf] + attn_slabs + [jnp.broadcast_to(score, (B * S, H))], axis=-1)


# =====================================================================
# Wrapper
# =====================================================================
def _full_spec(shape):
    nd = len(shape)
    return pl.BlockSpec(shape, lambda i, nd=nd: (0,) * nd)


def _ranker_call(x_flat, mask, pslab):
    operands = (x_flat, mask, pslab)
    return pl.pallas_call(
        ranker_kernel,
        grid=(1,),
        in_specs=[_full_spec(a.shape) for a in operands],
        out_specs=_full_spec((B * S, OUT_W)),
        out_shape=jax.ShapeDtypeStruct((B * S, OUT_W), jnp.float32),
        compiler_params=pltpu.CompilerParams(
            dimension_semantics=("arbitrary",)),   # keep tiny workload on one TC
    )(*operands)


def ranker_forward(params, input_ids, attention_mask):
    # --- embedding gather (glue: plain JAX); LayerNorm happens in-kernel ---
    x = params['tok_emb'][input_ids] + params['pos_emb'][None, :, :]   # (B, S, H)
    x_flat = x.reshape(B * S, H)                                       # flat for kernel
    mask = attention_mask.astype(jnp.float32)                          # (B, S)

    out = _ranker_call(x_flat, mask, params['pslab'])                  # (B*S, 128)

    # free XLA layout plumbing back to the reference shapes
    hid = out[:, :H].reshape(B, S, H)
    attentions = tuple(
        out[:, H + l * NH * S: H + (l + 1) * NH * S]
        .reshape(B, S, NH, S).transpose(0, 2, 1, 3)
        for l in range(NLAYERS))
    scores = out[0::S, SCORE_COL]                                      # CLS rows -> (B,)

    return dict(scores=scores, last_hidden_state=hid, attentions=attentions)


# =====================================================================
# Deterministic parameter init (single packed 128-lane slab)
# =====================================================================
def init_params(key):
    def nrm(k, shape, scale=0.02):
        return scale * jax.random.normal(k, shape, jnp.float32)

    keys = jax.random.split(key, 4 + NLAYERS)
    tok_emb = nrm(keys[0], (VOCAB, H))
    pos_emb = nrm(keys[1], (S, H))
    fc_w = nrm(keys[2], (H,))

    P = jnp.zeros((P_ROWS, 128), jnp.float32)
    for l in range(NLAYERS):
        lk = jax.random.split(keys[4 + l], 6)
        wq, wk, wv, wo = (nrm(lk[i], (H, H)) for i in range(4))
        w1 = nrm(lk[4], (H, FFN))
        w2 = nrm(lk[5], (FFN, H))
        P = P.at[ROW_WQKVO + l * H:ROW_WQKVO + (l + 1) * H, :].set(
            jnp.concatenate([wq, wk, wv, wo], axis=1))               # (H, 4H)
        P = P.at[ROW_WO + l * H:ROW_WO + (l + 1) * H, :H].set(wo)
        P = P.at[ROW_W1 + l * H:ROW_W1 + (l + 1) * H, :FFN].set(w1)
        P = P.at[ROW_W2 + l * FFN:ROW_W2 + (l + 1) * FFN, :H].set(w2)
        # biases (b_qkvo, b1, b2, bo) are zeros; LN gammas = 1, betas = 0
        P = P.at[ROW_LN + 4 * l + 0, :H].set(1.0)                    # ln1 gamma
        P = P.at[ROW_LN + 4 * l + 2, :H].set(1.0)                    # ln2 gamma
    P = P.at[ROW_EMBLN, :H].set(1.0)                                 # emb LN gamma
    P = P.at[ROW_FC, :H].set(fc_w)                                   # fc weight
    # fc bias stays zero at (ROW_FC+1, 0)

    return dict(tok_emb=tok_emb, pos_emb=pos_emb, pslab=P)


if __name__ == "__main__":
    key = jax.random.PRNGKey(0)
    kp, kids = jax.random.split(key)
    params = init_params(kp)

    input_ids = jax.random.randint(kids, (B, S), 0, VOCAB, dtype=jnp.int32)
    attention_mask = jnp.ones((B, S), jnp.float32).at[1, 6:].set(0.0)

    fwd = jax.jit(ranker_forward)
    outputs = fwd(params, input_ids, attention_mask)
    jax.block_until_ready(outputs)

    assert outputs['scores'].shape == (B,)
    assert outputs['last_hidden_state'].shape == (B, S, H)
    assert len(outputs['attentions']) == NLAYERS
    assert outputs['attentions'][0].shape == (B, NH, S, S)
    print("KERNEL_OK")
</pallas_src>

<mosaic_0001>
module attributes {stable_mosaic.version = 11 : i64} {
  func.func @ranker_kernel(%arg0: i32, %arg1: memref<16x32xf32, #tpu.memory_space<vmem>>, %arg2: memref<2x8xf32, #tpu.memory_space<vmem>>, %arg3: memref<344x128xf32, #tpu.memory_space<vmem>>, %arg4: memref<16x128xf32, #tpu.memory_space<vmem>>) attributes {dimension_semantics = [#tpu.dimension_semantics<arbitrary>], iteration_bounds = array<i64: 1>, scalar_prefetch = 0 : i64, scratch_operands = 0 : i64, tpu.core_type = #tpu.core_type<tc>, window_params = [{pipeline_mode = #tpu.pipeline_mode<synchronous>, transform_indices = @transform_0, window_bounds = array<i64: 16, 32>}, {pipeline_mode = #tpu.pipeline_mode<synchronous>, transform_indices = @transform_1, window_bounds = array<i64: 2, 8>}, {pipeline_mode = #tpu.pipeline_mode<synchronous>, transform_indices = @transform_2, window_bounds = array<i64: 344, 128>}, {pipeline_mode = #tpu.pipeline_mode<synchronous>, transform_indices = @transform_3, window_bounds = array<i64: 16, 128>}]} {
    %c0 = arith.constant 0 : index
    %c0_0 = arith.constant 0 : index
    %0 = vector.load %arg1[%c0, %c0_0] : memref<16x32xf32, #tpu.memory_space<vmem>>, vector<16x32xf32>
    %c336 = arith.constant 336 : index
    %c0_1 = arith.constant 0 : index
    %1 = vector.load %arg3[%c336, %c0_1] : memref<344x128xf32, #tpu.memory_space<vmem>>, vector<1x32xf32>
    %c337 = arith.constant 337 : index
    %c0_2 = arith.constant 0 : index
    %2 = vector.load %arg3[%c337, %c0_2] : memref<344x128xf32, #tpu.memory_space<vmem>>, vector<1x32xf32>
    %cst = arith.constant dense<0.000000e+00> : vector<16xf32>
    %3 = vector.multi_reduction <add>, %0, %cst [1] : vector<16x32xf32> to vector<16xf32>
    %4 = vector.shape_cast %3 : vector<16xf32> to vector<16x1xf32>
    %cst_3 = arith.constant 3.200000e+01 : f32
    %5 = vector.broadcast %cst_3 : f32 to vector<16x1xf32>
    %6 = arith.divf %4, %5 : vector<16x1xf32>
    %7 = vector.broadcast %6 : vector<16x1xf32> to vector<16x32xf32>
    %8 = arith.subf %0, %7 : vector<16x32xf32>
    %9 = arith.mulf %8, %8 : vector<16x32xf32>
    %cst_4 = arith.constant dense<0.000000e+00> : vector<16xf32>
    %10 = vector.multi_reduction <add>, %9, %cst_4 [1] : vector<16x32xf32> to vector<16xf32>
    %11 = vector.shape_cast %10 : vector<16xf32> to vector<16x1xf32>
    %cst_5 = arith.constant 3.200000e+01 : f32
    %12 = vector.broadcast %cst_5 : f32 to vector<16x1xf32>
    %13 = arith.divf %11, %12 : vector<16x1xf32>
    %14 = vector.broadcast %6 : vector<16x1xf32> to vector<16x32xf32>
    %15 = arith.subf %0, %14 : vector<16x32xf32>
    %cst_6 = arith.constant 9.99999996E-13 : f32
    %16 = vector.broadcast %cst_6 : f32 to vector<16x1xf32>
    %17 = arith.addf %13, %16 : vector<16x1xf32>
    %18 = math.rsqrt %17 : vector<16x1xf32>
    %19 = vector.broadcast %18 : vector<16x1xf32> to vector<16x32xf32>
    %20 = arith.mulf %15, %19 : vector<16x32xf32>
    %21 = vector.broadcast %1 : vector<1x32xf32> to vector<16x32xf32>
    %22 = arith.mulf %20, %21 : vector<16x32xf32>
    %23 = vector.broadcast %2 : vector<1x32xf32> to vector<16x32xf32>
    %24 = arith.addf %22, %23 : vector<16x32xf32>
    %c0_7 = arith.constant 0 : index
    %c0_8 = arith.constant 0 : index
    %25 = vector.load %arg2[%c0_7, %c0_8] : memref<2x8xf32, #tpu.memory_space<vmem>>, vector<2x8xf32>
    %cst_9 = arith.constant 1.000000e+00 : f32
    %26 = vector.broadcast %cst_9 : f32 to vector<2x8xf32>
    %27 = arith.subf %26, %25 : vector<2x8xf32>
    %cst_10 = arith.constant -1.000000e+04 : f32
    %28 = vector.broadcast %cst_10 : f32 to vector<2x8xf32>
    %29 = arith.mulf %27, %28 : vector<2x8xf32>
    %30 = vector.shape_cast %29 : vector<2x8xf32> to vector<2x1x1x8xf32>
    %31 = vector.shape_cast %30 : vector<2x1x1x8xf32> to vector<2x1x1x8xf32>
    %32 = vector.broadcast %31 : vector<2x1x1x8xf32> to vector<2x4x1x8xf32>
    %33 = vector.shape_cast %32 : vector<2x4x1x8xf32> to vector<8x1x8xf32>
    %c0_11 = arith.constant 0 : index
    %c0_12 = arith.constant 0 : index
    %34 = vector.load %arg3[%c0_11, %c0_12] : memref<344x128xf32, #tpu.memory_space<vmem>>, vector<32x128xf32>
    %c320 = arith.constant 320 : index
    %c0_13 = arith.constant 0 : index
    %35 = vector.load %arg3[%c320, %c0_13] : memref<344x128xf32, #tpu.memory_space<vmem>>, vector<1x128xf32>
    %cst_14 = arith.constant dense<0.000000e+00> : vector<16x128xf32>
    %36 = tpu.matmul %24, %34, %cst_14 {dimension_numbers = #tpu.dot_dimension_numbers<[1], [0], [0], [1], [0, 0, 1, 1], [], []>} : vector<16x32xf32>, vector<32x128xf32>, vector<16x128xf32> -> vector<16x128xf32>
    %37 = vector.broadcast %35 : vector<1x128xf32> to vector<16x128xf32>
    %38 = arith.addf %36, %37 : vector<16x128xf32>
    %39 = vector.extract_strided_slice %38 {offsets = [0, 0], sizes = [16, 32], strides = [1, 1]} : vector<16x128xf32> to vector<16x32xf32>
    %40 = vector.shape_cast %39 : vector<16x32xf32> to vector<2x8x4x8xf32>
    %41 = tpu.transpose %40, [0, 2, 1, 3] : vector<2x8x4x8xf32> -> vector<2x4x8x8xf32>
    %42 = vector.shape_cast %41 : vector<2x4x8x8xf32> to vector<8x8x8xf32>
    %43 = vector.extract_strided_slice %38 {offsets = [0, 32], sizes = [16, 32], strides = [1, 1]} : vector<16x128xf32> to vector<16x32xf32>
    %44 = vector.shape_cast %43 : vector<16x32xf32> to vector<2x8x4x8xf32>
    %45 = tpu.transpose %44, [0, 2, 1, 3] : vector<2x8x4x8xf32> -> vector<2x4x8x8xf32>
    %46 = vector.shape_cast %45 : vector<2x4x8x8xf32> to vector<8x8x8xf32>
    %47 = vector.extract_strided_slice %38 {offsets = [0, 64], sizes = [16, 32], strides = [1, 1]} : vector<16x128xf32> to vector<16x32xf32>
    %48 = vector.shape_cast %47 : vector<16x32xf32> to vector<2x8x4x8xf32>
    %49 = tpu.transpose %48, [0, 2, 1, 3] : vector<2x8x4x8xf32> -> vector<2x4x8x8xf32>
    %50 = vector.shape_cast %49 : vector<2x4x8x8xf32> to vector<8x8x8xf32>
    "tpu.trace_start"() <{level = 10 : i32, message = "bqd,bkd->bqk"}> : () -> ()
    %cst_15 = arith.constant dense<0.000000e+00> : vector<8x8x8xf32>
    %51 = tpu.matmul %42, %46, %cst_15 {dimension_numbers = #tpu.dot_dimension_numbers<[2], [2], [1], [1], [0, 0, 0, 1, 1, 1], [0], [0]>} : vector<8x8x8xf32>, vector<8x8x8xf32>, vector<8x8x8xf32> -> vector<8x8x8xf32>
    "tpu.trace_stop"() : () -> ()
    %cst_16 = arith.constant 0.353553385 : f32
    %52 = vector.broadcast %cst_16 : f32 to vector<8x8x8xf32>
    %53 = arith.mulf %51, %52 : vector<8x8x8xf32>
    %54 = vector.broadcast %33 : vector<8x1x8xf32> to vector<8x8x8xf32>
    %55 = arith.addf %53, %54 : vector<8x8x8xf32>
    %cst_17 = arith.constant dense<0xFF800000> : vector<8x8xf32>
    %56 = vector.multi_reduction <maximumf>, %55, %cst_17 [2] : vector<8x8x8xf32> to vector<8x8xf32>
    %57 = vector.shape_cast %56 : vector<8x8xf32> to vector<8x8x1xf32>
    %58 = vector.broadcast %57 : vector<8x8x1xf32> to vector<8x8x8xf32>
    %59 = arith.subf %55, %58 : vector<8x8x8xf32>
    %60 = math.exp %59 : vector<8x8x8xf32>
    %cst_18 = arith.constant dense<0.000000e+00> : vector<8x8xf32>
    %61 = vector.multi_reduction <add>, %60, %cst_18 [2] : vector<8x8x8xf32> to vector<8x8xf32>
    %62 = vector.shape_cast %61 : vector<8x8xf32> to vector<8x8x1xf32>
    %63 = vector.broadcast %62 : vector<8x8x1xf32> to vector<8x8x8xf32>
    %64 = arith.divf %60, %63 : vector<8x8x8xf32>
    %65 = vector.shape_cast %64 : vector<8x8x8xf32> to vector<2x4x8x8xf32>
    %66 = tpu.transpose %65, [0, 2, 1, 3] : vector<2x4x8x8xf32> -> vector<2x8x4x8xf32>
    %67 = vector.shape_cast %66 : vector<2x8x4x8xf32> to vector<16x32xf32>
    "tpu.trace_start"() <{level = 10 : i32, message = "bqk,bkd->bqd"}> : () -> ()
    %cst_19 = arith.constant dense<0.000000e+00> : vector<8x8x8xf32>
    %68 = tpu.matmul %64, %50, %cst_19 {dimension_numbers = #tpu.dot_dimension_numbers<[2], [1], [1], [2], [0, 0, 0, 1, 1, 2], [0], [0]>} : vector<8x8x8xf32>, vector<8x8x8xf32>, vector<8x8x8xf32> -> vector<8x8x8xf32>
    "tpu.trace_stop"() : () -> ()
    %69 = vector.shape_cast %68 : vector<8x8x8xf32> to vector<2x4x8x8xf32>
    %70 = tpu.transpose %69, [0, 2, 1, 3] : vector<2x4x8x8xf32> -> vector<2x8x4x8xf32>
    %71 = vector.shape_cast %70 : vector<2x8x4x8xf32> to vector<16x32xf32>
    %c64 = arith.constant 64 : index
    %c0_20 = arith.constant 0 : index
    %72 = vector.load %arg3[%c64, %c0_20] : memref<344x128xf32, #tpu.memory_space<vmem>>, vector<32x32xf32>
    %c326 = arith.constant 326 : index
    %c0_21 = arith.constant 0 : index
    %73 = vector.load %arg3[%c326, %c0_21] : memref<344x128xf32, #tpu.memory_space<vmem>>, vector<1x32xf32>
    %cst_22 = arith.constant dense<0.000000e+00> : vector<16x32xf32>
    %74 = tpu.matmul %71, %72, %cst_22 {dimension_numbers = #tpu.dot_dimension_numbers<[1], [0], [0], [1], [0, 0, 1, 1], [], []>} : vector<16x32xf32>, vector<32x32xf32>, vector<16x32xf32> -> vector<16x32xf32>
    %75 = vector.broadcast %73 : vector<1x32xf32> to vector<16x32xf32>
    %76 = arith.addf %74, %75 : vector<16x32xf32>
    %77 = arith.addf %24, %76 : vector<16x32xf32>
    %c328 = arith.constant 328 : index
    %c0_23 = arith.constant 0 : index
    %78 = vector.load %arg3[%c328, %c0_23] : memref<344x128xf32, #tpu.memory_space<vmem>>, vector<1x32xf32>
    %c329 = arith.constant 329 : index
    %c0_24 = arith.constant 0 : index
    %79 = vector.load %arg3[%c329, %c0_24] : memref<344x128xf32, #tpu.memory_space<vmem>>, vector<1x32xf32>
    %cst_25 = arith.constant dense<0.000000e+00> : vector<16xf32>
    %80 = vector.multi_reduction <add>, %77, %cst_25 [1] : vector<16x32xf32> to vector<16xf32>
    %81 = vector.shape_cast %80 : vector<16xf32> to vector<16x1xf32>
    %cst_26 = arith.constant 3.200000e+01 : f32
    %82 = vector.broadcast %cst_26 : f32 to vector<16x1xf32>
    %83 = arith.divf %81, %82 : vector<16x1xf32>
    %84 = vector.broadcast %83 : vector<16x1xf32> to vector<16x32xf32>
    %85 = arith.subf %77, %84 : vector<16x32xf32>
    %86 = arith.mulf %85, %85 : vector<16x32xf32>
    %cst_27 = arith.constant dense<0.000000e+00> : vector<16xf32>
    %87 = vector.multi_reduction <add>, %86, %cst_27 [1] : vector<16x32xf32> to vector<16xf32>
    %88 = vector.shape_cast %87 : vector<16xf32> to vector<16x1xf32>
    %cst_28 = arith.constant 3.200000e+01 : f32
    %89 = vector.broadcast %cst_28 : f32 to vector<16x1xf32>
    %90 = arith.divf %88, %89 : vector<16x1xf32>
    %91 = vector.broadcast %83 : vector<16x1xf32> to vector<16x32xf32>
    %92 = arith.subf %77, %91 : vector<16x32xf32>
    %cst_29 = arith.constant 9.99999996E-13 : f32
    %93 = vector.broadcast %cst_29 : f32 to vector<16x1xf32>
    %94 = arith.addf %90, %93 : vector<16x1xf32>
    %95 = math.rsqrt %94 : vector<16x1xf32>
    %96 = vector.broadcast %95 : vector<16x1xf32> to vector<16x32xf32>
    %97 = arith.mulf %92, %96 : vector<16x32xf32>
    %98 = vector.broadcast %78 : vector<1x32xf32> to vector<16x32xf32>
    %99 = arith.mulf %97, %98 : vector<16x32xf32>
    %100 = vector.broadcast %79 : vector<1x32xf32> to vector<16x32xf32>
    %101 = arith.addf %99, %100 : vector<16x32xf32>
    %c128 = arith.constant 128 : index
    %c0_30 = arith.constant 0 : index
    %102 = vector.load %arg3[%c128, %c0_30] : memref<344x128xf32, #tpu.memory_space<vmem>>, vector<32x64xf32>
    %c322 = arith.constant 322 : index
    %c0_31 = arith.constant 0 : index
    %103 = vector.load %arg3[%c322, %c0_31] : memref<344x128xf32, #tpu.memory_space<vmem>>, vector<1x64xf32>
    %c192 = arith.constant 192 : index
    %c0_32 = arith.constant 0 : index
    %104 = vector.load %arg3[%c192, %c0_32] : memref<344x128xf32, #tpu.memory_space<vmem>>, vector<64x32xf32>
    %c324 = arith.constant 324 : index
    %c0_33 = arith.constant 0 : index
    %105 = vector.load %arg3[%c324, %c0_33] : memref<344x128xf32, #tpu.memory_space<vmem>>, vector<1x32xf32>
    %cst_34 = arith.constant dense<0.000000e+00> : vector<16x64xf32>
    %106 = tpu.matmul %101, %102, %cst_34 {dimension_numbers = #tpu.dot_dimension_numbers<[1], [0], [0], [1], [0, 0, 1, 1], [], []>} : vector<16x32xf32>, vector<32x64xf32>, vector<16x64xf32> -> vector<16x64xf32>
    %107 = vector.broadcast %103 : vector<1x64xf32> to vector<16x64xf32>
    %108 = arith.addf %106, %107 : vector<16x64xf32>
    %cst_35 = arith.constant 5.000000e-01 : f32
    %109 = vector.broadcast %cst_35 : f32 to vector<16x64xf32>
    %110 = arith.mulf %109, %108 : vector<16x64xf32>
    %cst_36 = arith.constant 0.707106769 : f32
    %111 = vector.broadcast %cst_36 : f32 to vector<16x64xf32>
    %112 = arith.mulf %108, %111 : vector<16x64xf32>
    %113 = math.erf %112 : vector<16x64xf32>
    %cst_37 = arith.constant 1.000000e+00 : f32
    %114 = vector.broadcast %cst_37 : f32 to vector<16x64xf32>
    %115 = arith.addf %114, %113 : vector<16x64xf32>
    %116 = arith.mulf %110, %115 : vector<16x64xf32>
    %cst_38 = arith.constant dense<0.000000e+00> : vector<16x32xf32>
    %117 = tpu.matmul %116, %104, %cst_38 {dimension_numbers = #tpu.dot_dimension_numbers<[1], [0], [0], [1], [0, 0, 1, 1], [], []>} : vector<16x64xf32>, vector<64x32xf32>, vector<16x32xf32> -> vector<16x32xf32>
    %118 = vector.broadcast %105 : vector<1x32xf32> to vector<16x32xf32>
    %119 = arith.addf %117, %118 : vector<16x32xf32>
    %120 = arith.addf %101, %119 : vector<16x32xf32>
    %c330 = arith.constant 330 : index
    %c0_39 = arith.constant 0 : index
    %121 = vector.load %arg3[%c330, %c0_39] : memref<344x128xf32, #tpu.memory_space<vmem>>, vector<1x32xf32>
    %c331 = arith.constant 331 : index
    %c0_40 = arith.constant 0 : index
    %122 = vector.load %arg3[%c331, %c0_40] : memref<344x128xf32, #tpu.memory_space<vmem>>, vector<1x32xf32>
    %cst_41 = arith.constant dense<0.000000e+00> : vector<16xf32>
    %123 = vector.multi_reduction <add>, %120, %cst_41 [1] : vector<16x32xf32> to vector<16xf32>
    %124 = vector.shape_cast %123 : vector<16xf32> to vector<16x1xf32>
    %cst_42 = arith.constant 3.200000e+01 : f32
    %125 = vector.broadcast %cst_42 : f32 to vector<16x1xf32>
    %126 = arith.divf %124, %125 : vector<16x1xf32>
    %127 = vector.broadcast %126 : vector<16x1xf32> to vector<16x32xf32>
    %128 = arith.subf %120, %127 : vector<16x32xf32>
    %129 = arith.mulf %128, %128 : vector<16x32xf32>
    %cst_43 = arith.constant dense<0.000000e+00> : vector<16xf32>
    %130 = vector.multi_reduction <add>, %129, %cst_43 [1] : vector<16x32xf32> to vector<16xf32>
    %131 = vector.shape_cast %130 : vector<16xf32> to vector<16x1xf32>
    %cst_44 = arith.constant 3.200000e+01 : f32
    %132 = vector.broadcast %cst_44 : f32 to vector<16x1xf32>
    %133 = arith.divf %131, %132 : vector<16x1xf32>
    %134 = vector.broadcast %126 : vector<16x1xf32> to vector<16x32xf32>
    %135 = arith.subf %120, %134 : vector<16x32xf32>
    %cst_45 = arith.constant 9.99999996E-13 : f32
    %136 = vector.broadcast %cst_45 : f32 to vector<16x1xf32>
    %137 = arith.addf %133, %136 : vector<16x1xf32>
    %138 = math.rsqrt %137 : vector<16x1xf32>
    %139 = vector.broadcast %138 : vector<16x1xf32> to vector<16x32xf32>
    %140 = arith.mulf %135, %139 : vector<16x32xf32>
    %141 = vector.broadcast %121 : vector<1x32xf32> to vector<16x32xf32>
    %142 = arith.mulf %140, %141 : vector<16x32xf32>
    %143 = vector.broadcast %122 : vector<1x32xf32> to vector<16x32xf32>
    %144 = arith.addf %142, %143 : vector<16x32xf32>
    %c32 = arith.constant 32 : index
    %c0_46 = arith.constant 0 : index
    %145 = vector.load %arg3[%c32, %c0_46] : memref<344x128xf32, #tpu.memory_space<vmem>>, vector<32x128xf32>
    %c321 = arith.constant 321 : index
    %c0_47 = arith.constant 0 : index
    %146 = vector.load %arg3[%c321, %c0_47] : memref<344x128xf32, #tpu.memory_space<vmem>>, vector<1x128xf32>
    %cst_48 = arith.constant dense<0.000000e+00> : vector<16x128xf32>
    %147 = tpu.matmul %144, %145, %cst_48 {dimension_numbers = #tpu.dot_dimension_numbers<[1], [0], [0], [1], [0, 0, 1, 1], [], []>} : vector<16x32xf32>, vector<32x128xf32>, vector<16x128xf32> -> vector<16x128xf32>
    %148 = vector.broadcast %146 : vector<1x128xf32> to vector<16x128xf32>
    %149 = arith.addf %147, %148 : vector<16x128xf32>
    %150 = vector.extract_strided_slice %149 {offsets = [0, 0], sizes = [16, 32], strides = [1, 1]} : vector<16x128xf32> to vector<16x32xf32>
    %151 = vector.shape_cast %150 : vector<16x32xf32> to vector<2x8x4x8xf32>
    %152 = tpu.transpose %151, [0, 2, 1, 3] : vector<2x8x4x8xf32> -> vector<2x4x8x8xf32>
    %153 = vector.shape_cast %152 : vector<2x4x8x8xf32> to vector<8x8x8xf32>
    %154 = vector.extract_strided_slice %149 {offsets = [0, 32], sizes = [16, 32], strides = [1, 1]} : vector<16x128xf32> to vector<16x32xf32>
    %155 = vector.shape_cast %154 : vector<16x32xf32> to vector<2x8x4x8xf32>
    %156 = tpu.transpose %155, [0, 2, 1, 3] : vector<2x8x4x8xf32> -> vector<2x4x8x8xf32>
    %157 = vector.shape_cast %156 : vector<2x4x8x8xf32> to vector<8x8x8xf32>
    %158 = vector.extract_strided_slice %149 {offsets = [0, 64], sizes = [16, 32], strides = [1, 1]} : vector<16x128xf32> to vector<16x32xf32>
    %159 = vector.shape_cast %158 : vector<16x32xf32> to vector<2x8x4x8xf32>
    %160 = tpu.transpose %159, [0, 2, 1, 3] : vector<2x8x4x8xf32> -> vector<2x4x8x8xf32>
    %161 = vector.shape_cast %160 : vector<2x4x8x8xf32> to vector<8x8x8xf32>
    "tpu.trace_start"() <{level = 10 : i32, message = "bqd,bkd->bqk"}> : () -> ()
    %cst_49 = arith.constant dense<0.000000e+00> : vector<8x8x8xf32>
    %162 = tpu.matmul %153, %157, %cst_49 {dimension_numbers = #tpu.dot_dimension_numbers<[2], [2], [1], [1], [0, 0, 0, 1, 1, 1], [0], [0]>} : vector<8x8x8xf32>, vector<8x8x8xf32>, vector<8x8x8xf32> -> vector<8x8x8xf32>
    "tpu.trace_stop"() : () -> ()
    %cst_50 = arith.constant 0.353553385 : f32
    %163 = vector.broadcast %cst_50 : f32 to vector<8x8x8xf32>
    %164 = arith.mulf %162, %163 : vector<8x8x8xf32>
    %165 = vector.broadcast %33 : vector<8x1x8xf32> to vector<8x8x8xf32>
    %166 = arith.addf %164, %165 : vector<8x8x8xf32>
    %cst_51 = arith.constant dense<0xFF800000> : vector<8x8xf32>
    %167 = vector.multi_reduction <maximumf>, %166, %cst_51 [2] : vector<8x8x8xf32> to vector<8x8xf32>
    %168 = vector.shape_cast %167 : vector<8x8xf32> to vector<8x8x1xf32>
    %169 = vector.broadcast %168 : vector<8x8x1xf32> to vector<8x8x8xf32>
    %170 = arith.subf %166, %169 : vector<8x8x8xf32>
    %171 = math.exp %170 : vector<8x8x8xf32>
    %cst_52 = arith.constant dense<0.000000e+00> : vector<8x8xf32>
    %172 = vector.multi_reduction <add>, %171, %cst_52 [2] : vector<8x8x8xf32> to vector<8x8xf32>
    %173 = vector.shape_cast %172 : vector<8x8xf32> to vector<8x8x1xf32>
    %174 = vector.broadcast %173 : vector<8x8x1xf32> to vector<8x8x8xf32>
    %175 = arith.divf %171, %174 : vector<8x8x8xf32>
    %176 = vector.shape_cast %175 : vector<8x8x8xf32> to vector<2x4x8x8xf32>
    %177 = tpu.transpose %176, [0, 2, 1, 3] : vector<2x4x8x8xf32> -> vector<2x8x4x8xf32>
    %178 = vector.shape_cast %177 : vector<2x8x4x8xf32> to vector<16x32xf32>
    "tpu.trace_start"() <{level = 10 : i32, message = "bqk,bkd->bqd"}> : () -> ()
    %cst_53 = arith.constant dense<0.000000e+00> : vector<8x8x8xf32>
    %179 = tpu.matmul %175, %161, %cst_53 {dimension_numbers = #tpu.dot_dimension_numbers<[2], [1], [1], [2], [0, 0, 0, 1, 1, 2], [0], [0]>} : vector<8x8x8xf32>, vector<8x8x8xf32>, vector<8x8x8xf32> -> vector<8x8x8xf32>
    "tpu.trace_stop"() : () -> ()
    %180 = vector.shape_cast %179 : vector<8x8x8xf32> to vector<2x4x8x8xf32>
    %181 = tpu.transpose %180, [0, 2, 1, 3] : vector<2x4x8x8xf32> -> vector<2x8x4x8xf32>
    %182 = vector.shape_cast %181 : vector<2x8x4x8xf32> to vector<16x32xf32>
    %c96 = arith.constant 96 : index
    %c0_54 = arith.constant 0 : index
    %183 = vector.load %arg3[%c96, %c0_54] : memref<344x128xf32, #tpu.memory_space<vmem>>, vector<32x32xf32>
    %c327 = arith.constant 327 : index
    %c0_55 = arith.constant 0 : index
    %184 = vector.load %arg3[%c327, %c0_55] : memref<344x128xf32, #tpu.memory_space<vmem>>, vector<1x32xf32>
    %cst_56 = arith.constant dense<0.000000e+00> : vector<16x32xf32>
    %185 = tpu.matmul %182, %183, %cst_56 {dimension_numbers = #tpu.dot_dimension_numbers<[1], [0], [0], [1], [0, 0, 1, 1], [], []>} : vector<16x32xf32>, vector<32x32xf32>, vector<16x32xf32> -> vector<16x32xf32>
    %186 = vector.broadcast %184 : vector<1x32xf32> to vector<16x32xf32>
    %187 = arith.addf %185, %186 : vector<16x32xf32>
    %188 = arith.addf %144, %187 : vector<16x32xf32>
    %c332 = arith.constant 332 : index
    %c0_57 = arith.constant 0 : index
    %189 = vector.load %arg3[%c332, %c0_57] : memref<344x128xf32, #tpu.memory_space<vmem>>, vector<1x32xf32>
    %c333 = arith.constant 333 : index
    %c0_58 = arith.constant 0 : index
    %190 = vector.load %arg3[%c333, %c0_58] : memref<344x128xf32, #tpu.memory_space<vmem>>, vector<1x32xf32>
    %cst_59 = arith.constant dense<0.000000e+00> : vector<16xf32>
    %191 = vector.multi_reduction <add>, %188, %cst_59 [1] : vector<16x32xf32> to vector<16xf32>
    %192 = vector.shape_cast %191 : vector<16xf32> to vector<16x1xf32>
    %cst_60 = arith.constant 3.200000e+01 : f32
    %193 = vector.broadcast %cst_60 : f32 to vector<16x1xf32>
    %194 = arith.divf %192, %193 : vector<16x1xf32>
    %195 = vector.broadcast %194 : vector<16x1xf32> to vector<16x32xf32>
    %196 = arith.subf %188, %195 : vector<16x32xf32>
    %197 = arith.mulf %196, %196 : vector<16x32xf32>
    %cst_61 = arith.constant dense<0.000000e+00> : vector<16xf32>
    %198 = vector.multi_reduction <add>, %197, %cst_61 [1] : vector<16x32xf32> to vector<16xf32>
    %199 = vector.shape_cast %198 : vector<16xf32> to vector<16x1xf32>
    %cst_62 = arith.constant 3.200000e+01 : f32
    %200 = vector.broadcast %cst_62 : f32 to vector<16x1xf32>
    %201 = arith.divf %199, %200 : vector<16x1xf32>
    %202 = vector.broadcast %194 : vector<16x1xf32> to vector<16x32xf32>
    %203 = arith.subf %188, %202 : vector<16x32xf32>
    %cst_63 = arith.constant 9.99999996E-13 : f32
    %204 = vector.broadcast %cst_63 : f32 to vector<16x1xf32>
    %205 = arith.addf %201, %204 : vector<16x1xf32>
    %206 = math.rsqrt %205 : vector<16x1xf32>
    %207 = vector.broadcast %206 : vector<16x1xf32> to vector<16x32xf32>
    %208 = arith.mulf %203, %207 : vector<16x32xf32>
    %209 = vector.broadcast %189 : vector<1x32xf32> to vector<16x32xf32>
    %210 = arith.mulf %208, %209 : vector<16x32xf32>
    %211 = vector.broadcast %190 : vector<1x32xf32> to vector<16x32xf32>
    %212 = arith.addf %210, %211 : vector<16x32xf32>
    %c160 = arith.constant 160 : index
    %c0_64 = arith.constant 0 : index
    %213 = vector.load %arg3[%c160, %c0_64] : memref<344x128xf32, #tpu.memory_space<vmem>>, vector<32x64xf32>
    %c323 = arith.constant 323 : index
    %c0_65 = arith.constant 0 : index
    %214 = vector.load %arg3[%c323, %c0_65] : memref<344x128xf32, #tpu.memory_space<vmem>>, vector<1x64xf32>
    %c256 = arith.constant 256 : index
    %c0_66 = arith.constant 0 : index
    %215 = vector.load %arg3[%c256, %c0_66] : memref<344x128xf32, #tpu.memory_space<vmem>>, vector<64x32xf32>
    %c325 = arith.constant 325 : index
    %c0_67 = arith.constant 0 : index
    %216 = vector.load %arg3[%c325, %c0_67] : memref<344x128xf32, #tpu.memory_space<vmem>>, vector<1x32xf32>
    %cst_68 = arith.constant dense<0.000000e+00> : vector<16x64xf32>
    %217 = tpu.matmul %212, %213, %cst_68 {dimension_numbers = #tpu.dot_dimension_numbers<[1], [0], [0], [1], [0, 0, 1, 1], [], []>} : vector<16x32xf32>, vector<32x64xf32>, vector<16x64xf32> -> vector<16x64xf32>
    %218 = vector.broadcast %214 : vector<1x64xf32> to vector<16x64xf32>
    %219 = arith.addf %217, %218 : vector<16x64xf32>
    %cst_69 = arith.constant 5.000000e-01 : f32
    %220 = vector.broadcast %cst_69 : f32 to vector<16x64xf32>
    %221 = arith.mulf %220, %219 : vector<16x64xf32>
    %cst_70 = arith.constant 0.707106769 : f32
    %222 = vector.broadcast %cst_70 : f32 to vector<16x64xf32>
    %223 = arith.mulf %219, %222 : vector<16x64xf32>
    %224 = math.erf %223 : vector<16x64xf32>
    %cst_71 = arith.constant 1.000000e+00 : f32
    %225 = vector.broadcast %cst_71 : f32 to vector<16x64xf32>
    %226 = arith.addf %225, %224 : vector<16x64xf32>
    %227 = arith.mulf %221, %226 : vector<16x64xf32>
    %cst_72 = arith.constant dense<0.000000e+00> : vector<16x32xf32>
    %228 = tpu.matmul %227, %215, %cst_72 {dimension_numbers = #tpu.dot_dimension_numbers<[1], [0], [0], [1], [0, 0, 1, 1], [], []>} : vector<16x64xf32>, vector<64x32xf32>, vector<16x32xf32> -> vector<16x32xf32>
    %229 = vector.broadcast %216 : vector<1x32xf32> to vector<16x32xf32>
    %230 = arith.addf %228, %229 : vector<16x32xf32>
    %231 = arith.addf %212, %230 : vector<16x32xf32>
    %c334 = arith.constant 334 : index
    %c0_73 = arith.constant 0 : index
    %232 = vector.load %arg3[%c334, %c0_73] : memref<344x128xf32, #tpu.memory_space<vmem>>, vector<1x32xf32>
    %c335 = arith.constant 335 : index
    %c0_74 = arith.constant 0 : index
    %233 = vector.load %arg3[%c335, %c0_74] : memref<344x128xf32, #tpu.memory_space<vmem>>, vector<1x32xf32>
    %cst_75 = arith.constant dense<0.000000e+00> : vector<16xf32>
    %234 = vector.multi_reduction <add>, %231, %cst_75 [1] : vector<16x32xf32> to vector<16xf32>
    %235 = vector.shape_cast %234 : vector<16xf32> to vector<16x1xf32>
    %cst_76 = arith.constant 3.200000e+01 : f32
    %236 = vector.broadcast %cst_76 : f32 to vector<16x1xf32>
    %237 = arith.divf %235, %236 : vector<16x1xf32>
    %238 = vector.broadcast %237 : vector<16x1xf32> to vector<16x32xf32>
    %239 = arith.subf %231, %238 : vector<16x32xf32>
    %240 = arith.mulf %239, %239 : vector<16x32xf32>
    %cst_77 = arith.constant dense<0.000000e+00> : vector<16xf32>
    %241 = vector.multi_reduction <add>, %240, %cst_77 [1] : vector<16x32xf32> to vector<16xf32>
    %242 = vector.shape_cast %241 : vector<16xf32> to vector<16x1xf32>
    %cst_78 = arith.constant 3.200000e+01 : f32
    %243 = vector.broadcast %cst_78 : f32 to vector<16x1xf32>
    %244 = arith.divf %242, %243 : vector<16x1xf32>
    %245 = vector.broadcast %237 : vector<16x1xf32> to vector<16x32xf32>
    %246 = arith.subf %231, %245 : vector<16x32xf32>
    %cst_79 = arith.constant 9.99999996E-13 : f32
    %247 = vector.broadcast %cst_79 : f32 to vector<16x1xf32>
    %248 = arith.addf %244, %247 : vector<16x1xf32>
    %249 = math.rsqrt %248 : vector<16x1xf32>
    %250 = vector.broadcast %249 : vector<16x1xf32> to vector<16x32xf32>
    %251 = arith.mulf %246, %250 : vector<16x32xf32>
    %252 = vector.broadcast %232 : vector<1x32xf32> to vector<16x32xf32>
    %253 = arith.mulf %251, %252 : vector<16x32xf32>
    %254 = vector.broadcast %233 : vector<1x32xf32> to vector<16x32xf32>
    %255 = arith.addf %253, %254 : vector<16x32xf32>
    %c338 = arith.constant 338 : index
    %c0_80 = arith.constant 0 : index
    %256 = vector.load %arg3[%c338, %c0_80] : memref<344x128xf32, #tpu.memory_space<vmem>>, vector<1x32xf32>
    %c339 = arith.constant 339 : index
    %c0_81 = arith.constant 0 : index
    %257 = vector.load %arg3[%c339, %c0_81] : memref<344x128xf32, #tpu.memory_space<vmem>>, vector<1x1xf32>
    %258 = vector.broadcast %256 : vector<1x32xf32> to vector<16x32xf32>
    %259 = arith.mulf %255, %258 : vector<16x32xf32>
    %cst_82 = arith.constant dense<0.000000e+00> : vector<16xf32>
    %260 = vector.multi_reduction <add>, %259, %cst_82 [1] : vector<16x32xf32> to vector<16xf32>
    %261 = vector.shape_cast %260 : vector<16xf32> to vector<16x1xf32>
    %262 = vector.broadcast %257 : vector<1x1xf32> to vector<16x1xf32>
    %263 = arith.addf %261, %262 : vector<16x1xf32>
    %264 = vector.shape_cast %263 : vector<16x1xf32> to vector<16x1xf32>
    %265 = vector.broadcast %264 : vector<16x1xf32> to vector<16x32xf32>
    %266 = tpu.concatenate %255, %67, %178, %265 in 1 : vector<16x32xf32>, vector<16x32xf32>, vector<16x32xf32>, vector<16x32xf32> -> vector<16x128xf32>
    %c0_83 = arith.constant 0 : index
    %c0_84 = arith.constant 0 : index
    %267 = vector.load %arg4[%c0_83, %c0_84] : memref<16x128xf32, #tpu.memory_space<vmem>>, vector<16x128xf32>
    tpu.vector_store %arg4[%c0_83, %c0_84], %266 {strides = array<i32>} : memref<16x128xf32, #tpu.memory_space<vmem>>, vector<16x128xf32>,
    return
  }
  func.func @transform_0(%arg0: i32) -> (i32, i32) {
    %c0_i32 = arith.constant 0 : i32
    %c0_i32_0 = arith.constant 0 : i32
    %c0_i32_1 = arith.constant 0 : i32
    return %c0_i32, %c0_i32_0 : i32, i32
  }
  func.func @transform_1(%arg0: i32) -> (i32, i32) {
    %c0_i32 = arith.constant 0 : i32
    %c0_i32_0 = arith.constant 0 : i32
    %c0_i32_1 = arith.constant 0 : i32
    return %c0_i32, %c0_i32_0 : i32, i32
  }
  func.func @transform_2(%arg0: i32) -> (i32, i32) {
    %c0_i32 = arith.constant 0 : i32
    %c0_i32_0 = arith.constant 0 : i32
    %c0_i32_1 = arith.constant 0 : i32
    return %c0_i32, %c0_i32_0 : i32, i32
  }
  func.func @transform_3(%arg0: i32) -> (i32, i32) {
    %c0_i32 = arith.constant 0 : i32
    %c0_i32_0 = arith.constant 0 : i32
    %c0_i32_1 = arith.constant 0 : i32
    return %c0_i32, %c0_i32_0 : i32, i32
  }
}

</mosaic_0001>

<bundles_post_ra>
// kernel: ranker_forward.1
= control target key start
LH: loop header
LB: loop body
LE: loop exit
PB: predicated region body
PF: predicated region fallthrough
CT: control target
= control target key end

     0   :  { %8 = vsyncpa [#allocation3], 0  ;;  %s4762_s15 = smov [#allocation2]   ;;  %s4763_s17 = smov 128   ;;  %s6407_s0 = inlined_call_operand.vmem [shape: f32[16,32], index: 0, kind: input, shape index: {}]   ;;  %s6408_s1 = inlined_call_operand.vmem [shape: f32[2,8], index: 1, kind: input, shape index: {}]   ;;  %s6409_s2 = inlined_call_operand.hbm [shape: f32[344,128], index: 2, kind: input, shape index: {}]   ;;  %s6410_s3 = inlined_call_operand.vmem [shape: f32[16,128], index: 3, kind: output, shape index: {}]  }
   0x1   :  { %s17_s14 = sshll.u32 %s6409_s2, 4  ;;  %s19_s16 = sshll.u32 %s4762_s15, 4  ;;  %s18_s14 = int_to_ptr.hbm [resolvable:$true] %s17_s14  ;;  %s20_s16 = int_to_ptr.vmem [resolvable:$true] %s19_s16 }
   0x2   :  { %s4764_s18 = smov 8  }
   0x3   :  { %25 = dma.hbm_to_vmem [thread:$0]  %s18_s14, 5504, %s20_s16, [#allocation3], %s4763_s17, %s4763_s17, %s4764_s18  }
   0x4   :  { %4760 = dma.done.wait [#allocation3], 5504  }
   0x5   :  { %4761 = vsyncadd [#allocation3], 4294961792  ;;  %vm34_vm0 = vcmask 261120   ;;  %v30_v0 = vld [vmem:[%s6407_s0] sm:$0xff]  ;;  %v31_v1 = vld [vmem:[%s6407_s0 + $0x8] sm:$0xff]  ;;  %v4765_v4 = vmov 32.0  }
   0x6   :  { %v35_v2 = vsel %vm34_vm0, %v30_v0, 0.0  ;;  %v38_v3 = vsel %vm34_vm0, %v31_v1, 0.0  ;;  %4642 = vrcp.f32 %v4765_v4  ;;  %v100_v21 = vld [vmem:[#allocation2 + $0x18] sm:$0xff]  ;;  %v99_v22 = vld [vmem:[#allocation2 + $0x10] sm:$0xff]  ;;  %v98_v23 = vld [vmem:[#allocation2 + $0x8] sm:$0xff]  ;;  %s4766_s0 = smov 120  }
   0x7   :  { %36 = vadd.xlane.f32.xlu0 %v35_v2  ;;  %121 = vmatpush.msra.mxu0 %v100_v21  ;;  %v97_v24 = vld [vmem:[#allocation2] sm:$0xff]  ;;  %v4622_v39 = vld [vmem:[#allocation2 + $0x150] ss:$0 sm:$0xff]  ;;  %v4623_v43 = vld [vmem:[#allocation2 + $0x151] ss:$0 sm:$0xff]  ;;  %s4767_s2 = smov 112  }
   0x8   :  { %v4624_v53 = vld [vmem:[#allocation2 + $0x140] ss:$0 sm:$0xff]  ;;  %s4768_s23 = smov 96   ;;  %s4769_s24 = smov 104   ;;  %v4770_v62 = vmov 1983009808  }
   0x9   :  { %122 = vmatpush.msra.mxu0 %v99_v22  ;;  %v158_v63 = vunpack.c.l.s4 %v4770_v62  ;;  %vm153_vm8 = vcmask 1047556   ;;  %vm861_vm9 = vcmask 64512   ;;  %s4773_s27 = smov 24   ;;  %s4774_s28 = smov 16  }
   0xa   :  { %s4775_s29 = smov 32  }
   0xb   :  { %123 = vmatpush.msra.mxu0 %v98_v23 }
   0xc   :  { %v4643_v5 = vpop.eup %4642 }
   0xd   :  { %v42_v6 = vmul.f32 32.0, %v4643_v5  ;;  %vm46_vm1 = vweird.f32 %v4643_v5  ;;  %124 = vmatpush.msra.mxu0 %v97_v24 }
   0xf   :  { %39 = vadd.xlane.f32.xlu0 %v38_v3  ;;  %v43_v7 = vsub.f32 1.0, %v42_v6  ;;  %v4861_v3 = vunpack.c.0.s8 %v158_v63 }
  0x11   :  { %v44_v8 = vmul.f32 %v4643_v5, %v43_v7 }
  0x13   :  { %v45_v9 = vadd.f32 %v4643_v5, %v44_v8 }
  0x15   :  { %v4809_v10 = vsel %vm46_vm1, %v4643_v5, %v45_v9  ;;  %v4771_v5 = vmov 1934713408  }
  0x16   :  { %v182_v6 = vunpack.c.l.s4 %v4771_v5 }
  0x7a   :  { %v37_v11 = vpop.xlane.xlu0 %36 }
  0x7b   :  { %v48_v12 = vmul.f32 %v4809_v10, %v37_v11 }
  0x7d   :  { %v50_v13 = vsub.f32 %v30_v0, %v48_v12 }
  0x7f   :  { %v52_v14 = vmul.f32 %v50_v13, %v50_v13 }
  0x81   :  { %v54_v15 = vsel %vm34_vm0, %v52_v14, 0.0 }
  0x82   :  { %55 = vadd.xlane.f32.xlu1 %v54_v15  ;;  %v40_v16 = vpop.xlane.xlu0 %39 }
  0x83   :  { %v49_v17 = vmul.f32 %v4809_v10, %v40_v16 }
  0x85   :  { %v51_v18 = vsub.f32 %v31_v1, %v49_v17 }
  0x87   :  { %v53_v19 = vmul.f32 %v51_v18, %v51_v18 }
  0x89   :  { %v57_v20 = vsel %vm34_vm0, %v53_v19, 0.0 }
  0x8a   :  { %58 = vadd.xlane.f32.xlu1 %v57_v20 }
  0xf5   :  { %v56_v25 = vpop.xlane.xlu1 %55 }
  0xf6   :  { %v60_v26 = vmul.f32 %v56_v25, %v4809_v10 }
  0xf8   :  { %v62_v27 = vadd.f32 1e-12, %v60_v26 }
  0xfa   :  { %4644 = vrsqrt.f32 %v62_v27  ;;  %vm70_vm3 = vweird.f32 %v62_v27 }
  0xfd   :  { %v59_v28 = vpop.xlane.xlu1 %58 }
  0xfe   :  { %v61_v29 = vmul.f32 %v59_v28, %v4809_v10 }
 0x100   :  { %v4645_v30 = vpop.eup %4644  ;;  %v63_v31 = vadd.f32 1e-12, %v61_v29 }
 0x101   :  { %v65_v32 = vmul.f32 %v4645_v30, %v62_v27  ;;  %vm71_vm2 = vweird.f32 %v4645_v30 }
 0x102   :  { %4646 = vrsqrt.f32 %v63_v31  ;;  %vm72_vm4 = vmor %vm70_vm3, %vm71_vm2  ;;  %vm80_vm5 = vweird.f32 %v63_v31 }
 0x103   :  { %v66_v33 = vmul.f32 %v4645_v30, %v65_v32 }
 0x105   :  { %v67_v34 = vmul.f32 0.5, %v66_v33 }
 0x107   :  { %v68_v35 = vsub.f32 1.5, %v67_v34 }
 0x108   :  { %v4647_v36 = vpop.eup %4646 }
 0x109   :  { %v69_v37 = vmul.f32 %v4645_v30, %v68_v35  ;;  %v75_v38 = vmul.f32 %v4647_v36, %v63_v31  ;;  %vm81_vm6 = vweird.f32 %v4647_v36 }
 0x10a   :  { %vm82_vm7 = vmor %vm80_vm5, %vm81_vm6 }
 0x10b   :  { %v73_v40 = vsel %vm72_vm4, %v4645_v30, %v69_v37  ;;  %v76_v41 = vmul.f32 %v4647_v36, %v75_v38 }
 0x10c   :  { %v84_v42 = vmul.f32 %v73_v40, %v50_v13  ;;  %v4872_v13 = vunpack.c.0.s8 %v182_v6 }
 0x10d   :  { %v77_v44 = vmul.f32 0.5, %v76_v41 }
 0x10e   :  { %v87_v45 = vmul.f32 %v4622_v39, %v84_v42 }
 0x10f   :  { %v78_v46 = vsub.f32 1.5, %v77_v44 }
 0x110   :  { %v4817_v47 = vadd.f32 %v4623_v43, %v87_v45 }
 0x111   :  { %v79_v48 = vmul.f32 %v4647_v36, %v78_v46 }
 0x112   :  { %4496 = vmatmul.msk.f32.vlgmr.msra.gmra.mxu0 %vm34_vm0, %v4817_v47 }
 0x113   :  { %v83_v49 = vsel %vm82_vm7, %v4647_v36, %v79_v48 }
 0x114   :  { %v85_v50 = vmul.f32 %v83_v49, %v51_v18 }
 0x116   :  { %v88_v51 = vmul.f32 %v4622_v39, %v85_v50 }
 0x118   :  { %v4821_v52 = vadd.f32 %v4623_v43, %v88_v51 }
 0x11a   :  { %4497 = vmatmul.msk.f32.gmra.mxu0 %vm34_vm0, %v4821_v52 }
 0x18f   :  { %v126_v54 = vpop.f32.mrf.mxu0 }
 0x190   :  { %v4825_v55 = vadd.f32 %v4624_v53, %v126_v54 }
 0x192   :  { %134 = vrot.lane.b32.xlu0 %v4825_v55, %s4766_s0  ;;  %140 = vrot.lane.b32.xlu2 %v4825_v55, %s4767_s2  ;;  %v155_v2 = vrot.slane %v4825_v55, 4 }
 0x197   :  { %v129_v56 = vpop.f32.mrf.mxu0 }
 0x198   :  { %v4831_v57 = vadd.f32 %v4624_v53, %v129_v56 }
 0x19a   :  { %373 = vrot.lane.b32.xlu0 %v4825_v55, %s4768_s23  ;;  %146 = vrot.lane.b32.xlu2 %v4825_v55, %s4769_s24 }
 0x19b   :  { %136 = vrot.lane.b32.xlu1 %v4831_v57, %s4766_s0 }
 0x1a2   :  { %375 = vrot.lane.b32.xlu0 %v4831_v57, %s4768_s23  ;;  %142 = vrot.lane.b32.xlu2 %v4831_v57, %s4767_s2 }
 0x1aa   :  { %148 = vrot.lane.b32.xlu2 %v4831_v57, %s4769_s24 }
 0x1ec   :  { %v4845_v58 = vpop.permute.xlu2 %140 }
 0x1ed   :  { %381 = vrot.lane.b32.xlu2 %v4845_v58, %s4768_s23  ;;  %v152_v61 = vrot.slane %v4845_v58, 4  ;;  %v156_v4 = vsel %vm153_vm8, %v4845_v58, %v155_v2 }
 0x1ee   :  { %v164_v9 = vperm.slane %v156_v4, %v4861_v3 }
 0x1ef   :  { %v154_v1 = vsel %vm153_vm8, %v152_v61, %v4825_v55 }
 0x1f0   :  { %v160_v7 = vperm.slane %v154_v1, %v4861_v3  ;;  %v191_v19 = vrot.slane %v164_v9, 4 }
 0x1f2   :  { %v179_v16 = vrot.slane %v160_v7, 4 }
 0x1f4   :  { %v4849_v59 = vpop.permute.xlu2 %146 }
 0x1f5   :  { %385 = vrot.lane.b32.xlu2 %v4849_v59, %s4768_s23  ;;  %v4584_v60 = vpack.i.bf16 %v4849_v59, %v4845_v58  ;;  %v165_v8 = vrot.slane %v4849_v59, 4 }
 0x1fc   :  { %v4856_v0 = vpop.permute.xlu2 %142 }
 0x204   :  { %v4868_v11 = vpop.permute.xlu2 %148  ;;  %v4870_v12 = vpop.permute.xlu0 %134 }
 0x205   :  { %v166_v14 = vsel %vm153_vm8, %v165_v8, %v4870_v12  ;;  %v167_v15 = vrot.slane %v4870_v12, 4  ;;  %387 = vrot.lane.b32.xlu0 %v4868_v11, %s4768_s23  ;;  %377 = vrot.lane.b32.xlu1 %v4870_v12, %s4768_s23 }
 0x206   :  { %v172_v17 = vperm.slane %v166_v14, %v4861_v3 }
 0x207   :  { %v168_v18 = vsel %vm153_vm8, %v4849_v59, %v167_v15 }
 0x208   :  { %v176_v20 = vperm.slane %v168_v18, %v4861_v3  ;;  %v177_v21 = vrot.slane %v172_v17, 4  ;;  %v180_v22 = vsel %vm153_vm8, %v172_v17, %v179_v16 }
 0x209   :  { %v188_v23 = vperm.slane %v180_v22, %v4872_v13 }
 0x20a   :  { %v178_v24 = vsel %vm153_vm8, %v177_v21, %v160_v7  ;;  %v189_v25 = vrot.slane %v176_v20, 4  ;;  %v192_v26 = vsel %vm153_vm8, %v176_v20, %v191_v19  ;;  %v209_v19 = vrot.slane %v4856_v0, 4 }
 0x20b   :  { %v184_v27 = vperm.slane %v178_v24, %v4872_v13  ;;  %v200_v28 = vperm.slane %v192_v26, %v4872_v13  ;;  %v203_v29 = vrot.slane %v188_v23, 4  ;;  %v211_v20 = vrot.slane %v4831_v57, 4 }
 0x20c   :  { %v190_v30 = vsel %vm153_vm8, %v189_v25, %v164_v9  ;;  %v210_v23 = vsel %vm153_vm8, %v209_v19, %v4831_v57  ;;  %v221_v24 = vrot.slane %v4868_v11, 4 }
 0x20d   :  { %v201_v31 = vrot.slane %v184_v27, 4  ;;  %v204_v32 = vsel %vm153_vm8, 0.0, %v203_v29  ;;  %v4893_v33 = vpop.permute.xlu1 %136  ;;  %383 = vrot.lane.b32.xlu1 %v4856_v0, %s4768_s23  ;;  %v196_v34 = vperm.slane %v190_v30, %v4872_v13  ;;  %v207_v36 = vrot.slane %v200_v28, 4 }
 0x20e   :  { %v270_v35 = vrot.slane %v204_v32, 4  ;;  %379 = vrot.lane.b32.xlu2 %v4893_v33, %s4768_s23  ;;  %v265_v39 = vsel %vm153_vm8, %v203_v29, %v184_v27  ;;  %v223_v21 = vrot.slane %v4893_v33, 4  ;;  %v212_v22 = vsel %vm153_vm8, %v4856_v0, %v211_v20 }
 0x20f   :  { %v202_v37 = vsel %vm153_vm8, 0.0, %v201_v31  ;;  %v205_v38 = vrot.slane %v196_v34, 4  ;;  %v208_v40 = vsel %vm153_vm8, 0.0, %v207_v36  ;;  %v276_v44 = vsel %vm153_vm8, %v207_v36, %v196_v34 }
 0x210   :  { %v271_v41 = vsel %vm153_vm8, %v270_v35, %v202_v37  ;;  %v281_v45 = vrot.slane %v208_v40, 4  ;;  %v280_v46 = vperm.slane %v276_v44, %v4861_v3  ;;  %v269_v48 = vperm.slane %v265_v39, %v4861_v3  ;;  %v374_v39 = vpop.permute.xlu0 %373 }
 0x211   :  { %v206_v42 = vsel %vm153_vm8, 0.0, %v205_v38  ;;  %v275_v43 = vperm.slane %v271_v41, %v4861_v3  ;;  %v224_v25 = vsel %vm153_vm8, %v4868_v11, %v223_v21  ;;  %v220_v26 = vperm.slane %v212_v22, %v4861_v3 }
 0x212   :  { %v282_v49 = vsel %vm153_vm8, %v281_v45, %v206_v42  ;;  %v301_v56 = vrot.slane %v280_v46, 4  ;;  %v289_v62 = vrot.slane %v269_v48, 4  ;;  %v222_v27 = vsel %vm153_vm8, %v221_v24, %v4893_v33 }
 0x213   :  { %v286_v50 = vperm.slane %v282_v49, %v4861_v3  ;;  %v287_v51 = vrot.slane %v275_v43, 4  ;;  %v216_v28 = vperm.slane %v210_v23, %v4861_v3  ;;  %v232_v29 = vperm.slane %v224_v25, %v4861_v3 }
 0x214   :  { %v290_v5 = vsel %vm153_vm8, %v275_v43, %v289_v62  ;;  %v228_v30 = vperm.slane %v222_v27, %v4861_v3  ;;  %v247_v32 = vrot.slane %v220_v26, 4  ;;  %v399_v62 = vrot.slane %v374_v39, 4 }
 0x215   :  { %v288_v53 = vsel %vm153_vm8, %v287_v51, %v269_v48  ;;  %v299_v54 = vrot.slane %v286_v50, 4  ;;  %v302_v1 = vsel %vm153_vm8, %v286_v50, %v301_v56  ;;  %v298_v7 = vperm.slane %v290_v5, %v4872_v13 }
 0x216   :  { %v294_v61 = vperm.slane %v288_v53, %v4872_v13  ;;  %v310_v6 = vperm.slane %v302_v1, %v4872_v13  ;;  %v235_v34 = vrot.slane %v216_v28, 4  ;;  %v245_v35 = vrot.slane %v232_v29, 4 }
 0x217   :  { %v300_v63 = vsel %vm153_vm8, %v299_v54, %v280_v46  ;;  %v317_v15 = vrot.slane %v298_v7, 4  ;;  %v248_v36 = vsel %vm153_vm8, %v232_v29, %v247_v32  ;;  %v233_v37 = vrot.slane %v228_v30, 4 }
 0x218   :  { %v306_v2 = vperm.slane %v300_v63, %v4872_v13  ;;  %v313_v4 = vrot.slane %v294_v61, 4  ;;  %v315_v14 = vrot.slane %v310_v6, 4  ;;  %v236_v38 = vsel %vm153_vm8, %v228_v30, %v235_v34  ;;  %v4956_v54 = vpop.permute.xlu0 %375 }
 0x219   :  { %v4929_v18 = vsel %vm153_vm8, %v310_v6, %v317_v15  ;;  %v256_v40 = vperm.slane %v248_v36, %v4872_v13  ;;  %v244_v41 = vperm.slane %v236_v38, %v4872_v13  ;;  %v246_v42 = vsel %vm153_vm8, %v245_v35, %v220_v26 }
 0x21a   :  { %v4920_v8 = vsel %vm153_vm8, %v306_v2, %v313_v4  ;;  %v311_v9 = vrot.slane %v306_v2, 4  ;;  %v4926_v17 = vsel %vm153_vm8, %v315_v14, %v298_v7  ;;  %v234_v43 = vsel %vm153_vm8, %v233_v37, %v216_v28 }
 0x21b   :  { %v252_v44 = vperm.slane %v246_v42, %v4872_v13  ;;  %v263_v45 = vrot.slane %v256_v40, 4  ;;  %v240_v48 = vperm.slane %v234_v43, %v4872_v13  ;;  %v259_v49 = vrot.slane %v244_v41, 4 }
 0x21c   :  { %v4923_v16 = vsel %vm153_vm8, %v311_v9, %v294_v61  ;;  %v455_v41 = vrot.slane %v4956_v54, 4 }
 0x21d   :  { %v261_v51 = vrot.slane %v252_v44, 4  ;;  %v264_v53 = vsel %vm153_vm8, 0.0, %v263_v45  ;;  %v257_v56 = vrot.slane %v240_v48, 4  ;;  %v260_v61 = vsel %vm153_vm8, 0.0, %v259_v49 }
 0x21e   :  { %v335_v63 = vrot.slane %v264_v53, 4  ;;  %v324_v2 = vrot.slane %v260_v61, 4  ;;  %v330_v30 = vsel %vm153_vm8, %v263_v45, %v252_v44  ;;  %v4983_v43 = vsel %vm153_vm8, %v259_v49, %v240_v48 }
 0x21f   :  { %v262_v6 = vsel %vm153_vm8, 0.0, %v261_v51  ;;  %v258_v7 = vsel %vm153_vm8, 0.0, %v257_v56  ;;  %v4993_v61 = vperm.slane %v330_v30, %v4861_v3 }
 0x220   :  { %v336_v20 = vsel %vm153_vm8, %v335_v63, %v262_v6  ;;  %v325_v23 = vsel %vm153_vm8, %v324_v2, %v258_v7 }
 0x247   :  { %v382_v31 = vpop.permute.xlu2 %381 }
 0x248   :  { %v397_v50 = vrot.slane %v382_v31, 4  ;;  %v400_v4 = vsel %vm153_vm8, %v382_v31, %v399_v62  ;;  %v4972_v31 = vperm.slane %v336_v20, %v4861_v3 }
 0x249   :  { %v408_v14 = vperm.slane %v400_v4, %v4861_v3 }
 0x24a   :  { %v398_v1 = vsel %vm153_vm8, %v397_v50, %v374_v39  ;;  %v4988_v50 = vperm.slane %v325_v23, %v4861_v3 }
 0x24b   :  { %v404_v9 = vperm.slane %v398_v1, %v4861_v3  ;;  %v435_v32 = vrot.slane %v408_v14, 4  ;;  %v353_v1 = vrot.slane %v4972_v31, 4 }
 0x24d   :  { %v423_v28 = vrot.slane %v404_v9, 4 }
 0x24f   :  { %v386_v46 = vpop.permute.xlu2 %385 }
 0x250   :  { %v409_v15 = vrot.slane %v386_v46, 4 }
 0x268   :  { %v380_v5 = vpop.permute.xlu2 %379 }
 0x269   :  { %v467_v19 = vrot.slane %v380_v5, 4 }
 0x277   :  { %v378_v21 = vpop.permute.xlu1 %377  ;;  %v388_v22 = vpop.permute.xlu0 %387 }
 0x278   :  { %v410_v24 = vsel %vm153_vm8, %v409_v15, %v378_v21  ;;  %v411_v25 = vrot.slane %v378_v21, 4  ;;  %v465_v26 = vrot.slane %v388_v22, 4  ;;  %v468_v27 = vsel %vm153_vm8, %v388_v22, %v467_v19 }
 0x279   :  { %v416_v29 = vperm.slane %v410_v24, %v4861_v3  ;;  %v476_v36 = vperm.slane %v468_v27, %v4861_v3 }
 0x27a   :  { %v412_v34 = vsel %vm153_vm8, %v386_v46, %v411_v25  ;;  %v466_v35 = vsel %vm153_vm8, %v465_v26, %v380_v5 }
 0x27b   :  { %v420_v37 = vperm.slane %v412_v34, %v4861_v3  ;;  %v421_v38 = vrot.slane %v416_v29, 4  ;;  %v424_v39 = vsel %vm153_vm8, %v416_v29, %v423_v28  ;;  %v472_v40 = vperm.slane %v466_v35, %v4861_v3 }
 0x27c   :  { %v432_v42 = vperm.slane %v424_v39, %v4872_v13  ;;  %v489_v49 = vrot.slane %v476_v36, 4 }
 0x27d   :  { %v422_v44 = vsel %vm153_vm8, %v421_v38, %v404_v9  ;;  %v433_v45 = vrot.slane %v420_v37, 4  ;;  %v436_v46 = vsel %vm153_vm8, %v420_v37, %v435_v32  ;;  %v477_v48 = vrot.slane %v472_v40, 4 }
 0x27e   :  { %v428_v51 = vperm.slane %v422_v44, %v4872_v13  ;;  %v444_v53 = vperm.slane %v436_v46, %v4872_v13  ;;  %v447_v56 = vrot.slane %v432_v42, 4 }
 0x27f   :  { %v434_v62 = vsel %vm153_vm8, %v433_v45, %v408_v14  ;;  %v384_v63 = vpop.permute.xlu1 %383 }
 0x280   :  { %v440_v2 = vperm.slane %v434_v62, %v4872_v13  ;;  %v445_v4 = vrot.slane %v428_v51, 4  ;;  %v448_v5 = vsel %vm153_vm8, 0.0, %v447_v56  ;;  %v451_v6 = vrot.slane %v444_v53, 4 }
 0x281   :  { %v509_v7 = vsel %vm153_vm8, %v447_v56, %v428_v51  ;;  %v514_v9 = vrot.slane %v448_v5, 4  ;;  %v453_v15 = vrot.slane %v384_v63, 4  ;;  %v456_v19 = vsel %vm153_vm8, %v384_v63, %v455_v41 }
 0x282   :  { %v446_v20 = vsel %vm153_vm8, 0.0, %v445_v4  ;;  %v449_v14 = vrot.slane %v440_v2, 4  ;;  %v452_v21 = vsel %vm153_vm8, 0.0, %v451_v6  ;;  %v464_v22 = vperm.slane %v456_v19, %v4861_v3 }
 0x283   :  { %v525_v23 = vrot.slane %v452_v21, 4  ;;  %v454_v24 = vsel %vm153_vm8, %v453_v15, %v4956_v54  ;;  %v513_v25 = vperm.slane %v509_v7, %v4861_v3  ;;  %v515_v26 = vsel %vm153_vm8, %v514_v9, %v446_v20 }
 0x284   :  { %v460_v27 = vperm.slane %v454_v24, %v4861_v3  ;;  %v490_v28 = vsel %vm153_vm8, %v489_v49, %v464_v22  ;;  %v491_v29 = vrot.slane %v464_v22, 4  ;;  %v450_v30 = vsel %vm153_vm8, 0.0, %v449_v14 }
 0x285   :  { %v496_v32 = vperm.slane %v490_v28, %v4872_v13  ;;  %v519_v34 = vperm.slane %v515_v26, %v4861_v3  ;;  %v520_v35 = vsel %vm153_vm8, %v451_v6, %v440_v2  ;;  %v526_v37 = vsel %vm153_vm8, %v525_v23, %v450_v30 }
 0x286   :  { %v478_v54 = vsel %vm153_vm8, %v477_v48, %v460_v27  ;;  %v479_v38 = vrot.slane %v460_v27, 4  ;;  %v492_v39 = vsel %vm153_vm8, %v476_v36, %v491_v29  ;;  %v524_v41 = vperm.slane %v520_v35, %v4861_v3 }
 0x287   :  { %v484_v42 = vperm.slane %v478_v54, %v4872_v13  ;;  %v500_v44 = vperm.slane %v492_v39, %v4872_v13  ;;  %v505_v45 = vrot.slane %v496_v32, 4  ;;  %v530_v46 = vperm.slane %v526_v37, %v4861_v3 }
 0x288   :  { %v480_v51 = vsel %vm153_vm8, %v472_v40, %v479_v38  ;;  %v531_v53 = vrot.slane %v519_v34, 4  ;;  %v545_v56 = vrot.slane %v524_v41, 4  ;;  %v533_v62 = vrot.slane %v513_v25, 4 }
 0x289   :  { %v488_v48 = vperm.slane %v480_v51, %v4872_v13  ;;  %v501_v49 = vrot.slane %v484_v42, 4  ;;  %v506_v36 = vsel %vm153_vm8, 0.0, %v505_v45  ;;  %v507_v63 = vrot.slane %v500_v44, 4 }
 0x28a   :  { %v532_v2 = vsel %vm153_vm8, %v531_v53, %v513_v25  ;;  %v543_v4 = vrot.slane %v530_v46, 4  ;;  %v534_v5 = vsel %vm153_vm8, %v519_v34, %v533_v62  ;;  %v546_v6 = vsel %vm153_vm8, %v530_v46, %v545_v56 }
 0x28b   :  { %v502_v7 = vsel %vm153_vm8, 0.0, %v501_v49  ;;  %v503_v9 = vrot.slane %v488_v48, 4  ;;  %v508_v40 = vsel %vm153_vm8, 0.0, %v507_v63  ;;  %v574_v15 = vsel %vm153_vm8, %v507_v63, %v496_v32 }
 0x28c   :  { %v578_v19 = vperm.slane %v574_v15, %v4861_v3  ;;  %v579_v20 = vrot.slane %v508_v40, 4  ;;  %v538_v14 = vperm.slane %v532_v2, %v4872_v13  ;;  %v544_v21 = vsel %vm153_vm8, %v543_v4, %v524_v41 }
 0x28d   :  { %v504_v22 = vsel %vm153_vm8, 0.0, %v503_v9  ;;  %v563_v23 = vsel %vm153_vm8, %v503_v9, %v484_v42  ;;  %v550_v24 = vperm.slane %v544_v21, %v4872_v13  ;;  %v542_v25 = vperm.slane %v534_v5, %v4872_v13 }
 0x28e   :  { %v568_v26 = vrot.slane %v504_v22, 4  ;;  %v580_v27 = vsel %vm153_vm8, %v579_v20, %v506_v36  ;;  %v599_v28 = vrot.slane %v578_v19, 4  ;;  %v557_v29 = vrot.slane %v538_v14, 4 }
 0x28f   :  { %v584_v30 = vperm.slane %v580_v27, %v4861_v3  ;;  %v554_v32 = vperm.slane %v546_v6, %v4872_v13  ;;  %v555_v34 = vrot.slane %v550_v24, 4  ;;  %v561_v35 = vrot.slane %v542_v25, 4 }
 0x290   :  { %v558_v37 = vsel %vm153_vm8, %v550_v24, %v557_v29  ;;  %v567_v54 = vperm.slane %v563_v23, %v4861_v3  ;;  %v569_v38 = vsel %vm153_vm8, %v568_v26, %v502_v7  ;;  %v323_v39 = vperm.slane %v4983_v43, %v4861_v3 }
 0x291   :  { %4500 = vmatpush.xpose.msk.msra.mxu3 %vm861_vm9, %v558_v37  ;;  %v559_v41 = vrot.slane %v554_v32, 4  ;;  %v556_v42 = vsel %vm153_vm8, %v555_v34, %v538_v14  ;;  %v573_v44 = vperm.slane %v569_v38, %v4861_v3  ;;  %v354_v45 = vsel %vm153_vm8, %v353_v1, %v4993_v61 }
 0x292   :  { %4498 = vmatpush.xpose.msk.msra.mxu1 %vm861_vm9, %v556_v42  ;;  %v562_v46 = vsel %vm153_vm8, %v554_v32, %v561_v35  ;;  %v587_v51 = vrot.slane %v567_v54, 4  ;;  %v600_v53 = vsel %vm153_vm8, %v584_v30, %v599_v28  ;;  %v597_v43 = vrot.slane %v584_v30, 4 }
 0x293   :  { %v560_v56 = vsel %vm153_vm8, %v559_v41, %v542_v25  ;;  %v608_v62 = vperm.slane %v600_v53, %v4872_v13  ;;  %v585_v48 = vrot.slane %v573_v44, 4  ;;  %v341_v49 = vrot.slane %v4988_v50, 4 }
 0x294   :  { %v588_v1 = vsel %vm153_vm8, %v573_v44, %v587_v51  ;;  %v598_v36 = vsel %vm153_vm8, %v597_v43, %v578_v19  ;;  %v355_v63 = vrot.slane %v4993_v61, 4  ;;  %v360_v2 = vperm.slane %v354_v45, %v4872_v13  ;;  %4501 = vmatmul.msk.f32.vlgmr.msra.gmra.mxu3 %vm861_vm9, %v4920_v8 }
 0x295   :  { %4502 = vmatpush.xpose.msk.msrb.mxu3 %vm861_vm9, %v560_v56  ;;  %4499 = vmatmul.msk.f32.vlgmr.msra.gmra.mxu1 %vm861_vm9, %v4923_v16  ;;  %v596_v4 = vperm.slane %v588_v1, %v4872_v13  ;;  %v613_v5 = vrot.slane %v608_v62, 4  ;;  %v586_v6 = vsel %vm153_vm8, %v585_v48, %v567_v54  ;;  %v604_v7 = vperm.slane %v598_v36, %v4872_v13 }
 0x296   :  { %4504 = vmatpush.xpose.msk.msrb.mxu1 %vm861_vm9, %v562_v46  ;;  %v592_v9 = vperm.slane %v586_v6, %v4872_v13  ;;  %v343_v40 = vrot.slane %v323_v39, 4  ;;  %v342_v20 = vsel %vm153_vm8, %v341_v49, %v323_v39  ;;  %v365_v21 = vrot.slane %v360_v2, 4 }
 0x297   :  { %v614_v61 = vsel %vm153_vm8, %v613_v5, %v596_v4  ;;  %v609_v15 = vrot.slane %v604_v7, 4  ;;  %v615_v19 = vrot.slane %v596_v4, 4  ;;  %v356_v22 = vsel %vm153_vm8, %v4972_v31, %v355_v63 }
 0x298   :  { %v611_v8 = vrot.slane %v592_v9, 4  ;;  %v344_v24 = vsel %vm153_vm8, %v4988_v50, %v343_v40  ;;  %v348_v25 = vperm.slane %v342_v20, %v4872_v13  ;;  %v364_v26 = vperm.slane %v356_v22, %v4872_v13 }
 0x299   :  { %v610_v16 = vsel %vm153_vm8, %v609_v15, %v592_v9  ;;  %v616_v14 = vsel %vm153_vm8, %v608_v62, %v615_v19  ;;  %v352_v27 = vperm.slane %v344_v24, %v4872_v13  ;;  %v4589_v24 = vpack.i.bf16 %v4893_v33, %v4831_v57 }
 0x29a   :  { %4510 = vmatpush.xpose.msk.msra.mxu1 %vm861_vm9, %v614_v61  ;;  %4506 = vmatpush.xpose.msk.msra.mxu2 %vm861_vm9, %v610_v16  ;;  %v612_v23 = vsel %vm153_vm8, %v604_v7, %v611_v8  ;;  %v366_v31 = vsel %vm153_vm8, %v365_v21, %v348_v25  ;;  %v367_v50 = vrot.slane %v348_v25, 4  ;;  %v369_v28 = vrot.slane %v364_v26, 4 }
 0x29b   :  { %4508 = vmatpush.xpose.msk.msra.mxu3 %vm861_vm9, %v612_v23  ;;  %v371_v29 = vrot.slane %v352_v27, 4  ;;  %v4579_v23 = vpack.i.bf16 %v4870_v12, %v4825_v55 }
 0x29c   :  { %4503 = vmatmul.msk.f32.vlgmr.msrb.gmra.mxu3 %vm861_vm9, %v4926_v17  ;;  %v368_v30 = vsel %vm153_vm8, %v360_v2, %v367_v50  ;;  %v370_v32 = vsel %vm153_vm8, %v369_v28, %v352_v27 }
 0x29d   :  { %4505 = vmatmul.msk.f32.vlgmr.msrb.gmra.mxu1 %vm861_vm9, %v4929_v18  ;;  %4507 = vmatmul.msk.f32.vlgmr.msra.gmra.mxu2 %vm861_vm9, %v366_v31  ;;  %v372_v17 = vsel %vm153_vm8, %v364_v26, %v371_v29  ;;  %v92_v18 = vld [vmem:[%s6408_s1] sm:$0x3]  ;;  %s4772_s1 = smov 64  }
 0x29e   :  { %4512 = vmatpush.xpose.msk.msrb.mxu2 %vm861_vm9, %v616_v14  ;;  %v93_v34 = vsub.f32 1.0, %v92_v18 }
 0x2a0   :  { %v94_v35 = vmul.f32 -10000.0, %v93_v34 }
 0x2a2   :  { %v5103_v37 = vperm.slane %v94_v35, 0  ;;  %v96_v53 = vrot.slane %v94_v35, 1 }
 0x2a4   :  { %4509 = vmatmul.msk.f32.vlgmr.msra.gmra.mxu3 %vm861_vm9, %v368_v30  ;;  %v5111_v49 = vperm.slane %v96_v53, 0 }
 0x2a5   :  { %4511 = vmatmul.msk.f32.vlgmr.msra.gmra.mxu1 %vm861_vm9, %v370_v32  ;;  %4513 = vmatmul.msk.f32.vlgmr.msrb.gmra.mxu2 %vm861_vm9, %v372_v17 }
 0x312   :  { %v885_v54 = vpop.f32.mrf.mxu1 }
 0x313   :  { %v1070_v38 = vmul.f32 0.35355338, %v885_v54 }
 0x315   :  { %v1082_v39 = vadd.f32 %v5103_v37, %v1070_v38 }
 0x317   :  { %v1090_v41 = vsel %vm861_vm9, %v1082_v39, -inf  ;;  %v911_v42 = vpop.f32.mrf.mxu3 }
 0x318   :  { %1091 = vmax.xlane.f32.xlu2 %v1090_v41  ;;  %v1071_v44 = vmul.f32 0.35355338, %v911_v42 }
 0x31a   :  { %v963_v45 = vpop.f32.mrf.mxu1  ;;  %v1083_v51 = vadd.f32 %v5103_v37, %v1071_v44 }
 0x31b   :  { %v1073_v46 = vmul.f32 0.35355338, %v963_v45 }
 0x31c   :  { %v1093_v56 = vsel %vm861_vm9, %v1083_v51, -inf }
 0x31d   :  { %v1085_v43 = vadd.f32 %v5103_v37, %v1073_v46 }
 0x31f   :  { %v1099_v62 = vsel %vm861_vm9, %v1085_v43, -inf  ;;  %v937_v48 = vpop.f32.mrf.mxu3 }
 0x320   :  { %1094 = vmax.xlane.f32.xlu2 %v1093_v56  ;;  %1100 = vmax.xlane.f32.xlu1 %v1099_v62  ;;  %v1072_v1 = vmul.f32 0.35355338, %v937_v48  ;;  %v989_v36 = vpop.f32.mrf.mxu2 }
 0x321   :  { %v1074_v63 = vmul.f32 0.35355338, %v989_v36 }
 0x322   :  { %v1041_v2 = vpop.f32.mrf.mxu1  ;;  %v1084_v5 = vadd.f32 %v5103_v37, %v1072_v1 }
 0x323   :  { %v1076_v4 = vmul.f32 0.35355338, %v1041_v2  ;;  %v1086_v6 = vadd.f32 %v5111_v49, %v1074_v63 }
 0x324   :  { %v1096_v7 = vsel %vm861_vm9, %v1084_v5, -inf }
 0x325   :  { %v1088_v9 = vadd.f32 %v5111_v49, %v1076_v4  ;;  %1097 = vmax.xlane.f32.xlu0 %v1096_v7  ;;  %v1102_v61 = vsel %vm861_vm9, %v1086_v6, -inf }
 0x327   :  { %v1108_v40 = vsel %vm861_vm9, %v1088_v9, -inf  ;;  %v1015_v15 = vpop.f32.mrf.mxu3 }
 0x328   :  { %1109 = vmax.xlane.f32.xlu2 %v1108_v40  ;;  %1103 = vmax.xlane.f32.xlu1 %v1102_v61  ;;  %v1075_v19 = vmul.f32 0.35355338, %v1015_v15  ;;  %v1067_v8 = vpop.f32.mrf.mxu2 }
 0x329   :  { %v1077_v20 = vmul.f32 0.35355338, %v1067_v8 }
 0x32a   :  { %v1087_v16 = vadd.f32 %v5111_v49, %v1075_v19 }
 0x32b   :  { %v5121_v14 = vadd.f32 %v5111_v49, %v1077_v20 }
 0x32c   :  { %v1105_v22 = vsel %vm861_vm9, %v1087_v16, -inf }
 0x32d   :  { %v1111_v21 = vsel %vm861_vm9, %v5121_v14, -inf }
 0x32e   :  { %1112 = vmax.xlane.f32.xlu0 %v1111_v21 }
 0x330   :  { %1106 = vmax.xlane.f32.xlu1 %v1105_v22 }
 0x340   :  { %4585 = vrot.lane.b32.xlu2 %v4584_v60, %s4772_s1 }
 0x342   :  { %4580 = vrot.lane.b32.xlu0 %v4579_v23, %s4772_s1 }
 0x348   :  { %4590 = vrot.lane.b32.xlu2 %v4589_v24, %s4772_s1 }
 0x38b   :  { %v1092_v25 = vpop.xlane.xlu2 %1091 }
 0x38c   :  { %v1114_v26 = vsub.f32 %v1082_v39, %v1092_v25 }
 0x38e   :  { %v1122_v31 = vmul.f32 1.442695, %v1114_v26 }
 0x390   :  { %4648 = vpow2.f32 %v1122_v31 }
 0x393   :  { %v1095_v27 = vpop.xlane.xlu2 %1094  ;;  %v1101_v50 = vpop.xlane.xlu1 %1100 }
 0x394   :  { %v1117_v28 = vsub.f32 %v1085_v43, %v1101_v50  ;;  %v1115_v59 = vsub.f32 %v1083_v51, %v1095_v27 }
 0x396   :  { %v5136_v29 = vpop.eup %4648  ;;  %v1128_v58 = vmul.f32 1.442695, %v1117_v28  ;;  %v1124_v12 = vmul.f32 1.442695, %v1115_v59 }
 0x397   :  { %v1138_v55 = vsel %vm861_vm9, %v5136_v29, 0.0 }
 0x398   :  { %1139 = vadd.xlane.f32.xlu1 %v1138_v55  ;;  %4650 = vpow2.f32 %v1128_v58  ;;  %v1098_v60 = vpop.xlane.xlu0 %1097 }
 0x399   :  { %v1116_v57 = vsub.f32 %v1084_v5, %v1098_v60 }
 0x39b   :  { %v1110_v33 = vpop.xlane.xlu2 %1109  ;;  %v1104_v30 = vpop.xlane.xlu1 %1103  ;;  %v1126_v32 = vmul.f32 1.442695, %v1116_v57  ;;  %v4594_v57 = vpack.i.bf16 %v4868_v11, %v4856_v0 }
 0x39c   :  { %v1120_v17 = vsub.f32 %v1088_v9, %v1110_v33  ;;  %v1118_v18 = vsub.f32 %v1086_v6, %v1104_v30 }
 0x39d   :  { %4652 = vpow2.f32 %v1126_v32 }
 0x39e   :  { %v1130_v34 = vmul.f32 1.442695, %v1118_v18  ;;  %v5140_v35 = vpop.eup %4650  ;;  %4654 = vpow2.f32 %v1124_v12  ;;  %v1134_v54 = vmul.f32 1.442695, %v1120_v17 }
 0x39f   :  { %v1147_v38 = vsel %vm861_vm9, %v5140_v35, 0.0 }
 0x3a0   :  { %4656 = vpow2.f32 %v1130_v34  ;;  %1148 = vadd.xlane.f32.xlu1 %v1147_v38 }
 0x3a1   :  { %4658 = vpow2.f32 %v1134_v54  ;;  %v5158_v62 = vpop.xlane.xlu0 %1112 }
 0x3a3   :  { %v1107_v39 = vpop.xlane.xlu1 %1106  ;;  %v5144_v41 = vpop.eup %4652 }
 0x3a4   :  { %v1119_v42 = vsub.f32 %v1087_v16, %v1107_v39  ;;  %v5146_v44 = vpop.eup %4654  ;;  %v1144_v45 = vsel %vm861_vm9, %v5144_v41, 0.0  ;;  %v4586_v1 = vpop.permute.xlu2 %4585 }
 0x3a5   :  { %1145 = vadd.xlane.f32.xlu0 %v1144_v45  ;;  %v1141_v53 = vsel %vm861_vm9, %v5146_v44, 0.0  ;;  %v4588_v63 = vunpack.i.h.bf16 %v4586_v1  ;;  %v4587_v2 = vunpack.i.l.bf16 %v4586_v1 }
 0x3a6   :  { %v5150_v46 = vpop.eup %4656  ;;  %v1132_v51 = vmul.f32 1.442695, %v1119_v42 }
 0x3a7   :  { %v1150_v43 = vsel %vm861_vm9, %v5150_v46, 0.0  ;;  %v5156_v56 = vpop.eup %4658  ;;  %v653_v6 = vrot.slane %v4588_v63, 4  ;;  %v641_v7 = vrot.slane %v4587_v2, 4 }
 0x3a8   :  { %1142 = vadd.xlane.f32.xlu1 %v1141_v53  ;;  %1151 = vadd.xlane.f32.xlu2 %v1150_v43  ;;  %4660 = vpow2.f32 %v1132_v51  ;;  %v1156_v48 = vsel %vm861_vm9, %v5156_v56, 0.0 }
 0x3ad   :  { %1157 = vadd.xlane.f32.xlu0 %v1156_v48 }
 0x3ae   :  { %v5162_v36 = vpop.eup %4660 }
 0x3af   :  { %v1153_v4 = vsel %vm861_vm9, %v5162_v36, 0.0 }
 0x3b4   :  { %v4581_v5 = vpop.permute.xlu0 %4580 }
 0x3b5   :  { %1154 = vadd.xlane.f32.xlu0 %v1153_v4  ;;  %v4583_v9 = vunpack.i.h.bf16 %v4581_v5  ;;  %v4582_v40 = vunpack.i.l.bf16 %v4581_v5 }
 0x3b7   :  { %v654_v61 = vsel %vm153_vm8, %v653_v6, %v4583_v9  ;;  %v655_v15 = vrot.slane %v4583_v9, 4  ;;  %v642_v19 = vsel %vm153_vm8, %v641_v7, %v4582_v40  ;;  %v643_v8 = vrot.slane %v4582_v40, 4 }
 0x3b8   :  { %v660_v20 = vperm.slane %v654_v61, %v4861_v3  ;;  %v648_v16 = vperm.slane %v642_v19, %v4861_v3 }
 0x3b9   :  { %v656_v21 = vsel %vm153_vm8, %v4588_v63, %v655_v15  ;;  %v644_v22 = vsel %vm153_vm8, %v4587_v2, %v643_v8 }
 0x3ba   :  { %v664_v23 = vperm.slane %v656_v21, %v4861_v3  ;;  %v665_v24 = vrot.slane %v660_v20, 4  ;;  %v652_v25 = vperm.slane %v644_v22, %v4861_v3  ;;  %v667_v26 = vrot.slane %v648_v16, 4 }
 0x3bc   :  { %v677_v31 = vrot.slane %v664_v23, 4  ;;  %v666_v27 = vsel %vm153_vm8, %v665_v24, %v648_v16  ;;  %v668_v50 = vsel %vm153_vm8, %v660_v20, %v667_v26  ;;  %v679_v28 = vrot.slane %v652_v25, 4 }
 0x3bd   :  { %v672_v58 = vperm.slane %v666_v27, %v4872_v13  ;;  %v676_v59 = vperm.slane %v668_v50, %v4872_v13  ;;  %v1121_v27 = vsub.f32 %v5121_v14, %v5158_v62 }
 0x3be   :  { %v678_v55 = vsel %vm153_vm8, %v677_v31, %v652_v25  ;;  %v680_v60 = vsel %vm153_vm8, %v664_v23, %v679_v28 }
 0x3bf   :  { %v684_v12 = vperm.slane %v678_v55, %v4872_v13  ;;  %v688_v33 = vperm.slane %v680_v60, %v4872_v13  ;;  %v689_v30 = vrot.slane %v672_v58, 4  ;;  %v691_v32 = vrot.slane %v676_v59, 4 }
 0x3c0   :  { %v1136_v50 = vmul.f32 1.442695, %v1121_v27 }
 0x3c1   :  { %v692_v17 = vsel %vm153_vm8, 0.0, %v691_v32  ;;  %v693_v18 = vrot.slane %v684_v12, 4  ;;  %v695_v34 = vrot.slane %v688_v33, 4  ;;  %4595 = vrot.lane.b32.xlu1 %v4594_v57, %s4772_s1  ;;  %v753_v54 = vsel %vm153_vm8, %v691_v32, %v672_v58  ;;  %v5215_v57 = vpop.permute.xlu2 %4590 }
 0x3c2   :  { %v758_v38 = vrot.slane %v692_v17, 4  ;;  %v690_v39 = vsel %vm153_vm8, 0.0, %v689_v30  ;;  %v757_v0 = vperm.slane %v753_v54, %v4861_v3  ;;  %4662 = vpow2.f32 %v1136_v50 }
 0x3c3   :  { %v696_v42 = vsel %vm153_vm8, 0.0, %v695_v34  ;;  %v764_v11 = vsel %vm153_vm8, %v695_v34, %v684_v12  ;;  %v694_v43 = vsel %vm153_vm8, 0.0, %v693_v18 }
 0x3c4   :  { %v769_v45 = vrot.slane %v696_v42, 4  ;;  %v759_v51 = vsel %vm153_vm8, %v758_v38, %v690_v39  ;;  %v768_v53 = vperm.slane %v764_v11, %v4861_v3  ;;  %v777_v1 = vrot.slane %v757_v0, 4 }
 0x3c5   :  { %v763_v48 = vperm.slane %v759_v51, %v4861_v3  ;;  %v4593_v11 = vunpack.i.h.bf16 %v5215_v57 }
 0x3c6   :  { %v770_v63 = vsel %vm153_vm8, %v769_v45, %v694_v43  ;;  %v789_v2 = vrot.slane %v768_v53, 4 }
 0x3c7   :  { %v774_v4 = vperm.slane %v770_v63, %v4861_v3  ;;  %v778_v5 = vsel %vm153_vm8, %v763_v48, %v777_v1  ;;  %v775_v6 = vrot.slane %v763_v48, 4 }
 0x3c8   :  { %v786_v7 = vperm.slane %v778_v5, %v4872_v13  ;;  %v5211_v28 = vpop.eup %4662 }
 0x3c9   :  { %v790_v9 = vsel %vm153_vm8, %v774_v4, %v789_v2  ;;  %v776_v40 = vsel %vm153_vm8, %v775_v6, %v757_v0  ;;  %v787_v61 = vrot.slane %v774_v4, 4  ;;  %v1159_v58 = vsel %vm861_vm9, %v5211_v28, 0.0 }
 0x3ca   :  { %v798_v15 = vperm.slane %v790_v9, %v4872_v13  ;;  %v805_v19 = vrot.slane %v786_v7, 4  ;;  %v782_v8 = vperm.slane %v776_v40, %v4872_v13  ;;  %v5229_v2 = vrot.slane %v4593_v11, 4 }
 0x3cb   :  { %v788_v20 = vsel %vm153_vm8, %v787_v61, %v768_v53  ;;  %v4592_v4 = vunpack.i.l.bf16 %v5215_v57 }
 0x3cc   :  { %v806_v16 = vsel %vm153_vm8, %v798_v15, %v805_v19  ;;  %v794_v21 = vperm.slane %v788_v20, %v4872_v13  ;;  %v801_v22 = vrot.slane %v782_v8, 4  ;;  %v803_v23 = vrot.slane %v798_v15, 4 }
 0x3cd   :  { %1621 = vmatpush.msra.mxu2 %v806_v16 }
 0x3ce   :  { %v799_v24 = vrot.slane %v794_v21, 4  ;;  %v802_v25 = vsel %vm153_vm8, %v794_v21, %v801_v22  ;;  %v804_v26 = vsel %vm153_vm8, %v803_v23, %v786_v7 }
 0x3cf   :  { %1575 = vmatpush.msrb.mxu0 %v802_v25  ;;  %1598 = vmatpush.msrb.mxu1 %v804_v26 }
 0x3d0   :  { %v800_v31 = vsel %vm153_vm8, %v799_v24, %v782_v8 }
 0x3d1   :  { %1552 = vmatpush.msrb.mxu3 %v800_v31 }
 0x3eb   :  { %1160 = vadd.xlane.f32.xlu1 %v1159_v58 }
 0x40b   :  { %v1140_v59 = vpop.xlane.xlu1 %1139 }
 0x40c   :  { %4664 = vrcp.f32 %v1140_v59  ;;  %v1173_v30 = vand.u32 2147483648, %v1140_v59  ;;  %v1171_v14 = vand.u32 2147483647, %v1140_v59  ;;  %vm1167_vm11 = vweird.f32 %v1140_v59 }
 0x40e   :  { %v1174_v18 = vor.u32 1.1754944e-38, %v1173_v30  ;;  %vm1172_vm13 = vcmp.eq.f32.partialorder %v1171_v14, 8.507059e+37 }
 0x412   :  { %v4665_v55 = vpop.eup %4664 }
 0x413   :  { %v1163_v60 = vmul.f32 %v4665_v55, %v1140_v59  ;;  %v1149_v12 = vpop.xlane.xlu1 %1148  ;;  %vm1168_vm10 = vweird.f32 %v4665_v55 }
 0x414   :  { %4666 = vrcp.f32 %v1149_v12  ;;  %vm1169_vm12 = vmor %vm1167_vm11, %vm1168_vm10  ;;  %v1216_v51 = vand.u32 2147483647, %v1149_v12  ;;  %v1218_v53 = vand.u32 2147483648, %v1149_v12  ;;  %vm1212_vm15 = vweird.f32 %v1149_v12 }
 0x415   :  { %v1164_v33 = vsub.f32 1.0, %v1163_v60 }
 0x416   :  { %vm1217_vm2 = vcmp.eq.f32.partialorder %v1216_v51, 8.507059e+37  ;;  %v1219_v40 = vor.u32 1.1754944e-38, %v1218_v53 }
 0x417   :  { %v1165_v32 = vmul.f32 %v4665_v55, %v1164_v33 }
 0x418   :  { %v1146_v17 = vpop.xlane.xlu0 %1145 }
 0x419   :  { %v1166_v62 = vadd.f32 %v4665_v55, %v1165_v32  ;;  %4668 = vrcp.f32 %v1146_v17  ;;  %v1201_v63 = vand.u32 2147483647, %v1146_v17  ;;  %vm1197_vm3 = vweird.f32 %v1146_v17 }
 0x41a   :  { %v4667_v34 = vpop.eup %4666 }
 0x41b   :  { %v1170_v54 = vsel %vm1169_vm12, %v4665_v55, %v1166_v62  ;;  %v1208_v39 = vmul.f32 %v4667_v34, %v1149_v12  ;;  %v5217_v42 = vpop.xlane.xlu2 %1151  ;;  %v5219_v0 = vpop.xlane.xlu1 %1142  ;;  %vm1213_vm14 = vweird.f32 %v4667_v34  ;;  %vm5239_vm4 = vcmp.eq.f32.partialorder %v1201_v63, 8.507059e+37 }
 0x41c   :  { %v1175_v38 = vsel %vm1172_vm13, %v1174_v18, %v1170_v54  ;;  %4670 = vrcp.f32 %v5217_v42  ;;  %vm1214_vm1 = vmor %vm1212_vm15, %vm1213_vm14  ;;  %v1231_v16 = vand.u32 2147483647, %v5217_v42  ;;  %vm1227_vm6 = vweird.f32 %v5217_v42 }
 0x41d   :  { %v1209_v45 = vsub.f32 1.0, %v1208_v39  ;;  %4672 = vrcp.f32 %v5219_v0  ;;  %v5225_v43 = vmul.f32 %v5136_v29, %v1175_v38  ;;  %v1203_v29 = vand.u32 2147483648, %v1146_v17 }
 0x41e   :  { %v1233_v27 = vand.u32 2147483648, %v5217_v42  ;;  %vm1182_vm7 = vweird.f32 %v5219_v0  ;;  %vm5255_vm11 = vcmp.eq.f32.partialorder %v1231_v16, 8.507059e+37  ;;  %v1186_v60 = vand.u32 2147483647, %v5219_v0 }
 0x41f   :  { %v4669_v48 = vpop.eup %4668  ;;  %v1210_v1 = vmul.f32 %v4667_v34, %v1209_v45  ;;  %4514 = vmatmul.msk.f32.vlgmr.msrb.gmra.mxu3 %vm861_vm9, %v5225_v43  ;;  %v1204_v24 = vor.u32 1.1754944e-38, %v1203_v29  ;;  %v1284_v51 = vrot.slane %v5225_v43, 4 }
 0x420   :  { %v1193_v5 = vmul.f32 %v4669_v48, %v1146_v17  ;;  %v5232_v6 = vpop.xlane.xlu0 %1157  ;;  %vm1198_vm5 = vweird.f32 %v4669_v48  ;;  %v1234_v39 = vor.u32 1.1754944e-38, %v1233_v27  ;;  %vm5279_vm15 = vcmp.eq.f32.partialorder %v1186_v60, 8.507059e+37 }
 0x421   :  { %v1211_v7 = vadd.f32 %v4667_v34, %v1210_v1  ;;  %4674 = vrcp.f32 %v5232_v6  ;;  %vm1199_vm10 = vmor %vm1197_vm3, %vm1198_vm5  ;;  %v1263_v54 = vand.u32 2147483648, %v5232_v6 }
 0x422   :  { %v5237_v9 = vpop.eup %4670  ;;  %v1194_v61 = vsub.f32 1.0, %v1193_v5 }
 0x423   :  { %v4673_v15 = vpop.eup %4672  ;;  %v1215_v19 = vsel %vm1214_vm1, %v4667_v34, %v1211_v7  ;;  %v1223_v20 = vmul.f32 %v5237_v9, %v5217_v42  ;;  %vm1228_vm12 = vweird.f32 %v5237_v9  ;;  %v1261_v34 = vand.u32 2147483647, %v5232_v6 }
 0x424   :  { %v1220_v21 = vsel %vm1217_vm2, %v1219_v40, %v1215_v19  ;;  %v1195_v22 = vmul.f32 %v4669_v48, %v1194_v61  ;;  %v1178_v23 = vmul.f32 %v4673_v15, %v5219_v0  ;;  %vm1183_vm13 = vweird.f32 %v4673_v15  ;;  %vm5275_vm14 = vmor %vm1227_vm6, %vm1228_vm12 }
 0x425   :  { %v1224_v25 = vsub.f32 1.0, %v1223_v20  ;;  %v5249_v26 = vmul.f32 %v5140_v35, %v1220_v21  ;;  %v1188_v35 = vand.u32 2147483648, %v5219_v0  ;;  %vm1184_vm1 = vmor %vm1182_vm7, %vm1183_vm13  ;;  %vm1257_vm2 = vweird.f32 %v5232_v6 }
 0x426   :  { %v1196_v31 = vadd.f32 %v4669_v48, %v1195_v22  ;;  %v1179_v50 = vsub.f32 1.0, %v1178_v23  ;;  %v699_v21 = vrot.slane %v4592_v4, 4 }
 0x427   :  { %v4675_v58 = vpop.eup %4674  ;;  %v1225_v59 = vmul.f32 %v5237_v9, %v1224_v25  ;;  %4517 = vmatmul.msk.f32.vlgmr.msra.gmra.mxu2 %vm861_vm9, %v5249_v26  ;;  %v1294_v19 = vrot.slane %v5249_v26, 4 }
 0x428   :  { %v1200_v12 = vsel %vm1199_vm10, %v4669_v48, %v1196_v31  ;;  %v1180_v33 = vmul.f32 %v4673_v15, %v1179_v50  ;;  %v1253_v30 = vmul.f32 %v4675_v58, %v5232_v6  ;;  %v5265_v32 = vpop.xlane.xlu0 %1154  ;;  %v1189_v48 = vor.u32 1.1754944e-38, %v1188_v35 }
 0x429   :  { %v1205_v14 = vsel %vm5239_vm4, %v1204_v24, %v1200_v12  ;;  %v1226_v62 = vadd.f32 %v5237_v9, %v1225_v59  ;;  %4676 = vrcp.f32 %v5265_v32  ;;  %vm1258_vm3 = vweird.f32 %v4675_v58 }
 0x42a   :  { %v1181_v17 = vadd.f32 %v4673_v15, %v1180_v33  ;;  %v1254_v18 = vsub.f32 1.0, %v1253_v30  ;;  %v1206_v53 = vmul.f32 %v5144_v41, %v1205_v14  ;;  %vm1262_vm4 = vcmp.eq.f32.partialorder %v1261_v34, 8.507059e+37  ;;  %vm1259_vm5 = vmor %vm1257_vm2, %vm1258_vm3 }
 0x42b   :  { %v1230_v42 = vsel %vm5275_vm14, %v5237_v9, %v1226_v62  ;;  %v1264_v41 = vor.u32 1.1754944e-38, %v1263_v54  ;;  %vm1242_vm6 = vweird.f32 %v5265_v32  ;;  %vm1531_vm2 = vcmask 195584  }
 0x42c   :  { %v1255_v1 = vmul.f32 %v4675_v58, %v1254_v18  ;;  %v1282_v63 = vrot.slane %v1206_v53, 4  ;;  %v1285_v5 = vsel %vm153_vm8, %v1206_v53, %v1284_v51  ;;  %4516 = vmatmul.msk.f32.vlgmr.msrb.gmra.mxu1 %vm861_vm9, %v1206_v53  ;;  %v1185_v7 = vsel %vm1184_vm1, %v4673_v15, %v1181_v17 }
 0x42d   :  { %v1190_v0 = vsel %vm5279_vm15, %v1189_v48, %v1185_v7  ;;  %v5300_v9 = vperm.slane %v1285_v5, %v4861_v3  ;;  %v1235_v15 = vsel %vm5255_vm11, %v1234_v39, %v1230_v42  ;;  %vm1528_vm1 = vcmask 130048  }
 0x42e   :  { %v1256_v29 = vadd.f32 %v4675_v58, %v1255_v1  ;;  %v1283_v6 = vsel %vm153_vm8, %v1282_v63, %v5225_v43  ;;  %v1191_v61 = vmul.f32 %v5146_v44, %v1190_v0  ;;  %v5322_v59 = vmul.f32 %v5150_v46, %v1235_v15 }
 0x42f   :  { %v5295_v40 = vpop.eup %4676  ;;  %v1289_v16 = vperm.slane %v1283_v6, %v4861_v3  ;;  %v1320_v27 = vrot.slane %v5300_v9, 4 }
 0x430   :  { %v1260_v8 = vsel %vm1259_vm5, %v4675_v58, %v1256_v29  ;;  %v1238_v20 = vmul.f32 %v5295_v40, %v5265_v32  ;;  %v1295_v22 = vsel %vm153_vm8, %v1294_v19, %v1191_v61  ;;  %v1296_v23 = vrot.slane %v1191_v61, 4  ;;  %4515 = vmatmul.msk.f32.vlgmr.msrb.gmra.mxu0 %vm861_vm9, %v1191_v61 }
 0x431   :  { %v1265_v43 = vsel %vm1262_vm4, %v1264_v41, %v1260_v8  ;;  %v1301_v24 = vperm.slane %v1295_v22, %v4861_v3  ;;  %v1308_v25 = vrot.slane %v1289_v16, 4  ;;  %vm1243_vm7 = vweird.f32 %v5295_v40 }
 0x432   :  { %v1239_v44 = vsub.f32 1.0, %v1238_v20  ;;  %v5315_v31 = vmul.f32 %v5156_v56, %v1265_v43  ;;  %v1297_v50 = vsel %vm153_vm8, %v5249_v26, %v1296_v23  ;;  %v1246_v56 = vand.u32 2147483647, %v5265_v32  ;;  %vm5355_vm10 = vmor %vm1242_vm6, %vm1243_vm7 }
 0x433   :  { %v4596_v58 = vpop.permute.xlu1 %4595  ;;  %v1305_v60 = vperm.slane %v1297_v50, %v4861_v3  ;;  %v1306_v35 = vrot.slane %v1301_v24, 4  ;;  %v1309_v12 = vsel %vm153_vm8, %v1301_v24, %v1308_v25  ;;  %v1248_v26 = vand.u32 2147483648, %v5265_v32 }
 0x434   :  { %v1240_v55 = vmul.f32 %v5295_v40, %v1239_v44  ;;  %v4598_v33 = vunpack.i.h.bf16 %v4596_v58  ;;  %v4597_v30 = vunpack.i.l.bf16 %v4596_v58  ;;  %v1338_v14 = vrot.slane %v5315_v31, 4 }
 0x435   :  { %v1307_v46 = vsel %vm153_vm8, %v1306_v35, %v1289_v16  ;;  %v1321_v62 = vsel %vm153_vm8, %v1305_v60, %v1320_v27  ;;  %v1340_v51 = vrot.slane %v5322_v59, 4  ;;  %v1317_v53 = vperm.slane %v1309_v12, %v4872_v13 }
 0x436   :  { %v1241_v17 = vadd.f32 %v5295_v40, %v1240_v55  ;;  %v709_v18 = vrot.slane %v4598_v33, 4  ;;  %v712_v34 = vsel %vm153_vm8, %v4598_v33, %v5229_v2  ;;  %v697_v54 = vrot.slane %v4597_v30, 4 }
 0x437   :  { %v720_v38 = vperm.slane %v712_v34, %v4861_v3  ;;  %v700_v39 = vsel %vm153_vm8, %v4597_v30, %v699_v21  ;;  %v5340_v45 = vsel %vm153_vm8, %v1338_v14, %v5322_v59  ;;  %v5363_v57 = vsel %vm153_vm8, %v5315_v31, %v1340_v51 }
 0x438   :  { %v710_v48 = vsel %vm153_vm8, %v709_v18, %v4593_v11  ;;  %v698_v2 = vsel %vm153_vm8, %v697_v54, %v4592_v4  ;;  %v708_v1 = vperm.slane %v700_v39, %v4861_v3  ;;  %v1245_v11 = vsel %vm5355_vm10, %v5295_v40, %v1241_v17 }
 0x439   :  { %v716_v63 = vperm.slane %v710_v48, %v4861_v3  ;;  %v733_v5 = vrot.slane %v720_v38, 4  ;;  %v704_v7 = vperm.slane %v698_v2, %v4861_v3  ;;  %v1249_v4 = vor.u32 1.1754944e-38, %v1248_v26 }
 0x43a   :  { %v1318_v29 = vrot.slane %v1305_v60, 4  ;;  %v735_v32 = vrot.slane %v708_v1, 4  ;;  %v1313_v61 = vperm.slane %v1307_v46, %v4872_v13  ;;  %vm1247_vm11 = vcmp.eq.f32.partialorder %v1246_v56, 8.507059e+37 }
 0x43b   :  { %v721_v41 = vrot.slane %v716_v63, 4  ;;  %v723_v0 = vrot.slane %v704_v7, 4  ;;  %v734_v6 = vsel %vm153_vm8, %v733_v5, %v708_v1  ;;  %v1332_v19 = vrot.slane %v1317_v53, 4 }
 0x43c   :  { %v736_v15 = vsel %vm153_vm8, %v720_v38, %v735_v32  ;;  %v740_v8 = vperm.slane %v734_v6, %v4872_v13  ;;  %v5372_v20 = vsel %vm1247_vm11, %v1249_v4, %v1245_v11  ;;  %v1319_v44 = vsel %vm153_vm8, %v1318_v29, %v5300_v9 }
 0x43d   :  { %v722_v16 = vsel %vm153_vm8, %v721_v41, %v704_v7  ;;  %v724_v40 = vsel %vm153_vm8, %v716_v63, %v723_v0  ;;  %v744_v21 = vperm.slane %v736_v15, %v4872_v13  ;;  %v1325_v25 = vperm.slane %v1319_v44, %v4872_v13 }
 0x43e   :  { %v728_v43 = vperm.slane %v722_v16, %v4872_v13  ;;  %v732_v22 = vperm.slane %v724_v40, %v4872_v13  ;;  %v749_v23 = vrot.slane %v740_v8, 4  ;;  %v1329_v27 = vperm.slane %v1321_v62, %v4872_v13 }
 0x43f   :  { %v751_v24 = vrot.slane %v744_v21, 4  ;;  %v1330_v50 = vrot.slane %v1313_v61, 4  ;;  %v1333_v35 = vsel %vm153_vm8, 0.0, %v1332_v19  ;;  %v1334_v30 = vrot.slane %v1325_v25, 4 }
 0x440   :  { %v745_v58 = vrot.slane %v728_v43, 4  ;;  %v747_v55 = vrot.slane %v732_v22, 4  ;;  %v750_v60 = vsel %vm153_vm8, 0.0, %v749_v23  ;;  %v1336_v38 = vrot.slane %v1329_v27, 4 }
 0x441   :  { %v752_v12 = vsel %vm153_vm8, 0.0, %v751_v24  ;;  %v818_v56 = vsel %vm153_vm8, %v751_v24, %v740_v8  ;;  %v1331_v33 = vsel %vm153_vm8, 0.0, %v1330_v50  ;;  %v1335_v34 = vsel %vm153_vm8, 0.0, %v1334_v30 }
 0x442   :  { %v748_v9 = vsel %vm153_vm8, 0.0, %v747_v55  ;;  %v823_v14 = vrot.slane %v752_v12, 4  ;;  %v746_v26 = vsel %vm153_vm8, 0.0, %v745_v58  ;;  %v807_v46 = vsel %vm153_vm8, %v747_v55, %v728_v43 }
 0x443   :  { %v812_v62 = vrot.slane %v748_v9, 4  ;;  %v811_v17 = vperm.slane %v807_v46, %v4861_v3  ;;  %v822_v18 = vperm.slane %v818_v56, %v4861_v3  ;;  %v1394_v39 = vsel %vm153_vm8, %v1332_v19, %v1313_v61 }
 0x444   :  { %v824_v54 = vsel %vm153_vm8, %v823_v14, %v750_v60  ;;  %v1399_v51 = vrot.slane %v1333_v35, 4  ;;  %v1337_v63 = vsel %vm153_vm8, 0.0, %v1336_v38  ;;  %v1398_v5 = vperm.slane %v1394_v39, %v4861_v3 }
 0x445   :  { %v813_v53 = vsel %vm153_vm8, %v812_v62, %v746_v26  ;;  %v828_v48 = vperm.slane %v824_v54, %v4861_v3  ;;  %v831_v2 = vrot.slane %v811_v17, 4  ;;  %v843_v1 = vrot.slane %v822_v18, 4 }
 0x446   :  { %v817_v42 = vperm.slane %v813_v53, %v4861_v3  ;;  %v1400_v7 = vsel %vm153_vm8, %v1399_v51, %v1331_v33  ;;  %v1405_v32 = vsel %vm153_vm8, %v1336_v38, %v1325_v25  ;;  %v1410_v8 = vrot.slane %v1337_v63, 4 }
 0x447   :  { %v844_v11 = vsel %vm153_vm8, %v828_v48, %v843_v1  ;;  %v841_v4 = vrot.slane %v828_v48, 4  ;;  %v1404_v29 = vperm.slane %v1400_v7, %v4861_v3  ;;  %v1409_v61 = vperm.slane %v1405_v32, %v4861_v3 }
 0x448   :  { %v832_v41 = vsel %vm153_vm8, %v817_v42, %v831_v2  ;;  %v852_v0 = vperm.slane %v844_v11, %v4872_v13  ;;  %v829_v6 = vrot.slane %v817_v42, 4  ;;  %v1418_v16 = vrot.slane %v1398_v5, 4 }
 0x449   :  { %v840_v19 = vperm.slane %v832_v41, %v4872_v13  ;;  %v842_v15 = vsel %vm153_vm8, %v841_v4, %v822_v18  ;;  %v1430_v22 = vrot.slane %v1409_v61, 4  ;;  %v1411_v24 = vsel %vm153_vm8, %v1410_v8, %v1335_v34 }
 0x44a   :  { %v857_v40 = vrot.slane %v852_v0, 4  ;;  %v830_v21 = vsel %vm153_vm8, %v829_v6, %v811_v17  ;;  %v848_v43 = vperm.slane %v842_v15, %v4872_v13  ;;  %v1419_v25 = vsel %vm153_vm8, %v1404_v29, %v1418_v16 }
 0x44b   :  { %v836_v23 = vperm.slane %v830_v21, %v4872_v13  ;;  %v859_v44 = vrot.slane %v840_v19, 4  ;;  %v1415_v58 = vperm.slane %v1411_v24, %v4861_v3  ;;  %v1427_v55 = vperm.slane %v1419_v25, %v4872_v13 }
 0x44c   :  { %v858_v27 = vsel %vm153_vm8, %v857_v40, %v840_v19  ;;  %v853_v50 = vrot.slane %v848_v43, 4  ;;  %v1416_v12 = vrot.slane %v1404_v29, 4  ;;  %v1251_v26 = vmul.f32 %v5162_v36, %v5372_v20 }
 0x44d   :  { %1690 = vmatpush.msra.mxu1 %v858_v27  ;;  %v860_v60 = vsel %vm153_vm8, %v852_v0, %v859_v44  ;;  %v855_v35 = vrot.slane %v836_v23, 4  ;;  %v1431_v33 = vsel %vm153_vm8, %v1415_v58, %v1430_v22  ;;  %v1428_v30 = vrot.slane %v1415_v58, 4 }
 0x44e   :  { %4520 = vmatmul.msk.f32.vlgmr.msra.gmra.mxu1 %vm861_vm9, %v5315_v31  ;;  %v854_v56 = vsel %vm153_vm8, %v853_v50, %v836_v23  ;;  %1713 = vmatpush.msrb.mxu2 %v860_v60  ;;  %v1446_v9 = vrot.slane %v1427_v55, 4  ;;  %v1439_v46 = vperm.slane %v1431_v33, %v4872_v13  ;;  %v1417_v62 = vsel %vm153_vm8, %v1416_v12, %v1398_v5 }
 0x44f   :  { %1644 = vmatpush.msra.mxu3 %v854_v56  ;;  %v856_v14 = vsel %vm153_vm8, %v848_v43, %v855_v35  ;;  %v1423_v31 = vperm.slane %v1417_v62, %v4872_v13  ;;  %v1429_v17 = vsel %vm153_vm8, %v1428_v30, %v1409_v61  ;;  %v1349_v29 = vperm.slane %v5363_v57, %v4861_v3 }
 0x450   :  { %4518 = vmatmul.msk.f32.vlgmr.msra.gmra.mxu3 %vm861_vm9, %v5322_v59  ;;  %1667 = vmatpush.msra.mxu0 %v856_v14  ;;  %v1444_v18 = vrot.slane %v1439_v46, 4  ;;  %v1435_v34 = vperm.slane %v1429_v17, %v4872_v13  ;;  %v5435_v54 = vsel %vm153_vm8, %v1439_v46, %v1446_v9  ;;  %v1352_v32 = vrot.slane %v1251_v26, 4 }
 0x451   :  { %4519 = vmatmul.msk.f32.vlgmr.msra.gmra.mxu0 %vm861_vm9, %v1251_v26  ;;  %v1442_v36 = vrot.slane %v1423_v31, 4  ;;  %v1345_v0 = vperm.slane %v5340_v45, %v4861_v3  ;;  %v1376_v15 = vrot.slane %v1349_v29, 4 }
 0x452   :  { %v5438_v20 = vsel %vm153_vm8, %v1444_v18, %v1427_v55  ;;  %v1440_v38 = vrot.slane %v1435_v34, 4 }
 0x453   :  { %v5441_v59 = vsel %vm153_vm8, %v1435_v34, %v1442_v36  ;;  %v1364_v16 = vrot.slane %v1345_v0, 4 }
 0x454   :  { %v5444_v39 = vsel %vm153_vm8, %v1440_v38, %v1423_v31 }
 0x45e   :  { %v1161_v51 = vpop.xlane.xlu1 %1160 }
 0x45f   :  { %4678 = vrcp.f32 %v1161_v51  ;;  %v1278_v1 = vand.u32 2147483648, %v1161_v51  ;;  %v1276_v63 = vand.u32 2147483647, %v1161_v51  ;;  %vm1272_vm13 = vweird.f32 %v1161_v51 }
 0x461   :  { %v1279_v7 = vor.u32 1.1754944e-38, %v1278_v1  ;;  %vm1277_vm15 = vcmp.eq.f32.partialorder %v1276_v63, 8.507059e+37 }
 0x465   :  { %v4679_v53 = vpop.eup %4678 }
 0x466   :  { %v1268_v48 = vmul.f32 %v4679_v53, %v1161_v51  ;;  %vm1273_vm12 = vweird.f32 %v4679_v53 }
 0x467   :  { %vm1274_vm14 = vmor %vm1272_vm13, %vm1273_vm12 }
 0x468   :  { %v1269_v2 = vsub.f32 1.0, %v1268_v48 }
 0x46a   :  { %v1270_v42 = vmul.f32 %v4679_v53, %v1269_v2 }
 0x46c   :  { %v1271_v5 = vadd.f32 %v4679_v53, %v1270_v42 }
 0x46e   :  { %v1275_v11 = vsel %vm1274_vm14, %v4679_v53, %v1271_v5 }
 0x46f   :  { %v1280_v4 = vsel %vm1277_vm15, %v1279_v7, %v1275_v11  ;;  %vm6411_vm15 = vcmask 523264  }
 0x470   :  { %v1281_v41 = vmul.f32 %v5211_v28, %v1280_v4 }
 0x472   :  { %v1350_v6 = vrot.slane %v1281_v41, 4  ;;  %v1353_v61 = vsel %vm153_vm8, %v1281_v41, %v1352_v32  ;;  %4521 = vmatmul.msk.f32.vlgmr.msrb.gmra.mxu2 %vm861_vm9, %v1281_v41 }
 0x473   :  { %v1361_v19 = vperm.slane %v1353_v61, %v4861_v3 }
 0x474   :  { %v1351_v8 = vsel %vm153_vm8, %v1350_v6, %v1251_v26 }
 0x475   :  { %v1357_v40 = vperm.slane %v1351_v8, %v4861_v3  ;;  %v1374_v57 = vrot.slane %v1361_v19, 4  ;;  %v1377_v21 = vsel %vm153_vm8, %v1361_v19, %v1376_v15 }
 0x476   :  { %v1385_v28 = vperm.slane %v1377_v21, %v4872_v13 }
 0x477   :  { %v1362_v43 = vrot.slane %v1357_v40, 4  ;;  %v1365_v45 = vsel %vm153_vm8, %v1357_v40, %v1364_v16  ;;  %v1375_v22 = vsel %vm153_vm8, %v1374_v57, %v1349_v29 }
 0x478   :  { %v1373_v23 = vperm.slane %v1365_v45, %v4872_v13  ;;  %v1381_v44 = vperm.slane %v1375_v22, %v4872_v13  ;;  %v1392_v24 = vrot.slane %v1385_v28, 4 }
 0x479   :  { %v1363_v25 = vsel %vm153_vm8, %v1362_v43, %v1345_v0 }
 0x47a   :  { %v1369_v27 = vperm.slane %v1363_v25, %v4872_v13  ;;  %v1388_v50 = vrot.slane %v1373_v23, 4  ;;  %v1390_v58 = vrot.slane %v1381_v44, 4  ;;  %v1393_v55 = vsel %vm153_vm8, 0.0, %v1392_v24 }
 0x47b   :  { %v1459_v60 = vsel %vm153_vm8, %v1392_v24, %v1381_v44  ;;  %v1464_v35 = vrot.slane %v1393_v55, 4 }
 0x47c   :  { %v1386_v12 = vrot.slane %v1369_v27, 4  ;;  %v1389_v56 = vsel %vm153_vm8, 0.0, %v1388_v50  ;;  %v1391_v33 = vsel %vm153_vm8, 0.0, %v1390_v58  ;;  %v1448_v30 = vsel %vm153_vm8, %v1388_v50, %v1369_v27 }
 0x47d   :  { %v1452_v9 = vperm.slane %v1448_v30, %v4861_v3  ;;  %v1453_v14 = vrot.slane %v1389_v56, 4  ;;  %v1463_v26 = vperm.slane %v1459_v60, %v4861_v3  ;;  %v1465_v46 = vsel %vm153_vm8, %v1464_v35, %v1391_v33 }
 0x47e   :  { %v1387_v62 = vsel %vm153_vm8, 0.0, %v1386_v12  ;;  %v1469_v31 = vperm.slane %v1465_v46, %v4861_v3 }
 0x47f   :  { %v1454_v17 = vsel %vm153_vm8, %v1453_v14, %v1387_v62  ;;  %v1484_v18 = vrot.slane %v1463_v26, 4  ;;  %v1472_v34 = vrot.slane %v1452_v9, 4 }
 0x480   :  { %v1458_v36 = vperm.slane %v1454_v17, %v4861_v3  ;;  %v1482_v38 = vrot.slane %v1469_v31, 4 }
 0x481   :  { %v1485_v51 = vsel %vm153_vm8, %v1469_v31, %v1484_v18 }
 0x482   :  { %v1470_v53 = vrot.slane %v1458_v36, 4  ;;  %v1483_v48 = vsel %vm153_vm8, %v1482_v38, %v1463_v26  ;;  %v1473_v2 = vsel %vm153_vm8, %v1458_v36, %v1472_v34  ;;  %v1493_v1 = vperm.slane %v1485_v51, %v4872_v13 }
 0x483   :  { %v1489_v42 = vperm.slane %v1483_v48, %v4872_v13  ;;  %v1481_v63 = vperm.slane %v1473_v2, %v4872_v13 }
 0x484   :  { %v1471_v5 = vsel %vm153_vm8, %v1470_v53, %v1452_v9  ;;  %v1498_v7 = vrot.slane %v1493_v1, 4 }
 0x485   :  { %v1477_v11 = vperm.slane %v1471_v5, %v4872_v13  ;;  %v1494_v4 = vrot.slane %v1489_v42, 4  ;;  %v1500_v29 = vrot.slane %v1481_v63, 4 }
 0x486   :  { %v5485_v32 = vsel %vm153_vm8, %v1498_v7, %v1481_v63 }
 0x487   :  { %v1496_v41 = vrot.slane %v1477_v11, 4  ;;  %v5488_v0 = vsel %vm153_vm8, %v1494_v4, %v1477_v11  ;;  %v5491_v6 = vsel %vm153_vm8, %v1493_v1, %v1500_v29 }
 0x489   :  { %v5494_v61 = vsel %vm153_vm8, %v1489_v42, %v1496_v41 }
 0x4a2   :  { %v1554_v19 = vpop.f32.mrf.mxu3 }
 0x4a3   :  { %v1720_v15 = vrot.slane %v1554_v19, 4 }
 0x4a9   :  { %v1600_v8 = vpop.f32.mrf.mxu1 }
 0x4aa   :  { %v1623_v16 = vpop.f32.mrf.mxu2  ;;  %v1718_v40 = vrot.slane %v1600_v8, 4  ;;  %v1721_v57 = vsel %vm153_vm8, %v1600_v8, %v1720_v15 }
 0x4ab   :  { %v1730_v21 = vrot.slane %v1623_v16, 4  ;;  %v1729_v45 = vperm.slane %v1721_v57, %v4861_v3 }
 0x4ac   :  { %v1719_v28 = vsel %vm153_vm8, %v1718_v40, %v1554_v19 }
 0x4ad   :  { %v1725_v43 = vperm.slane %v1719_v28, %v4861_v3  ;;  %v1577_v22 = vpop.f32.mrf.mxu0  ;;  %v1756_v50 = vrot.slane %v1729_v45, 4 }
 0x4ae   :  { %v1731_v23 = vsel %vm153_vm8, %v1730_v21, %v1577_v22  ;;  %v1732_v44 = vrot.slane %v1577_v22, 4 }
 0x4af   :  { %v1744_v24 = vrot.slane %v1725_v43, 4  ;;  %v1737_v25 = vperm.slane %v1731_v23, %v4861_v3 }
 0x4b0   :  { %v1733_v27 = vsel %vm153_vm8, %v1623_v16, %v1732_v44 }
 0x4b1   :  { %v1741_v58 = vperm.slane %v1733_v27, %v4861_v3  ;;  %v1742_v55 = vrot.slane %v1737_v25, 4  ;;  %v1745_v60 = vsel %vm153_vm8, %v1737_v25, %v1744_v24 }
 0x4b2   :  { %v1753_v35 = vperm.slane %v1745_v60, %v4872_v13 }
 0x4b3   :  { %v1743_v12 = vsel %vm153_vm8, %v1742_v55, %v1725_v43  ;;  %v1754_v56 = vrot.slane %v1741_v58, 4  ;;  %v1757_v33 = vsel %vm153_vm8, %v1741_v58, %v1756_v50 }
 0x4b4   :  { %v1749_v30 = vperm.slane %v1743_v12, %v4872_v13  ;;  %v1765_v9 = vperm.slane %v1757_v33, %v4872_v13  ;;  %v1768_v14 = vrot.slane %v1753_v35, 4 }
 0x4b5   :  { %v1755_v26 = vsel %vm153_vm8, %v1754_v56, %v1729_v45 }
 0x4b6   :  { %v1761_v46 = vperm.slane %v1755_v26, %v4872_v13  ;;  %v1766_v62 = vrot.slane %v1749_v30, 4  ;;  %v1769_v31 = vsel %vm153_vm8, 0.0, %v1768_v14  ;;  %v1772_v17 = vrot.slane %v1765_v9, 4 }
 0x4b7   :  { %v1830_v18 = vsel %vm153_vm8, %v1768_v14, %v1749_v30  ;;  %v1835_v34 = vrot.slane %v1769_v31, 4 }
 0x4b8   :  { %v1767_v36 = vsel %vm153_vm8, 0.0, %v1766_v62  ;;  %v1770_v38 = vrot.slane %v1761_v46, 4  ;;  %v1773_v51 = vsel %vm153_vm8, 0.0, %v1772_v17  ;;  %v1834_v53 = vperm.slane %v1830_v18, %v4861_v3 }
 0x4b9   :  { %v1846_v48 = vrot.slane %v1773_v51, 4  ;;  %v1836_v2 = vsel %vm153_vm8, %v1835_v34, %v1767_v36  ;;  %v1841_v1 = vsel %vm153_vm8, %v1772_v17, %v1761_v46 }
 0x4ba   :  { %v1771_v42 = vsel %vm153_vm8, 0.0, %v1770_v38  ;;  %v1840_v63 = vperm.slane %v1836_v2, %v4861_v3  ;;  %v1845_v5 = vperm.slane %v1841_v1, %v4861_v3  ;;  %v1854_v7 = vrot.slane %v1834_v53, 4 }
 0x4bb   :  { %v1847_v11 = vsel %vm153_vm8, %v1846_v48, %v1771_v42 }
 0x4bc   :  { %v1851_v4 = vperm.slane %v1847_v11, %v4861_v3  ;;  %v1855_v29 = vsel %vm153_vm8, %v1840_v63, %v1854_v7  ;;  %v1866_v41 = vrot.slane %v1845_v5, 4  ;;  %v1852_v19 = vrot.slane %v1840_v63, 4 }
 0x4bd   :  { %v1863_v15 = vperm.slane %v1855_v29, %v4872_v13 }
 0x4be   :  { %v1867_v8 = vsel %vm153_vm8, %v1851_v4, %v1866_v41  ;;  %v1853_v16 = vsel %vm153_vm8, %v1852_v19, %v1834_v53  ;;  %v1864_v40 = vrot.slane %v1851_v4, 4 }
 0x4bf   :  { %v1875_v57 = vperm.slane %v1867_v8, %v4872_v13  ;;  %v1882_v21 = vrot.slane %v1863_v15, 4  ;;  %v1859_v28 = vperm.slane %v1853_v16, %v4872_v13 }
 0x4c0   :  { %v1865_v43 = vsel %vm153_vm8, %v1864_v40, %v1845_v5 }
 0x4c1   :  { %v1883_v45 = vsel %vm153_vm8, %v1875_v57, %v1882_v21  ;;  %v1880_v22 = vrot.slane %v1875_v57, 4  ;;  %v1871_v23 = vperm.slane %v1865_v43, %v4872_v13  ;;  %v1878_v44 = vrot.slane %v1859_v28, 4  ;;  %v1971_v21 = vld [vmem:[#allocation2 + $0x58] sm:$0xff] }
 0x4c2   :  { %1956 = vrot.lane.b32.xlu1 %v1883_v45, %s4773_s27  ;;  %1992 = vmatpush.msrb.mxu3 %v1971_v21 }
 0x4c3   :  { %v1881_v24 = vsel %vm153_vm8, %v1880_v22, %v1863_v15  ;;  %v1876_v25 = vrot.slane %v1871_v23, 4  ;;  %v1879_v27 = vsel %vm153_vm8, %v1871_v23, %v1878_v44 }
 0x4c4   :  { %1948 = vrot.lane.b32.xlu0 %v1881_v24, %s4774_s28  ;;  %1940 = vrot.lane.b32.xlu2 %v1879_v27, %s4764_s18 }
 0x4c5   :  { %v5539_v50 = vsel %vm153_vm8, %v1876_v25, %v1859_v28  ;;  %v1970_v28 = vld [vmem:[#allocation2 + $0x50] sm:$0xff] }
 0x4c6   :  { %1993 = vmatpush.msrb.mxu3 %v1970_v28 }
 0x4cb   :  { %v1692_v60 = vpop.f32.mrf.mxu1 }
 0x4cc   :  { %v1774_v35 = vrot.slane %v1692_v60, 4 }
 0x4ce   :  { %v1669_v56 = vpop.f32.mrf.mxu0 }
 0x4cf   :  { %v1788_v9 = vrot.slane %v1669_v56, 4 }
 0x4d3   :  { %v1646_v58 = vpop.f32.mrf.mxu3 }
 0x4d4   :  { %v1776_v55 = vrot.slane %v1646_v58, 4  ;;  %v1775_v33 = vsel %vm153_vm8, %v1774_v35, %v1646_v58 }
 0x4d5   :  { %v1781_v14 = vperm.slane %v1775_v33, %v4861_v3 }
 0x4d6   :  { %v1777_v12 = vsel %vm153_vm8, %v1692_v60, %v1776_v55 }
 0x4d7   :  { %v1785_v30 = vperm.slane %v1777_v12, %v4861_v3  ;;  %v1800_v34 = vrot.slane %v1781_v14, 4 }
 0x4d9   :  { %v1812_v31 = vrot.slane %v1785_v30, 4 }
 0x4f5   :  { %v1715_v26 = vpop.f32.mrf.mxu2 }
 0x4f6   :  { %v1786_v46 = vrot.slane %v1715_v26, 4  ;;  %v1789_v62 = vsel %vm153_vm8, %v1715_v26, %v1788_v9 }
 0x4f7   :  { %v1797_v17 = vperm.slane %v1789_v62, %v4861_v3 }
 0x4f8   :  { %v1787_v18 = vsel %vm153_vm8, %v1786_v46, %v1669_v56 }
 0x4f9   :  { %v1793_v36 = vperm.slane %v1787_v18, %v4861_v3  ;;  %v1810_v38 = vrot.slane %v1797_v17, 4  ;;  %v1813_v51 = vsel %vm153_vm8, %v1797_v17, %v1812_v31 }
 0x4fa   :  { %v1821_v53 = vperm.slane %v1813_v51, %v4872_v13 }
 0x4fb   :  { %v1798_v48 = vrot.slane %v1793_v36, 4  ;;  %v1801_v2 = vsel %vm153_vm8, %v1793_v36, %v1800_v34  ;;  %v1811_v1 = vsel %vm153_vm8, %v1810_v38, %v1785_v30 }
 0x4fc   :  { %v1809_v42 = vperm.slane %v1801_v2, %v4872_v13  ;;  %v1817_v63 = vperm.slane %v1811_v1, %v4872_v13  ;;  %v1828_v5 = vrot.slane %v1821_v53, 4  ;;  %v1969_v53 = vld [vmem:[#allocation2 + $0x48] sm:$0xff] }
 0x4fd   :  { %v1799_v7 = vsel %vm153_vm8, %v1798_v48, %v1781_v14  ;;  %1994 = vmatpush.msrb.mxu3 %v1969_v53  ;;  %v1968_v48 = vld [vmem:[#allocation2 + $0x40] sm:$0xff] }
 0x4fe   :  { %v1805_v11 = vperm.slane %v1799_v7, %v4872_v13  ;;  %v1824_v4 = vrot.slane %v1809_v42, 4  ;;  %v1826_v29 = vrot.slane %v1817_v63, 4  ;;  %v1829_v41 = vsel %vm153_vm8, 0.0, %v1828_v5 }
 0x4ff   :  { %v1895_v19 = vsel %vm153_vm8, %v1828_v5, %v1817_v63  ;;  %v1900_v15 = vrot.slane %v1829_v41, 4  ;;  %1995 = vmatpush.msrb.mxu3 %v1968_v48 }
 0x500   :  { %v1822_v8 = vrot.slane %v1805_v11, 4  ;;  %v1825_v16 = vsel %vm153_vm8, 0.0, %v1824_v4  ;;  %v1827_v40 = vsel %vm153_vm8, 0.0, %v1826_v29  ;;  %v1899_v57 = vperm.slane %v1895_v19, %v4861_v3 }
 0x501   :  { %v1889_v43 = vrot.slane %v1825_v16, 4  ;;  %v1884_v45 = vsel %vm153_vm8, %v1824_v4, %v1805_v11  ;;  %v1901_v22 = vsel %vm153_vm8, %v1900_v15, %v1827_v40 }
 0x502   :  { %v1823_v23 = vsel %vm153_vm8, 0.0, %v1822_v8  ;;  %v1888_v44 = vperm.slane %v1884_v45, %v4861_v3  ;;  %v1905_v24 = vperm.slane %v1901_v22, %v4861_v3  ;;  %v1920_v25 = vrot.slane %v1899_v57, 4 }
 0x503   :  { %v1890_v27 = vsel %vm153_vm8, %v1889_v43, %v1823_v23 }
 0x504   :  { %v1894_v58 = vperm.slane %v1890_v27, %v4861_v3  ;;  %v1908_v55 = vrot.slane %v1888_v44, 4  ;;  %v1921_v60 = vsel %vm153_vm8, %v1905_v24, %v1920_v25  ;;  %v1918_v35 = vrot.slane %v1905_v24, 4 }
 0x505   :  { %v1929_v12 = vperm.slane %v1921_v60, %v4872_v13 }
 0x506   :  { %v1909_v56 = vsel %vm153_vm8, %v1894_v58, %v1908_v55  ;;  %v1906_v33 = vrot.slane %v1894_v58, 4  ;;  %v1919_v30 = vsel %vm153_vm8, %v1918_v35, %v1899_v57  ;;  %v2059_v35 = vld [vmem:[#allocation2 + $0x90] sm:$0xff] }
 0x507   :  { %v1917_v9 = vperm.slane %v1909_v56, %v4872_v13  ;;  %v1934_v14 = vrot.slane %v1929_v12, 4  ;;  %v1925_v26 = vperm.slane %v1919_v30, %v4872_v13  ;;  %v2057_v56 = vld [vmem:[#allocation2 + $0x80] sm:$0xff] }
 0x508   :  { %v1907_v46 = vsel %vm153_vm8, %v1906_v33, %v1888_v44 }
 0x509   :  { %v1935_v62 = vsel %vm153_vm8, %v1934_v14, %v1917_v9  ;;  %v1913_v31 = vperm.slane %v1907_v46, %v4872_v13  ;;  %v1930_v17 = vrot.slane %v1925_v26, 4  ;;  %v1936_v38 = vrot.slane %v1917_v9, 4 }
 0x50a   :  { %1950 = vrot.lane.b32.xlu2 %v1935_v62, %s4774_s28 }
 0x50b   :  { %v1932_v18 = vrot.slane %v1913_v31, 4  ;;  %v1931_v34 = vsel %vm153_vm8, %v1930_v17, %v1913_v31  ;;  %v1937_v51 = vsel %vm153_vm8, %v1929_v12, %v1936_v38  ;;  %v2058_v12 = vld [vmem:[#allocation2 + $0x88] sm:$0xff] }
 0x50c   :  { %v4627_v38 = vld [vmem:[#allocation2 + $0x149] ss:$0 sm:$0xff] }
 0x50d   :  { %v1933_v36 = vsel %vm153_vm8, %v1925_v26, %v1932_v18  ;;  %v4626_v18 = vld [vmem:[#allocation2 + $0x148] ss:$0 sm:$0xff] }
 0x50e   :  { %1942 = vrot.lane.b32.xlu0 %v1933_v36, %s4764_s18 }
 0x516   :  { %1958 = vrot.lane.b32.xlu0 %v1937_v51, %s4773_s27 }
 0x51e   :  { %v1941_v2 = vpop.permute.xlu2 %1940 }
 0x51f   :  { %v1962_v1 = vsel %vm861_vm9, %v5539_v50, %v1941_v2  ;;  %v4625_v50 = vld [vmem:[#allocation2 + $0x146] ss:$0 sm:$0xff] }
 0x534   :  { %v1957_v63 = vpop.permute.xlu1 %1956 }
 0x536   :  { %v1949_v42 = vpop.permute.xlu0 %1948 }
 0x537   :  { %v1964_v5 = vsel %vm1528_vm1, %v1962_v1, %v1949_v42 }
 0x538   :  { %v1966_v7 = vsel %vm1531_vm2, %v1964_v5, %v1957_v63 }
 0x539   :  { %4522 = vmatmul.msk.f32.vlgmr.msrb.gmra.mxu3 %vm34_vm0, %v1966_v7 }
 0x564   :  { %v1951_v29 = vpop.permute.xlu2 %1950 }
 0x580   :  { %v1943_v11 = vpop.permute.xlu0 %1942 }
 0x581   :  { %v1963_v4 = vsel %vm861_vm9, %v1931_v34, %v1943_v11 }
 0x582   :  { %v1965_v19 = vsel %vm1528_vm1, %v1963_v4, %v1951_v29 }
 0x588   :  { %v1959_v41 = vpop.permute.xlu0 %1958 }
 0x589   :  { %v1967_v15 = vsel %vm1531_vm2, %v1965_v19, %v1959_v41 }
 0x58a   :  { %4523 = vmatmul.msk.f32.gmra.mxu3 %vm34_vm0, %v1967_v15 }
 0x5bc   :  { %v1997_v8 = vpop.f32.mrf.mxu3 }
 0x5bd   :  { %v1998_v16 = vadd.f32 %v4625_v50, %v1997_v8 }
 0x5bf   :  { %v2003_v40 = vadd.f32 %v1998_v16, %v4817_v47 }
 0x5c1   :  { %v2007_v57 = vsel %vm34_vm0, %v2003_v40, 0.0 }
 0x5c2   :  { %2008 = vadd.xlane.f32.xlu2 %v2007_v57 }
 0x60d   :  { %v2000_v21 = vpop.f32.mrf.mxu3 }
 0x60e   :  { %v2001_v28 = vadd.f32 %v4625_v50, %v2000_v21  ;;  %v5611_v50 = vld [vmem:[#allocation2 + $0x142] ss:$0 sm:$0xff] }
 0x610   :  { %v2004_v43 = vadd.f32 %v2001_v28, %v4821_v52  ;;  %v2060_v52 = vld [vmem:[#allocation2 + $0x98] sm:$0xff] }
 0x611   :  { %2090 = vmatpush.msrb.mxu0 %v2060_v52 }
 0x612   :  { %v2010_v45 = vsel %vm34_vm0, %v2004_v43, 0.0 }
 0x613   :  { %2011 = vadd.xlane.f32.xlu0 %v2010_v45  ;;  %2091 = vmatpush.msrb.mxu0 %v2059_v35  ;;  %v2067_v35 = vld [vmem:[#allocation2 + $0xe8] sm:$0xff] }
 0x615   :  { %2092 = vmatpush.msrb.mxu0 %v2058_v12 }
 0x617   :  { %2093 = vmatpush.msrb.mxu0 %v2057_v56  ;;  %v2066_v56 = vld [vmem:[#allocation2 + $0xe0] sm:$0xff] }
 0x635   :  { %v2009_v22 = vpop.xlane.xlu2 %2008 }
 0x636   :  { %v2013_v23 = vmul.f32 %v2009_v22, %v4809_v10 }
 0x638   :  { %v2015_v44 = vsub.f32 %v2003_v40, %v2013_v23 }
 0x63a   :  { %v2017_v24 = vmul.f32 %v2015_v44, %v2015_v44 }
 0x63c   :  { %v2019_v25 = vsel %vm34_vm0, %v2017_v24, 0.0 }
 0x63d   :  { %2020 = vadd.xlane.f32.xlu1 %v2019_v25 }
 0x686   :  { %v2012_v27 = vpop.xlane.xlu0 %2011 }
 0x687   :  { %v2014_v47 = vmul.f32 %v2012_v27, %v4809_v10 }
 0x689   :  { %v2016_v58 = vsub.f32 %v2004_v43, %v2014_v47 }
 0x68b   :  { %v2018_v55 = vmul.f32 %v2016_v58, %v2016_v58 }
 0x68d   :  { %v2022_v60 = vsel %vm34_vm0, %v2018_v55, 0.0 }
 0x68e   :  { %2023 = vadd.xlane.f32.xlu2 %v2022_v60  ;;  %v2068_v60 = vld [vmem:[#allocation2 + $0xf0] sm:$0xff] }
 0x6b0   :  { %v2021_v33 = vpop.xlane.xlu1 %2020 }
 0x6b1   :  { %v2025_v30 = vmul.f32 %v2021_v33, %v4809_v10 }
 0x6b3   :  { %v2027_v9 = vadd.f32 1e-12, %v2025_v30 }
 0x6b5   :  { %4680 = vrsqrt.f32 %v2027_v9  ;;  %vm2035_vm4 = vweird.f32 %v2027_v9 }
 0x6bb   :  { %v4681_v14 = vpop.eup %4680 }
 0x6bc   :  { %v2030_v26 = vmul.f32 %v4681_v14, %v2027_v9  ;;  %vm2036_vm3 = vweird.f32 %v4681_v14  ;;  %v2065_v9 = vld [vmem:[#allocation2 + $0xd8] sm:$0xff] }
 0x6bd   :  { %vm2037_vm5 = vmor %vm2035_vm4, %vm2036_vm3 }
 0x6be   :  { %v2031_v46 = vmul.f32 %v4681_v14, %v2030_v26  ;;  %v2064_v26 = vld [vmem:[#allocation2 + $0xd0] sm:$0xff] }
 0x6c0   :  { %v2032_v62 = vmul.f32 0.5, %v2031_v46 }
 0x6c2   :  { %v2033_v31 = vsub.f32 1.5, %v2032_v62  ;;  %v2063_v62 = vld [vmem:[#allocation2 + $0xc8] sm:$0xff] }
 0x6c4   :  { %v2034_v17 = vmul.f32 %v4681_v14, %v2033_v31  ;;  %v2062_v31 = vld [vmem:[#allocation2 + $0xc0] sm:$0xff] }
 0x6c6   :  { %v2038_v34 = vsel %vm2037_vm5, %v4681_v14, %v2034_v17 }
 0x6c7   :  { %v2049_v36 = vmul.f32 %v2038_v34, %v2015_v44 }
 0x6c9   :  { %v2052_v51 = vmul.f32 %v4626_v18, %v2049_v36 }
 0x6cb   :  { %v5602_v53 = vadd.f32 %v4627_v38, %v2052_v51 }
 0x6cd   :  { %4524 = vmatmul.msk.f32.vlgmr.msrb.gmra.mxu0 %vm34_vm0, %v5602_v53 }
 0x701   :  { %v2024_v48 = vpop.xlane.xlu2 %2023 }
 0x702   :  { %v2026_v2 = vmul.f32 %v2024_v48, %v4809_v10 }
 0x704   :  { %v2028_v1 = vadd.f32 1e-12, %v2026_v2 }
 0x706   :  { %4682 = vrsqrt.f32 %v2028_v1  ;;  %vm2045_vm7 = vweird.f32 %v2028_v1 }
 0x70c   :  { %v4683_v42 = vpop.eup %4682 }
 0x70d   :  { %v2040_v63 = vmul.f32 %v4683_v42, %v2028_v1  ;;  %vm2046_vm6 = vweird.f32 %v4683_v42 }
 0x70e   :  { %vm2047_vm10 = vmor %vm2045_vm7, %vm2046_vm6 }
 0x70f   :  { %v2041_v5 = vmul.f32 %v4683_v42, %v2040_v63 }
 0x711   :  { %v2042_v7 = vmul.f32 0.5, %v2041_v5 }
 0x713   :  { %v2043_v11 = vsub.f32 1.5, %v2042_v7 }
 0x715   :  { %v2044_v4 = vmul.f32 %v4683_v42, %v2043_v11 }
 0x717   :  { %v2048_v29 = vsel %vm2047_vm10, %v4683_v42, %v2044_v4 }
 0x718   :  { %v2050_v41 = vmul.f32 %v2048_v29, %v2016_v58  ;;  %v2069_v58 = vld [vmem:[#allocation2 + $0xf8] sm:$0xff] }
 0x719   :  { %2205 = vmatpush.msrb.mxu1 %v2069_v58 }
 0x71a   :  { %v2053_v19 = vmul.f32 %v4626_v18, %v2050_v41 }
 0x71b   :  { %2206 = vmatpush.msrb.mxu1 %v2068_v60 }
 0x71c   :  { %v5607_v15 = vadd.f32 %v4627_v38, %v2053_v19 }
 0x71d   :  { %2207 = vmatpush.msrb.mxu1 %v2067_v35 }
 0x71e   :  { %4525 = vmatmul.msk.f32.gmra.mxu0 %vm34_vm0, %v5607_v15 }
 0x71f   :  { %2208 = vmatpush.msrb.mxu1 %v2066_v56 }
 0x721   :  { %2209 = vmatpush.msrb.mxu1 %v2065_v9 }
 0x723   :  { %2210 = vmatpush.msrb.mxu1 %v2064_v26 }
 0x725   :  { %2211 = vmatpush.msrb.mxu1 %v2063_v62 }
 0x727   :  { %2212 = vmatpush.msrb.mxu1 %v2062_v31 }
 0x74a   :  { %v2095_v8 = vpop.f32.mrf.mxu0 }
 0x74b   :  { %v2096_v16 = vadd.f32 %v5611_v50, %v2095_v8 }
 0x74d   :  { %v2103_v40 = vmul.f32 0.70710677, %v2096_v16  ;;  %v2101_v41 = vmul.f32 0.5, %v2096_v16 }
 0x74f   :  { %v2105_v57 = vmul.f32 %v2103_v40, %v2103_v40 }
 0x751   :  { %v2106_v21 = vmin.f32 %v2105_v57, 16.0 }
 0x753   :  { %v2107_v28 = vmul.f32 2.1237322e-06, %v2106_v21  ;;  %v2118_v43 = vmul.f32 3.8918573e-05, %v2106_v21 }
 0x755   :  { %v2108_v45 = vadd.f32 0.00028619796, %v2107_v28  ;;  %v2119_v22 = vadd.f32 0.001143296, %v2118_v43 }
 0x757   :  { %v2109_v23 = vmul.f32 %v2108_v45, %v2106_v21  ;;  %v2120_v44 = vmul.f32 %v2119_v22, %v2106_v21 }
 0x759   :  { %v2121_v24 = vadd.f32 0.014752088, %v2120_v44  ;;  %v2110_v25 = vadd.f32 0.0036580483, %v2109_v23 }
 0x75b   :  { %v2122_v27 = vmul.f32 %v2121_v24, %v2106_v21  ;;  %v2111_v55 = vmul.f32 %v2110_v25, %v2106_v21 }
 0x75d   :  { %v2123_v47 = vadd.f32 0.112945676, %v2122_v27  ;;  %v2112_v33 = vadd.f32 0.05243302, %v2111_v55 }
 0x75f   :  { %v2124_v52 = vmul.f32 %v2123_v47, %v2106_v21  ;;  %v2113_v46 = vmul.f32 %v2112_v33, %v2106_v21 }
 0x761   :  { %v2125_v12 = vadd.f32 0.4994258, %v2124_v52  ;;  %v2114_v17 = vadd.f32 0.18741608, %v2113_v46 }
 0x763   :  { %v2126_v30 = vmul.f32 %v2125_v12, %v2106_v21  ;;  %v2115_v34 = vmul.f32 %v2114_v17, %v2106_v21 }
 0x765   :  { %v2127_v14 = vadd.f32 1.0, %v2126_v30  ;;  %v2116_v48 = vadd.f32 1.1283791, %v2115_v34 }
 0x767   :  { %4684 = vrcp.f32 %v2127_v14  ;;  %v2139_v51 = vand.u32 2147483648, %v2127_v14  ;;  %v2137_v1 = vand.u32 2147483647, %v2127_v14  ;;  %vm2133_vm12 = vweird.f32 %v2127_v14 }
 0x768   :  { %v2117_v5 = vmul.f32 %v2116_v48, %v2103_v40 }
 0x769   :  { %v2140_v63 = vor.u32 1.1754944e-38, %v2139_v51  ;;  %vm2138_vm14 = vcmp.eq.f32.partialorder %v2137_v1, 8.507059e+37 }
 0x76d   :  { %v4685_v18 = vpop.eup %4684 }
 0x76e   :  { %v2129_v36 = vmul.f32 %v4685_v18, %v2127_v14  ;;  %vm2134_vm11 = vweird.f32 %v4685_v18 }
 0x76f   :  { %vm2135_vm13 = vmor %vm2133_vm12, %vm2134_vm11 }
 0x770   :  { %v2130_v38 = vsub.f32 1.0, %v2129_v36 }
 0x772   :  { %v2131_v2 = vmul.f32 %v4685_v18, %v2130_v38 }
 0x774   :  { %v2132_v42 = vadd.f32 %v4685_v18, %v2131_v2 }
 0x776   :  { %v2136_v7 = vsel %vm2135_vm13, %v4685_v18, %v2132_v42 }
 0x777   :  { %v2141_v11 = vsel %vm2138_vm14, %v2140_v63, %v2136_v7 }
 0x778   :  { %v2142_v4 = vmul.f32 %v2141_v11, %v2117_v5  ;;  %v4629_v5 = vld [vmem:[#allocation2 + $0x144] ss:$0 sm:$0xff] }
 0x77a   :  { %v4526_v29 = vclamps-f32 %v2142_v4, 1.0 }
 0x77c   :  { %v2185_v19 = vadd.f32 1.0, %v4526_v29 }
 0x77e   :  { %v2187_v8 = vmul.f32 %v2185_v19, %v2101_v41 }
 0x780   :  { %4528 = vmatmul.msk.f32.vlgmr.msrb.gmra.mxu1 %vm6411_vm15, %v2187_v8 }
 0x79b   :  { %v2098_v57 = vpop.f32.mrf.mxu0 }
 0x79c   :  { %v2099_v21 = vadd.f32 %v5611_v50, %v2098_v57 }
 0x79e   :  { %v2104_v28 = vmul.f32 0.70710677, %v2099_v21  ;;  %v2102_v1 = vmul.f32 0.5, %v2099_v21 }
 0x7a0   :  { %v2145_v43 = vmul.f32 %v2104_v28, %v2104_v28 }
 0x7a2   :  { %v2146_v45 = vmin.f32 %v2145_v43, 16.0 }
 0x7a4   :  { %v2147_v22 = vmul.f32 2.1237322e-06, %v2146_v45  ;;  %v2158_v23 = vmul.f32 3.8918573e-05, %v2146_v45 }
 0x7a6   :  { %v2148_v40 = vadd.f32 0.00028619796, %v2147_v22  ;;  %v2159_v44 = vadd.f32 0.001143296, %v2158_v23 }
 0x7a8   :  { %v2149_v24 = vmul.f32 %v2148_v40, %v2146_v45  ;;  %v2160_v25 = vmul.f32 %v2159_v44, %v2146_v45 }
 0x7aa   :  { %v2161_v27 = vadd.f32 0.014752088, %v2160_v25  ;;  %v2150_v47 = vadd.f32 0.0036580483, %v2149_v24  ;;  %v2276_v25 = vld [vmem:[#allocation2 + $0x30] sm:$0xff] }
 0x7ac   :  { %v2162_v16 = vmul.f32 %v2161_v27, %v2146_v45  ;;  %v2151_v55 = vmul.f32 %v2150_v47, %v2146_v45  ;;  %v2275_v27 = vld [vmem:[#allocation2 + $0x28] sm:$0xff]  ;;  %v2274_v47 = vld [vmem:[#allocation2 + $0x20] sm:$0xff] }
 0x7ae   :  { %v2163_v58 = vadd.f32 0.112945676, %v2162_v16  ;;  %v2152_v35 = vadd.f32 0.05243302, %v2151_v55 }
 0x7b0   :  { %v2164_v60 = vmul.f32 %v2163_v58, %v2146_v45  ;;  %v2153_v50 = vmul.f32 %v2152_v35, %v2146_v45 }
 0x7b2   :  { %v2165_v52 = vadd.f32 0.4994258, %v2164_v60  ;;  %v2154_v33 = vadd.f32 0.18741608, %v2153_v50 }
 0x7b4   :  { %v2166_v12 = vmul.f32 %v2165_v52, %v2146_v45  ;;  %v2155_v9 = vmul.f32 %v2154_v33, %v2146_v45  ;;  %v4630_v33 = vld [vmem:[#allocation2 + $0x14a] ss:$0 sm:$0xff] }
 0x7b6   :  { %v2167_v56 = vadd.f32 1.0, %v2166_v12  ;;  %v2156_v62 = vadd.f32 1.1283791, %v2155_v9 }
 0x7b8   :  { %4686 = vrcp.f32 %v2167_v56  ;;  %v2179_v46 = vand.u32 2147483648, %v2167_v56  ;;  %v2177_v17 = vand.u32 2147483647, %v2167_v56  ;;  %vm2173_vm4 = vweird.f32 %v2167_v56 }
 0x7b9   :  { %v2157_v36 = vmul.f32 %v2156_v62, %v2104_v28 }
 0x7ba   :  { %v2180_v34 = vor.u32 1.1754944e-38, %v2179_v46  ;;  %vm2178_vm6 = vcmp.eq.f32.partialorder %v2177_v17, 8.507059e+37 }
 0x7be   :  { %v4687_v30 = vpop.eup %4686 }
 0x7bf   :  { %v2169_v14 = vmul.f32 %v4687_v30, %v2167_v56  ;;  %vm2174_vm3 = vweird.f32 %v4687_v30 }
 0x7c0   :  { %vm2175_vm5 = vmor %vm2173_vm4, %vm2174_vm3 }
 0x7c1   :  { %v2170_v26 = vsub.f32 1.0, %v2169_v14  ;;  %v4631_v14 = vld [vmem:[#allocation2 + $0x14b] ss:$0 sm:$0xff] }
 0x7c3   :  { %v2171_v31 = vmul.f32 %v4687_v30, %v2170_v26 }
 0x7c5   :  { %v2172_v18 = vadd.f32 %v4687_v30, %v2171_v31 }
 0x7c7   :  { %v2176_v38 = vsel %vm2175_vm5, %v4687_v30, %v2172_v18 }
 0x7c8   :  { %v2181_v51 = vsel %vm2178_vm6, %v2180_v34, %v2176_v38 }
 0x7c9   :  { %v2182_v48 = vmul.f32 %v2181_v51, %v2157_v36 }
 0x7cb   :  { %v4527_v2 = vclamps-f32 %v2182_v48, 1.0 }
 0x7cd   :  { %v2186_v42 = vadd.f32 1.0, %v4527_v2 }
 0x7cf   :  { %v2188_v63 = vmul.f32 %v2186_v42, %v2102_v1 }
 0x7d1   :  { %4529 = vmatmul.msk.f32.gmra.mxu1 %vm6411_vm15, %v2188_v63 }
 0x7fd   :  { %v2214_v7 = vpop.f32.mrf.mxu1 }
 0x7fe   :  { %v2215_v11 = vadd.f32 %v4629_v5, %v2214_v7 }
 0x800   :  { %v2220_v4 = vadd.f32 %v2215_v11, %v5602_v53 }
 0x802   :  { %v2224_v29 = vsel %vm34_vm0, %v2220_v4, 0.0 }
 0x803   :  { %2225 = vadd.xlane.f32.xlu0 %v2224_v29 }
 0x84e   :  { %v2217_v41 = vpop.f32.mrf.mxu1 }
 0x84f   :  { %v2218_v19 = vadd.f32 %v4629_v5, %v2217_v41  ;;  %v4632_v5 = vld [vmem:[#allocation2 + $0x141] ss:$0 sm:$0xff] }
 0x851   :  { %v2221_v8 = vadd.f32 %v2218_v19, %v5607_v15  ;;  %v2277_v15 = vld [vmem:[#allocation2 + $0x38] sm:$0xff] }
 0x852   :  { %2298 = vmatpush.msra.mxu2 %v2277_v15 }
 0x853   :  { %v2227_v57 = vsel %vm34_vm0, %v2221_v8, 0.0 }
 0x854   :  { %2228 = vadd.xlane.f32.xlu2 %v2227_v57  ;;  %2299 = vmatpush.msra.mxu2 %v2276_v25 }
 0x856   :  { %2300 = vmatpush.msra.mxu2 %v2275_v27 }
 0x858   :  { %2301 = vmatpush.msra.mxu2 %v2274_v47 }
 0x876   :  { %v2226_v21 = vpop.xlane.xlu0 %2225 }
 0x877   :  { %v2230_v28 = vmul.f32 %v2226_v21, %v4809_v10 }
 0x879   :  { %v2232_v43 = vsub.f32 %v2220_v4, %v2230_v28 }
 0x87b   :  { %v2234_v45 = vmul.f32 %v2232_v43, %v2232_v43 }
 0x87d   :  { %v2236_v22 = vsel %vm34_vm0, %v2234_v45, 0.0 }
 0x87e   :  { %2237 = vadd.xlane.f32.xlu1 %v2236_v22 }
 0x8c7   :  { %v2229_v23 = vpop.xlane.xlu2 %2228 }
 0x8c8   :  { %v2231_v53 = vmul.f32 %v2229_v23, %v4809_v10 }
 0x8ca   :  { %v2233_v40 = vsub.f32 %v2221_v8, %v2231_v53 }
 0x8cc   :  { %v2235_v44 = vmul.f32 %v2233_v40, %v2233_v40 }
 0x8ce   :  { %v2239_v24 = vsel %vm34_vm0, %v2235_v44, 0.0 }
 0x8cf   :  { %2240 = vadd.xlane.f32.xlu0 %v2239_v24 }
 0x8f1   :  { %v2238_v16 = vpop.xlane.xlu1 %2237 }
 0x8f2   :  { %v2242_v58 = vmul.f32 %v2238_v16, %v4809_v10 }
 0x8f4   :  { %v2244_v55 = vadd.f32 1e-12, %v2242_v58 }
 0x8f6   :  { %4688 = vrsqrt.f32 %v2244_v55  ;;  %vm2252_vm10 = vweird.f32 %v2244_v55 }
 0x8fc   :  { %v4689_v60 = vpop.eup %4688 }
 0x8fd   :  { %v2247_v52 = vmul.f32 %v4689_v60, %v2244_v55  ;;  %vm2253_vm7 = vweird.f32 %v4689_v60 }
 0x8fe   :  { %vm2254_vm11 = vmor %vm2252_vm10, %vm2253_vm7 }
 0x8ff   :  { %v2248_v35 = vmul.f32 %v4689_v60, %v2247_v52 }
 0x901   :  { %v2249_v12 = vmul.f32 0.5, %v2248_v35 }
 0x903   :  { %v2250_v56 = vsub.f32 1.5, %v2249_v12 }
 0x905   :  { %v2251_v50 = vmul.f32 %v4689_v60, %v2250_v56 }
 0x907   :  { %v2255_v30 = vsel %vm2254_vm11, %v4689_v60, %v2251_v50 }
 0x908   :  { %v2266_v9 = vmul.f32 %v2255_v30, %v2232_v43 }
 0x90a   :  { %v2269_v26 = vmul.f32 %v4630_v33, %v2266_v9 }
 0x90c   :  { %v5626_v46 = vadd.f32 %v4631_v14, %v2269_v26 }
 0x90e   :  { %4530 = vmatmul.msk.f32.vlgmr.msra.gmra.mxu2 %vm34_vm0, %v5626_v46 }
 0x942   :  { %v2241_v62 = vpop.xlane.xlu0 %2240 }
 0x943   :  { %v2243_v31 = vmul.f32 %v2241_v62, %v4809_v10 }
 0x945   :  { %v2245_v17 = vadd.f32 1e-12, %v2243_v31 }
 0x947   :  { %4690 = vrsqrt.f32 %v2245_v17  ;;  %vm2262_vm13 = vweird.f32 %v2245_v17 }
 0x94d   :  { %v4691_v18 = vpop.eup %4690 }
 0x94e   :  { %v2257_v34 = vmul.f32 %v4691_v18, %v2245_v17  ;;  %vm2263_vm12 = vweird.f32 %v4691_v18 }
 0x94f   :  { %vm2264_vm14 = vmor %vm2262_vm13, %vm2263_vm12 }
 0x950   :  { %v2258_v36 = vmul.f32 %v4691_v18, %v2257_v34 }
 0x952   :  { %v2259_v38 = vmul.f32 0.5, %v2258_v36 }
 0x954   :  { %v2260_v51 = vsub.f32 1.5, %v2259_v38 }
 0x956   :  { %v2261_v48 = vmul.f32 %v4691_v18, %v2260_v51 }
 0x958   :  { %v2265_v2 = vsel %vm2264_vm14, %v4691_v18, %v2261_v48 }
 0x959   :  { %v2267_v1 = vmul.f32 %v2265_v2, %v2233_v40 }
 0x95b   :  { %v2270_v42 = vmul.f32 %v4630_v33, %v2267_v1 }
 0x95d   :  { %v5631_v63 = vadd.f32 %v4631_v14, %v2270_v42 }
 0x95f   :  { %4531 = vmatmul.msk.f32.gmra.mxu2 %vm34_vm0, %v5631_v63 }
 0x991   :  { %v2303_v7 = vpop.f32.mrf.mxu2 }
 0x992   :  { %v2304_v11 = vadd.f32 %v4632_v5, %v2303_v7 }
 0x994   :  { %2323 = vrot.lane.b32.xlu0 %v2304_v11, %s4769_s24  ;;  %2317 = vrot.lane.b32.xlu1 %v2304_v11, %s4767_s2  ;;  %v2331_v9 = vrot.slane %v2304_v11, 4 }
 0x995   :  { %2311 = vrot.lane.b32.xlu2 %v2304_v11, %s4766_s0 }
 0x9e2   :  { %v2306_v4 = vpop.f32.mrf.mxu2 }
 0x9e3   :  { %v5638_v29 = vadd.f32 %v4632_v5, %v2306_v4 }
 0x9e5   :  { %2325 = vrot.lane.b32.xlu1 %v5638_v29, %s4769_s24  ;;  %2319 = vrot.lane.b32.xlu0 %v5638_v29, %s4767_s2  ;;  %v2387_v28 = vrot.slane %v5638_v29, 4 }
 0x9e6   :  { %2313 = vrot.lane.b32.xlu2 %v5638_v29, %s4766_s0 }
 0x9ee   :  { %2549 = vrot.lane.b32.xlu2 %v2304_v11, %s4768_s23 }
 0x9ef   :  { %v5647_v41 = vpop.permute.xlu2 %2311 }
 0x9f0   :  { %2553 = vrot.lane.b32.xlu0 %v5647_v41, %s4768_s23  ;;  %v4599_v30 = vpack.i.bf16 %v5647_v41, %v2304_v11  ;;  %v2343_v34 = vrot.slane %v5647_v41, 4 }
 0x9f8   :  { %2551 = vrot.lane.b32.xlu0 %v5638_v29, %s4768_s23 }
 0xa06   :  { %v5653_v19 = vpop.permute.xlu1 %2317  ;;  %v5655_v8 = vpop.permute.xlu0 %2323 }
 0xa07   :  { %2557 = vrot.lane.b32.xlu1 %v5653_v19, %s4768_s23  ;;  %2561 = vrot.lane.b32.xlu2 %v5655_v8, %s4768_s23  ;;  %v2329_v56 = vrot.slane %v5653_v19, 4  ;;  %v2332_v36 = vsel %vm153_vm8, %v5653_v19, %v2331_v9  ;;  %v2341_v1 = vrot.slane %v5655_v8, 4  ;;  %v2344_v42 = vsel %vm153_vm8, %v5655_v8, %v2343_v34 }
 0xa08   :  { %v2340_v4 = vperm.slane %v2332_v36, %v4861_v3 }
 0xa09   :  { %v2330_v38 = vsel %vm153_vm8, %v2329_v56, %v2304_v11  ;;  %v2342_v56 = vsel %vm153_vm8, %v2341_v1, %v5647_v41 }
 0xa40   :  { %v5661_v57 = vpop.permute.xlu2 %2313 }
 0xa41   :  { %2555 = vrot.lane.b32.xlu1 %v5661_v57, %s4768_s23  ;;  %v2399_v21 = vrot.slane %v5661_v57, 4 }
 0xa57   :  { %v5667_v43 = vpop.permute.xlu1 %2325  ;;  %v5669_v45 = vpop.permute.xlu0 %2319 }
 0xa58   :  { %v2397_v22 = vrot.slane %v5667_v43, 4  ;;  %v2400_v23 = vsel %vm153_vm8, %v5667_v43, %v2399_v21  ;;  %v2385_v53 = vrot.slane %v5669_v45, 4  ;;  %v2388_v40 = vsel %vm153_vm8, %v5669_v45, %v2387_v28  ;;  %2563 = vrot.lane.b32.xlu0 %v5667_v43, %s4768_s23  ;;  %2559 = vrot.lane.b32.xlu2 %v5669_v45, %s4768_s23 }
 0xa59   :  { %v2408_v44 = vperm.slane %v2400_v23, %v4861_v3  ;;  %v2396_v24 = vperm.slane %v2388_v40, %v4861_v3  ;;  %v4614_v15 = vpack.i.bf16 %v5667_v43, %v5669_v45 }
 0xa5a   :  { %v2398_v25 = vsel %vm153_vm8, %v2397_v22, %v5661_v57  ;;  %v2386_v27 = vsel %vm153_vm8, %v2385_v53, %v5638_v29  ;;  %v2336_v22 = vperm.slane %v2330_v38, %v4861_v3 }
 0xa5b   :  { %v2404_v47 = vperm.slane %v2398_v25, %v4861_v3  ;;  %v2421_v16 = vrot.slane %v2408_v44, 4  ;;  %v2392_v58 = vperm.slane %v2386_v27, %v4861_v3  ;;  %v2423_v55 = vrot.slane %v2396_v24, 4 }
 0xa5d   :  { %v2409_v60 = vrot.slane %v2404_v47, 4  ;;  %v2411_v52 = vrot.slane %v2392_v58, 4  ;;  %v2422_v35 = vsel %vm153_vm8, %v2421_v16, %v2396_v24  ;;  %v2424_v12 = vsel %vm153_vm8, %v2408_v44, %v2423_v55 }
 0xa5e   :  { %v2428_v50 = vperm.slane %v2422_v35, %v4872_v13  ;;  %v2432_v33 = vperm.slane %v2424_v12, %v4872_v13  ;;  %v2352_v16 = vperm.slane %v2344_v42, %v4861_v3  ;;  %v2355_v35 = vrot.slane %v2336_v22, 4 }
 0xa5f   :  { %v2410_v14 = vsel %vm153_vm8, %v2409_v60, %v2392_v58  ;;  %v2412_v26 = vsel %vm153_vm8, %v2404_v47, %v2411_v52  ;;  %v2550_v58 = vpop.permute.xlu2 %2549  ;;  %v2367_v12 = vrot.slane %v2340_v4, 4 }
 0xa60   :  { %v2416_v62 = vperm.slane %v2410_v14, %v4872_v13  ;;  %v2420_v31 = vperm.slane %v2412_v26, %v4872_v13  ;;  %v2437_v17 = vrot.slane %v2428_v50, 4  ;;  %v2439_v18 = vrot.slane %v2432_v33, 4  ;;  %4600 = vrot.lane.b32.xlu0 %v4599_v30, %s4772_s1 }
 0xa61   :  { %v2368_v41 = vsel %vm153_vm8, %v2352_v16, %v2367_v12 }
 0xa62   :  { %v2433_v51 = vrot.slane %v2416_v62, 4  ;;  %v2435_v48 = vrot.slane %v2420_v31, 4  ;;  %v2440_v2 = vsel %vm153_vm8, 0.0, %v2439_v18  ;;  %v2506_v5 = vsel %vm153_vm8, %v2439_v18, %v2428_v50 }
 0xa63   :  { %v2511_v7 = vrot.slane %v2440_v2, 4  ;;  %v2438_v28 = vsel %vm153_vm8, 0.0, %v2437_v17  ;;  %v2510_v11 = vperm.slane %v2506_v5, %v4861_v3  ;;  %v2348_v31 = vperm.slane %v2342_v56, %v4861_v3  ;;  %v2554_v2 = vpop.permute.xlu0 %2553 }
 0xa64   :  { %v2436_v21 = vsel %vm153_vm8, 0.0, %v2435_v48  ;;  %v2495_v53 = vsel %vm153_vm8, %v2435_v48, %v2416_v62  ;;  %v2434_v44 = vsel %vm153_vm8, 0.0, %v2433_v51  ;;  %v2365_v48 = vrot.slane %v2352_v16, 4 }
 0xa65   :  { %v2512_v23 = vsel %vm153_vm8, %v2511_v7, %v2438_v28  ;;  %v2500_v40 = vrot.slane %v2436_v21, 4  ;;  %v2499_v24 = vperm.slane %v2495_v53, %v4861_v3  ;;  %v2531_v47 = vrot.slane %v2510_v11, 4 }
 0xa66   :  { %v2516_v25 = vperm.slane %v2512_v23, %v4861_v3  ;;  %v2356_v51 = vsel %vm153_vm8, %v2348_v31, %v2355_v35  ;;  %v2353_v21 = vrot.slane %v2348_v31, 4  ;;  %v2376_v28 = vperm.slane %v2368_v41, %v4872_v13 }
 0xa67   :  { %v2501_v27 = vsel %vm153_vm8, %v2500_v40, %v2434_v44  ;;  %v2519_v60 = vrot.slane %v2499_v24, 4  ;;  %v2364_v23 = vperm.slane %v2356_v51, %v4872_v13  ;;  %v2587_v53 = vrot.slane %v2554_v2, 4 }
 0xa68   :  { %v2505_v55 = vperm.slane %v2501_v27, %v4861_v3  ;;  %v2529_v52 = vrot.slane %v2516_v25, 4  ;;  %v2532_v50 = vsel %vm153_vm8, %v2516_v25, %v2531_v47  ;;  %v2366_v44 = vsel %vm153_vm8, %v2365_v48, %v2340_v4 }
 0xa69   :  { %v2540_v30 = vperm.slane %v2532_v50, %v4872_v13  ;;  %v2354_v25 = vsel %vm153_vm8, %v2353_v21, %v2336_v22  ;;  %v2383_v27 = vrot.slane %v2376_v28, 4  ;;  %v2372_v47 = vperm.slane %v2366_v44, %v4872_v13 }
 0xa6a   :  { %v2520_v33 = vsel %vm153_vm8, %v2505_v55, %v2519_v60  ;;  %v2517_v9 = vrot.slane %v2505_v55, 4  ;;  %v2530_v14 = vsel %vm153_vm8, %v2529_v52, %v2510_v11  ;;  %v2562_v11 = vpop.permute.xlu2 %2561  ;;  %v2379_v16 = vrot.slane %v2364_v23, 4 }
 0xa6b   :  { %v2528_v26 = vperm.slane %v2520_v33, %v4872_v13  ;;  %v2536_v62 = vperm.slane %v2530_v14, %v4872_v13  ;;  %v2545_v17 = vrot.slane %v2540_v30, 4  ;;  %v2588_v55 = vsel %vm153_vm8, %v2562_v11, %v2587_v53 }
 0xa6c   :  { %v2518_v18 = vsel %vm153_vm8, %v2517_v9, %v2499_v24  ;;  %v2585_v24 = vrot.slane %v2562_v11, 4  ;;  %v2360_v60 = vperm.slane %v2354_v25, %v4872_v13  ;;  %v2384_v35 = vsel %vm153_vm8, 0.0, %v2383_v27 }
 0xa6d   :  { %v2524_v34 = vperm.slane %v2518_v18, %v4872_v13  ;;  %v2541_v36 = vrot.slane %v2536_v62, 4  ;;  %v2547_v38 = vrot.slane %v2528_v26, 4  ;;  %v5738_v1 = vsel %vm153_vm8, %v2545_v17, %v2528_v26 }
 0xa6e   :  { %v2586_v52 = vsel %vm153_vm8, %v2585_v24, %v2554_v2  ;;  %v2596_v12 = vperm.slane %v2588_v55, %v4861_v3  ;;  %v2380_v56 = vsel %vm153_vm8, 0.0, %v2379_v16  ;;  %v2381_v4 = vrot.slane %v2372_v47, 4 }
 0xa6f   :  { %v5741_v42 = vsel %vm153_vm8, %v2541_v36, %v2524_v34  ;;  %v5744_v5 = vsel %vm153_vm8, %v2540_v30, %v2547_v38  ;;  %v2543_v7 = vrot.slane %v2524_v34, 4  ;;  %v2575_v50 = vrot.slane %v2550_v58, 4 }
 0xa70   :  { %v2452_v22 = vsel %vm153_vm8, %v2383_v27, %v2372_v47  ;;  %v2592_v33 = vperm.slane %v2586_v52, %v4861_v3  ;;  %v2377_v9 = vrot.slane %v2360_v60, 4  ;;  %v2457_v14 = vrot.slane %v2384_v35, 4 }
 0xa71   :  { %v5749_v40 = vsel %vm153_vm8, %v2536_v62, %v2543_v7  ;;  %v2446_v31 = vrot.slane %v2380_v56, 4  ;;  %v2609_v17 = vrot.slane %v2596_v12, 4  ;;  %v2441_v41 = vsel %vm153_vm8, %v2379_v16, %v2360_v60 }
 0xa72   :  { %v2382_v34 = vsel %vm153_vm8, 0.0, %v2381_v4  ;;  %v2456_v36 = vperm.slane %v2452_v22, %v4861_v3  ;;  %v2597_v51 = vrot.slane %v2592_v33, 4  ;;  %v2378_v28 = vsel %vm153_vm8, 0.0, %v2377_v9 }
 0xa73   :  { %v2445_v11 = vperm.slane %v2441_v41, %v4861_v3  ;;  %v2458_v23 = vsel %vm153_vm8, %v2457_v14, %v2382_v34 }
 0xa74   :  { %v2462_v16 = vperm.slane %v2458_v23, %v4861_v3  ;;  %v2477_v55 = vrot.slane %v2456_v36, 4 }
 0xa75   :  { %v2465_v4 = vrot.slane %v2445_v11, 4 }
 0xa79   :  { %v2558_v30 = vpop.permute.xlu1 %2557 }
 0xa7a   :  { %v2573_v26 = vrot.slane %v2558_v30, 4  ;;  %v2576_v62 = vsel %vm153_vm8, %v2558_v30, %v2575_v50 }
 0xa7b   :  { %v2584_v18 = vperm.slane %v2576_v62, %v4861_v3 }
 0xa7c   :  { %v2574_v38 = vsel %vm153_vm8, %v2573_v26, %v2550_v58  ;;  %v2447_v58 = vsel %vm153_vm8, %v2446_v31, %v2378_v28  ;;  %v2475_v26 = vrot.slane %v2462_v16, 4 }
 0xa7d   :  { %v2580_v48 = vperm.slane %v2574_v38, %v4861_v3  ;;  %v2610_v2 = vsel %vm153_vm8, %v2609_v17, %v2584_v18  ;;  %v2611_v7 = vrot.slane %v2584_v18, 4  ;;  %v2451_v56 = vperm.slane %v2447_v58, %v4861_v3 }
 0xa7e   :  { %v2616_v21 = vperm.slane %v2610_v2, %v4872_v13  ;;  %v2476_v28 = vsel %vm153_vm8, %v2475_v26, %v2456_v36 }
 0xa7f   :  { %v2598_v53 = vsel %vm153_vm8, %v2597_v51, %v2580_v48  ;;  %v2599_v44 = vrot.slane %v2580_v48, 4  ;;  %v2612_v24 = vsel %vm153_vm8, %v2596_v12, %v2611_v7  ;;  %v2463_v18 = vrot.slane %v2451_v56, 4 }
 0xa80   :  { %v2604_v25 = vperm.slane %v2598_v53, %v4872_v13  ;;  %v2620_v27 = vperm.slane %v2612_v24, %v4872_v13  ;;  %v2625_v52 = vrot.slane %v2616_v21, 4  ;;  %v2482_v36 = vperm.slane %v2476_v28, %v4872_v13 }
 0xa81   :  { %v2600_v47 = vsel %vm153_vm8, %v2592_v33, %v2599_v44  ;;  %v2478_v33 = vsel %vm153_vm8, %v2462_v16, %v2477_v55 }
 0xa82   :  { %v2608_v60 = vperm.slane %v2600_v47, %v4872_v13  ;;  %v2627_v35 = vrot.slane %v2620_v27, 4  ;;  %v2621_v50 = vrot.slane %v2604_v25, 4  ;;  %v2626_v31 = vsel %vm153_vm8, 0.0, %v2625_v52 }
 0xa83   :  { %v2486_v24 = vperm.slane %v2478_v33, %v4872_v13  ;;  %v2464_v27 = vsel %vm153_vm8, %v2463_v18, %v2445_v11 }
 0xa84   :  { %v2623_v12 = vrot.slane %v2608_v60, 4  ;;  %v2628_v22 = vsel %vm153_vm8, 0.0, %v2627_v35  ;;  %v2696_v30 = vsel %vm153_vm8, %v2627_v35, %v2616_v21  ;;  %v2622_v48 = vsel %vm153_vm8, 0.0, %v2621_v50 }
 0xa85   :  { %v2700_v9 = vperm.slane %v2696_v30, %v4861_v3  ;;  %v2701_v14 = vrot.slane %v2628_v22, 4  ;;  %v2491_v22 = vrot.slane %v2486_v24, 4 }
 0xa86   :  { %v2624_v62 = vsel %vm153_vm8, 0.0, %v2623_v12  ;;  %v2685_v17 = vsel %vm153_vm8, %v2623_v12, %v2604_v25  ;;  %v2466_v25 = vsel %vm153_vm8, %v2451_v56, %v2465_v4  ;;  %v2470_v56 = vperm.slane %v2464_v27, %v4872_v13 }
 0xa87   :  { %v2690_v41 = vrot.slane %v2624_v62, 4  ;;  %v2702_v34 = vsel %vm153_vm8, %v2701_v14, %v2626_v31  ;;  %v2721_v38 = vrot.slane %v2700_v9, 4  ;;  %v2689_v51 = vperm.slane %v2685_v17, %v4861_v3 }
 0xa88   :  { %v2706_v2 = vperm.slane %v2702_v34, %v4861_v3  ;;  %v2474_v12 = vperm.slane %v2466_v25, %v4872_v13  ;;  %v2487_v14 = vrot.slane %v2482_v36, 4  ;;  %v2489_v17 = vrot.slane %v2470_v56, 4 }
 0xa89   :  { %v2691_v7 = vsel %vm153_vm8, %v2690_v41, %v2622_v48  ;;  %v2709_v21 = vrot.slane %v2689_v51, 4  ;;  %v2552_v48 = vpop.permute.xlu0 %2551 }
 0xa8a   :  { %v2719_v23 = vrot.slane %v2706_v2, 4  ;;  %v2695_v53 = vperm.slane %v2691_v7, %v4861_v3  ;;  %v2722_v44 = vsel %vm153_vm8, %v2706_v2, %v2721_v38  ;;  %v2492_v31 = vsel %vm153_vm8, %v2491_v22, %v2474_v12 }
 0xa8b   :  { %v2730_v58 = vperm.slane %v2722_v44, %v4872_v13  ;;  %v2488_v41 = vsel %vm153_vm8, %v2487_v14, %v2470_v56  ;;  %v2490_v34 = vsel %vm153_vm8, %v2482_v36, %v2489_v17  ;;  %v2493_v38 = vrot.slane %v2474_v12, 4 }
 0xa8c   :  { %v2710_v47 = vsel %vm153_vm8, %v2695_v53, %v2709_v21  ;;  %v2707_v16 = vrot.slane %v2695_v53, 4  ;;  %v2720_v55 = vsel %vm153_vm8, %v2719_v23, %v2700_v9  ;;  %v2631_v7 = vrot.slane %v2552_v48, 4 }
 0xa8d   :  { %v2718_v60 = vperm.slane %v2710_v47, %v4872_v13  ;;  %v2735_v52 = vrot.slane %v2730_v58, 4  ;;  %v2726_v35 = vperm.slane %v2720_v55, %v4872_v13 }
 0xa8e   :  { %v2708_v50 = vsel %vm153_vm8, %v2707_v16, %v2689_v51  ;;  %v2494_v51 = vsel %vm153_vm8, %v2486_v24, %v2493_v38 }
 0xa8f   :  { %v2736_v11 = vsel %vm153_vm8, %v2735_v52, %v2718_v60  ;;  %v2714_v4 = vperm.slane %v2708_v50, %v4872_v13  ;;  %v2731_v30 = vrot.slane %v2726_v35, 4  ;;  %v2737_v9 = vrot.slane %v2718_v60, 4 }
 0xa90   :  { %4536 = vmatpush.xpose.msk.msrb.mxu2 %vm861_vm9, %v2736_v11 }
 0xa91   :  { %v2732_v33 = vsel %vm153_vm8, %v2731_v30, %v2714_v4  ;;  %v2738_v26 = vsel %vm153_vm8, %v2730_v58, %v2737_v9  ;;  %v2733_v62 = vrot.slane %v2714_v4, 4 }
 0xa92   :  { %4532 = vmatpush.xpose.msk.msra.mxu3 %vm861_vm9, %v2732_v33 }
 0xa93   :  { %4537 = vmatmul.msk.f32.vlgmr.msrb.gmra.mxu2 %vm861_vm9, %v2492_v31  ;;  %v2734_v18 = vsel %vm153_vm8, %v2726_v35, %v2733_v62 }
 0xa94   :  { %4534 = vmatpush.xpose.msk.msra.mxu0 %vm861_vm9, %v2734_v18 }
 0xa95   :  { %4533 = vmatmul.msk.f32.vlgmr.msra.gmra.mxu3 %vm861_vm9, %v2488_v41 }
 0xa96   :  { %4538 = vmatpush.xpose.msk.msrb.mxu3 %vm861_vm9, %v2738_v26 }
 0xa97   :  { %4535 = vmatmul.msk.f32.vlgmr.msra.gmra.mxu0 %vm861_vm9, %v2490_v34 }
 0xa9d   :  { %4539 = vmatmul.msk.f32.vlgmr.msrb.gmra.mxu3 %vm861_vm9, %v2494_v51 }
 0xab2   :  { %v2560_v2 = vpop.permute.xlu2 %2559 }
 0xab3   :  { %v2629_v21 = vrot.slane %v2560_v2, 4  ;;  %v2632_v28 = vsel %vm153_vm8, %v2560_v2, %v2631_v7  ;;  %v2556_v23 = vpop.permute.xlu1 %2555 }
 0xab4   :  { %v2640_v44 = vperm.slane %v2632_v28, %v4861_v3  ;;  %v2643_v58 = vrot.slane %v2556_v23, 4 }
 0xab5   :  { %v2630_v53 = vsel %vm153_vm8, %v2629_v21, %v2552_v48 }
 0xab6   :  { %v2636_v25 = vperm.slane %v2630_v53, %v4861_v3  ;;  %v2667_v16 = vrot.slane %v2640_v44, 4 }
 0xab8   :  { %v2655_v60 = vrot.slane %v2636_v25, 4 }
 0xaca   :  { %v2564_v27 = vpop.permute.xlu0 %2563 }
 0xacb   :  { %v2641_v47 = vrot.slane %v2564_v27, 4  ;;  %v2644_v24 = vsel %vm153_vm8, %v2564_v27, %v2643_v58 }
 0xacc   :  { %v2652_v55 = vperm.slane %v2644_v24, %v4861_v3 }
 0xacd   :  { %v2642_v36 = vsel %vm153_vm8, %v2641_v47, %v2556_v23 }
 0xace   :  { %v2648_v52 = vperm.slane %v2642_v36, %v4861_v3  ;;  %v2665_v35 = vrot.slane %v2652_v55, 4  ;;  %v2668_v50 = vsel %vm153_vm8, %v2652_v55, %v2667_v16 }
 0xacf   :  { %v2676_v12 = vperm.slane %v2668_v50, %v4872_v13 }
 0xad0   :  { %v2653_v22 = vrot.slane %v2648_v52, 4  ;;  %v2656_v56 = vsel %vm153_vm8, %v2648_v52, %v2655_v60  ;;  %v2666_v11 = vsel %vm153_vm8, %v2665_v35, %v2640_v44 }
 0xad1   :  { %v2664_v4 = vperm.slane %v2656_v56, %v4872_v13  ;;  %v2672_v30 = vperm.slane %v2666_v11, %v4872_v13  ;;  %v2683_v9 = vrot.slane %v2676_v12, 4 }
 0xad2   :  { %v2654_v14 = vsel %vm153_vm8, %v2653_v22, %v2636_v25 }
 0xad3   :  { %v2660_v33 = vperm.slane %v2654_v14, %v4872_v13  ;;  %v2679_v26 = vrot.slane %v2664_v4, 4  ;;  %v2681_v62 = vrot.slane %v2672_v30, 4  ;;  %v2684_v31 = vsel %vm153_vm8, 0.0, %v2683_v9 }
 0xad4   :  { %v2750_v17 = vsel %vm153_vm8, %v2683_v9, %v2672_v30  ;;  %v2755_v18 = vrot.slane %v2684_v31, 4 }
 0xad5   :  { %v2677_v41 = vrot.slane %v2660_v33, 4  ;;  %v2680_v34 = vsel %vm153_vm8, 0.0, %v2679_v26  ;;  %v2682_v38 = vsel %vm153_vm8, 0.0, %v2681_v62  ;;  %v2739_v51 = vsel %vm153_vm8, %v2679_v26, %v2660_v33 }
 0xad6   :  { %v2744_v48 = vrot.slane %v2680_v34, 4  ;;  %v2754_v2 = vperm.slane %v2750_v17, %v4861_v3  ;;  %v2756_v7 = vsel %vm153_vm8, %v2755_v18, %v2682_v38  ;;  %v2743_v23 = vperm.slane %v2739_v51, %v4861_v3 }
 0xad7   :  { %v2678_v21 = vsel %vm153_vm8, 0.0, %v2677_v41  ;;  %v2760_v28 = vperm.slane %v2756_v7, %v4861_v3 }
 0xad8   :  { %v2775_v53 = vrot.slane %v2754_v2, 4  ;;  %v2745_v44 = vsel %vm153_vm8, %v2744_v48, %v2678_v21  ;;  %v2763_v25 = vrot.slane %v2743_v23, 4 }
 0xad9   :  { %v2749_v58 = vperm.slane %v2745_v44, %v4861_v3  ;;  %v2773_v27 = vrot.slane %v2760_v28, 4 }
 0xada   :  { %v2776_v47 = vsel %vm153_vm8, %v2760_v28, %v2775_v53 }
 0xadb   :  { %v2764_v24 = vsel %vm153_vm8, %v2749_v58, %v2763_v25  ;;  %v2784_v16 = vperm.slane %v2776_v47, %v4872_v13  ;;  %v2761_v55 = vrot.slane %v2749_v58, 4  ;;  %v2774_v36 = vsel %vm153_vm8, %v2773_v27, %v2754_v2 }
 0xadc   :  { %v2772_v60 = vperm.slane %v2764_v24, %v4872_v13  ;;  %v2780_v52 = vperm.slane %v2774_v36, %v4872_v13 }
 0xadd   :  { %v2789_v35 = vrot.slane %v2784_v16, 4  ;;  %v2762_v50 = vsel %vm153_vm8, %v2761_v55, %v2743_v23 }
 0xade   :  { %v2768_v12 = vperm.slane %v2762_v50, %v4872_v13  ;;  %v2785_v22 = vrot.slane %v2780_v52, 4  ;;  %v2791_v56 = vrot.slane %v2772_v60, 4  ;;  %v4604_v50 = vpack.i.bf16 %v5655_v8, %v5653_v19 }
 0xadf   :  { %v2790_v11 = vsel %vm153_vm8, %v2789_v35, %v2772_v60  ;;  %v4609_v35 = vpack.i.bf16 %v5661_v57, %v5638_v29 }
 0xae0   :  { %4544 = vmatpush.xpose.msk.msra.mxu2 %vm861_vm9, %v2790_v11  ;;  %v2786_v4 = vsel %vm153_vm8, %v2785_v22, %v2768_v12  ;;  %v2792_v30 = vsel %vm153_vm8, %v2784_v16, %v2791_v56  ;;  %v2787_v9 = vrot.slane %v2768_v12, 4 }
 0xae1   :  { %4540 = vmatpush.xpose.msk.msrb.mxu0 %vm861_vm9, %v2786_v4  ;;  %4546 = vmatpush.xpose.msk.msra.mxu3 %vm861_vm9, %v2792_v30 }
 0xae2   :  { %v2788_v14 = vsel %vm153_vm8, %v2780_v52, %v2787_v9 }
 0xae3   :  { %4545 = vmatmul.msk.f32.vlgmr.msra.gmra.mxu2 %vm861_vm9, %v5738_v1  ;;  %4542 = vmatpush.xpose.msk.msra.mxu1 %vm861_vm9, %v2788_v14 }
 0xae4   :  { %4541 = vmatmul.msk.f32.vlgmr.msrb.gmra.mxu0 %vm861_vm9, %v5741_v42  ;;  %4547 = vmatmul.msk.f32.vlgmr.msra.gmra.mxu3 %vm861_vm9, %v5744_v5 }
 0xae6   :  { %4543 = vmatmul.msk.f32.vlgmr.msra.gmra.mxu1 %vm861_vm9, %v5749_v40 }
 0xb14   :  { %v3086_v33 = vpop.f32.mrf.mxu0 }
 0xb15   :  { %v3246_v26 = vmul.f32 0.35355338, %v3086_v33 }
 0xb16   :  { %v3112_v62 = vpop.f32.mrf.mxu2 }
 0xb17   :  { %v3247_v31 = vmul.f32 0.35355338, %v3112_v62  ;;  %v5880_v17 = vadd.f32 %v3246_v26, %v5103_v37 }
 0xb18   :  { %v3060_v18 = vpop.f32.mrf.mxu3 }
 0xb19   :  { %v3245_v1 = vmul.f32 0.35355338, %v3060_v18  ;;  %v3264_v41 = vsel %vm861_vm9, %v5880_v17, -inf  ;;  %v3255_v42 = vadd.f32 %v3247_v31, %v5103_v37 }
 0xb1a   :  { %3265 = vmax.xlane.f32.xlu2 %v3264_v41 }
 0xb1b   :  { %v3267_v5 = vsel %vm861_vm9, %v3255_v42, -inf  ;;  %v3253_v34 = vadd.f32 %v3245_v1, %v5103_v37 }
 0xb1c   :  { %3268 = vmax.xlane.f32.xlu1 %v3267_v5 }
 0xb1d   :  { %v3261_v40 = vsel %vm861_vm9, %v3253_v34, -inf }
 0xb1e   :  { %3262 = vmax.xlane.f32.xlu0 %v3261_v40 }
 0xb20   :  { %v3138_v38 = vpop.f32.mrf.mxu3 }
 0xb21   :  { %v3248_v25 = vmul.f32 0.35355338, %v3138_v38 }
 0xb23   :  { %v3256_v36 = vadd.f32 %v3248_v25, %v5103_v37  ;;  %v5908_v37 = vpop.permute.xlu0 %4600 }
 0xb25   :  { %v3270_v52 = vsel %vm861_vm9, %v3256_v36, -inf }
 0xb61   :  { %v3164_v51 = vpop.f32.mrf.mxu0 }
 0xb62   :  { %v3249_v48 = vmul.f32 0.35355338, %v3164_v51 }
 0xb63   :  { %v3190_v2 = vpop.f32.mrf.mxu1 }
 0xb64   :  { %v3250_v7 = vmul.f32 0.35355338, %v3190_v2  ;;  %v3257_v21 = vadd.f32 %v3249_v48, %v5111_v49 }
 0xb66   :  { %v3216_v28 = vpop.f32.mrf.mxu2  ;;  %v3273_v23 = vsel %vm861_vm9, %v3257_v21, -inf  ;;  %v3258_v53 = vadd.f32 %v3250_v7, %v5111_v49 }
 0xb67   :  { %v3251_v44 = vmul.f32 0.35355338, %v3216_v28  ;;  %v3242_v58 = vpop.f32.mrf.mxu3  ;;  %3274 = vmax.xlane.f32.xlu1 %v3273_v23 }
 0xb68   :  { %v3252_v27 = vmul.f32 0.35355338, %v3242_v58  ;;  %v3276_v47 = vsel %vm861_vm9, %v3258_v53, -inf }
 0xb69   :  { %3277 = vmax.xlane.f32.xlu2 %v3276_v47  ;;  %v3259_v16 = vadd.f32 %v3251_v44, %v5111_v49 }
 0xb6a   :  { %v3260_v24 = vadd.f32 %v3252_v27, %v5111_v49 }
 0xb6b   :  { %v3279_v60 = vsel %vm861_vm9, %v3259_v16, -inf }
 0xb6c   :  { %v3282_v55 = vsel %vm861_vm9, %v3260_v24, -inf }
 0xb6d   :  { %3283 = vmax.xlane.f32.xlu0 %v3282_v55 }
 0xb6f   :  { %3280 = vmax.xlane.f32.xlu1 %v3279_v60 }
 0xb71   :  { %3271 = vmax.xlane.f32.xlu2 %v3270_v52 }
 0xb81   :  { %4610 = vrot.lane.b32.xlu0 %v4609_v35, %s4772_s1 }
 0xb88   :  { %4605 = vrot.lane.b32.xlu1 %v4604_v50, %s4772_s1 }
 0xb89   :  { %4615 = vrot.lane.b32.xlu2 %v4614_v15, %s4772_s1 }
 0xb8d   :  { %v3266_v45 = vpop.xlane.xlu2 %3265 }
 0xb8e   :  { %v3286_v5 = vsub.f32 %v5880_v17, %v3266_v45 }
 0xb8f   :  { %v3269_v22 = vpop.xlane.xlu1 %3268 }
 0xb90   :  { %v3287_v11 = vsub.f32 %v3255_v42, %v3269_v22  ;;  %v3295_v51 = vmul.f32 1.442695, %v3286_v5 }
 0xb91   :  { %v3263_v49 = vpop.xlane.xlu0 %3262 }
 0xb92   :  { %v3285_v12 = vsub.f32 %v3253_v34, %v3263_v49  ;;  %v3297_v29 = vmul.f32 1.442695, %v3287_v11  ;;  %v4602_v11 = vunpack.i.l.bf16 %v5908_v37 }
 0xb94   :  { %v3293_v56 = vmul.f32 1.442695, %v3285_v12  ;;  %v4603_v12 = vunpack.i.h.bf16 %v5908_v37 }
 0xb96   :  { %4692 = vpow2.f32 %v3293_v56 }
 0xb97   :  { %4694 = vpow2.f32 %v3297_v29 }
 0xb9c   :  { %v5910_v57 = vpop.eup %4692 }
 0xb9d   :  { %v3309_v19 = vsel %vm861_vm9, %v5910_v57, 0.0  ;;  %v5914_v8 = vpop.eup %4694 }
 0xb9e   :  { %v3315_v43 = vsel %vm861_vm9, %v5914_v8, 0.0 }
 0xbab   :  { %3310 = vadd.xlane.f32.xlu0 %v3309_v19 }
 0xbb2   :  { %3316 = vadd.xlane.f32.xlu2 %v3315_v43 }
 0xbda   :  { %v3275_v15 = vpop.xlane.xlu1 %3274 }
 0xbdb   :  { %v3289_v31 = vsub.f32 %v3257_v21, %v3275_v15 }
 0xbdc   :  { %v3278_v4 = vpop.xlane.xlu2 %3277 }
 0xbdd   :  { %v3290_v14 = vsub.f32 %v3258_v53, %v3278_v4  ;;  %v3301_v40 = vmul.f32 1.442695, %v3289_v31 }
 0xbdf   :  { %v3303_v42 = vmul.f32 1.442695, %v3290_v14 }
 0xbe0   :  { %v3284_v30 = vpop.xlane.xlu0 %3283 }
 0xbe1   :  { %v3292_v9 = vsub.f32 %v3260_v24, %v3284_v30 }
 0xbe2   :  { %v3281_v33 = vpop.xlane.xlu1 %3280 }
 0xbe3   :  { %v3307_v26 = vmul.f32 1.442695, %v3292_v9  ;;  %v3291_v62 = vsub.f32 %v3259_v16, %v3281_v33 }
 0xbe4   :  { %v3272_v18 = vpop.xlane.xlu2 %3271 }
 0xbe5   :  { %4696 = vpow2.f32 %v3307_v26  ;;  %v3305_v1 = vmul.f32 1.442695, %v3291_v62  ;;  %v3288_v41 = vsub.f32 %v3256_v36, %v3272_v18 }
 0xbe7   :  { %4698 = vpow2.f32 %v3305_v1  ;;  %v3299_v34 = vmul.f32 1.442695, %v3288_v41  ;;  %v2831_v41 = vrot.slane %v4603_v12, 4 }
 0xbe9   :  { %4700 = vpow2.f32 %v3299_v34 }
 0xbea   :  { %4702 = vpow2.f32 %v3303_v42  ;;  %v2819_v42 = vrot.slane %v4602_v11, 4 }
 0xbeb   :  { %v5919_v38 = vpop.eup %4696  ;;  %4704 = vpow2.f32 %v3301_v40 }
 0xbec   :  { %v3330_v48 = vsel %vm861_vm9, %v5919_v38, 0.0  ;;  %v4616_v7 = vpop.permute.xlu2 %4615  ;;  %4706 = vpow2.f32 %v3295_v51 }
 0xbed   :  { %v5923_v2 = vpop.eup %4698  ;;  %3331 = vadd.xlane.f32.xlu0 %v3330_v48  ;;  %v4618_v23 = vunpack.i.h.bf16 %v4616_v7  ;;  %v4617_v53 = vunpack.i.l.bf16 %v4616_v7 }
 0xbee   :  { %v3327_v21 = vsel %vm861_vm9, %v5923_v2, 0.0 }
 0xbef   :  { %v5927_v17 = vpop.eup %4700  ;;  %3328 = vadd.xlane.f32.xlu1 %v3327_v21  ;;  %v2885_v47 = vrot.slane %v4618_v23, 4  ;;  %v2873_v24 = vrot.slane %v4617_v53, 4 }
 0xbf0   :  { %v5929_v28 = vpop.eup %4702  ;;  %v3318_v44 = vsel %vm861_vm9, %v5927_v17, 0.0 }
 0xbf1   :  { %3319 = vadd.xlane.f32.xlu2 %v3318_v44  ;;  %v5933_v58 = vpop.eup %4704  ;;  %v3324_v27 = vsel %vm861_vm9, %v5929_v28, 0.0 }
 0xbf2   :  { %v5937_v36 = vpop.eup %4706  ;;  %v3321_v60 = vsel %vm861_vm9, %v5933_v58, 0.0 }
 0xbf3   :  { %v4611_v25 = vpop.permute.xlu0 %4610  ;;  %v3312_v43 = vsel %vm861_vm9, %v5937_v36, 0.0 }
 0xbf4   :  { %v4613_v16 = vunpack.i.h.bf16 %v4611_v25  ;;  %v4612_v55 = vunpack.i.l.bf16 %v4611_v25 }
 0xbf5   :  { %3325 = vadd.xlane.f32.xlu0 %v3324_v27 }
 0xbf6   :  { %v2886_v52 = vsel %vm153_vm8, %v2885_v47, %v4613_v16  ;;  %v2887_v35 = vrot.slane %v4613_v16, 4  ;;  %v2874_v50 = vsel %vm153_vm8, %v2873_v24, %v4612_v55  ;;  %v2875_v49 = vrot.slane %v4612_v55, 4 }
 0xbf7   :  { %v2892_v22 = vperm.slane %v2886_v52, %v4861_v3  ;;  %v2880_v56 = vperm.slane %v2874_v50, %v4861_v3  ;;  %3322 = vadd.xlane.f32.xlu1 %v3321_v60 }
 0xbf8   :  { %v2888_v29 = vsel %vm153_vm8, %v4618_v23, %v2887_v35  ;;  %v2876_v19 = vsel %vm153_vm8, %v4617_v53, %v2875_v49 }
 0xbf9   :  { %v2896_v45 = vperm.slane %v2888_v29, %v4861_v3  ;;  %v2897_v15 = vrot.slane %v2892_v22, 4  ;;  %v2884_v4 = vperm.slane %v2876_v19, %v4861_v3  ;;  %v2899_v30 = vrot.slane %v2880_v56, 4  ;;  %3313 = vadd.xlane.f32.xlu2 %v3312_v43 }
 0xbfa   :  { %v4606_v9 = vpop.permute.xlu1 %4605 }
 0xbfb   :  { %v2909_v14 = vrot.slane %v2896_v45, 4  ;;  %v2898_v33 = vsel %vm153_vm8, %v2897_v15, %v2880_v56  ;;  %v2900_v37 = vsel %vm153_vm8, %v2892_v22, %v2899_v30  ;;  %v2911_v26 = vrot.slane %v2884_v4, 4 }
 0xbfc   :  { %v2904_v62 = vperm.slane %v2898_v33, %v4872_v13  ;;  %v2908_v31 = vperm.slane %v2900_v37, %v4872_v13  ;;  %v4608_v18 = vunpack.i.h.bf16 %v4606_v9  ;;  %v4607_v1 = vunpack.i.l.bf16 %v4606_v9 }
 0xbfd   :  { %v2910_v5 = vsel %vm153_vm8, %v2909_v14, %v2884_v4  ;;  %v2912_v34 = vsel %vm153_vm8, %v2896_v45, %v2911_v26 }
 0xbfe   :  { %v2916_v40 = vperm.slane %v2910_v5, %v4872_v13  ;;  %v2920_v51 = vperm.slane %v2912_v34, %v4872_v13  ;;  %v2921_v48 = vrot.slane %v2904_v62, 4  ;;  %v2923_v7 = vrot.slane %v2908_v31, 4 }
 0xbff   :  { %v2829_v21 = vrot.slane %v4608_v18, 4  ;;  %v2817_v23 = vrot.slane %v4607_v1, 4  ;;  %v2820_v53 = vsel %vm153_vm8, %v4607_v1, %v2819_v42  ;;  %v2832_v44 = vsel %vm153_vm8, %v4608_v18, %v2831_v41 }
 0xc00   :  { %v2924_v25 = vsel %vm153_vm8, 0.0, %v2923_v7  ;;  %v2925_v27 = vrot.slane %v2916_v40, 4  ;;  %v2927_v47 = vrot.slane %v2920_v51, 4  ;;  %v2828_v24 = vperm.slane %v2820_v53, %v4861_v3 }
 0xc01   :  { %v2988_v16 = vrot.slane %v2924_v25, 4  ;;  %v2818_v55 = vsel %vm153_vm8, %v2817_v23, %v4602_v11  ;;  %v2830_v60 = vsel %vm153_vm8, %v2829_v21, %v4603_v12  ;;  %v2840_v52 = vperm.slane %v2832_v44, %v4861_v3 }
 0xc02   :  { %v2928_v35 = vsel %vm153_vm8, 0.0, %v2927_v47  ;;  %v2824_v50 = vperm.slane %v2818_v55, %v4861_v3  ;;  %v2836_v49 = vperm.slane %v2830_v60, %v4861_v3  ;;  %v2855_v22 = vrot.slane %v2828_v24, 4 }
 0xc03   :  { %v2999_v56 = vrot.slane %v2928_v35, 4  ;;  %v2853_v29 = vrot.slane %v2840_v52, 4  ;;  %v2922_v19 = vsel %vm153_vm8, 0.0, %v2921_v48  ;;  %v2926_v43 = vsel %vm153_vm8, 0.0, %v2925_v27 }
 0xc04   :  { %v2841_v45 = vrot.slane %v2836_v49, 4  ;;  %v2843_v15 = vrot.slane %v2824_v50, 4  ;;  %v2856_v11 = vsel %vm153_vm8, %v2840_v52, %v2855_v22  ;;  %v2983_v12 = vsel %vm153_vm8, %v2923_v7, %v2904_v62 }
 0xc05   :  { %v2854_v4 = vsel %vm153_vm8, %v2853_v29, %v2828_v24  ;;  %v2864_v30 = vperm.slane %v2856_v11, %v4872_v13  ;;  %v2987_v9 = vperm.slane %v2983_v12, %v4861_v3  ;;  %v2989_v14 = vsel %vm153_vm8, %v2988_v16, %v2922_v19 }
 0xc06   :  { %v2842_v33 = vsel %vm153_vm8, %v2841_v45, %v2824_v50  ;;  %v2844_v37 = vsel %vm153_vm8, %v2836_v49, %v2843_v15  ;;  %v2860_v26 = vperm.slane %v2854_v4, %v4872_v13  ;;  %v2993_v31 = vperm.slane %v2989_v14, %v4861_v3 }
 0xc07   :  { %v2848_v18 = vperm.slane %v2842_v33, %v4872_v13  ;;  %v2852_v62 = vperm.slane %v2844_v37, %v4872_v13  ;;  %v2871_v1 = vrot.slane %v2864_v30, 4  ;;  %v2994_v41 = vsel %vm153_vm8, %v2927_v47, %v2916_v40 }
 0xc08   :  { %v2869_v42 = vrot.slane %v2860_v26, 4  ;;  %v2998_v5 = vperm.slane %v2994_v41, %v4861_v3  ;;  %v3000_v34 = vsel %vm153_vm8, %v2999_v56, %v2926_v43  ;;  %v3007_v51 = vrot.slane %v2987_v9, 4 }
 0xc09   :  { %v2865_v48 = vrot.slane %v2848_v18, 4  ;;  %v2867_v7 = vrot.slane %v2852_v62, 4  ;;  %v2872_v21 = vsel %vm153_vm8, 0.0, %v2871_v1  ;;  %v2940_v23 = vsel %vm153_vm8, %v2871_v1, %v2860_v26 }
 0xc0a   :  { %v2945_v53 = vrot.slane %v2872_v21, 4  ;;  %v2944_v44 = vperm.slane %v2940_v23, %v4861_v3  ;;  %v3004_v25 = vperm.slane %v3000_v34, %v4861_v3  ;;  %v2870_v40 = vsel %vm153_vm8, 0.0, %v2869_v42 }
 0xc0b   :  { %v2868_v27 = vsel %vm153_vm8, 0.0, %v2867_v7  ;;  %v2929_v47 = vsel %vm153_vm8, %v2867_v7, %v2848_v18  ;;  %v3008_v24 = vsel %vm153_vm8, %v2993_v31, %v3007_v51  ;;  %v2866_v35 = vsel %vm153_vm8, 0.0, %v2865_v48 }
 0xc0c   :  { %v2934_v16 = vrot.slane %v2868_v27, 4  ;;  %v2933_v55 = vperm.slane %v2929_v47, %v4861_v3  ;;  %v2946_v60 = vsel %vm153_vm8, %v2945_v53, %v2870_v40  ;;  %v2965_v52 = vrot.slane %v2944_v44, 4 }
 0xc0d   :  { %v2950_v50 = vperm.slane %v2946_v60, %v4861_v3  ;;  %v3019_v49 = vrot.slane %v2998_v5, 4  ;;  %v3005_v22 = vrot.slane %v2993_v31, 4  ;;  %v3016_v19 = vperm.slane %v3008_v24, %v4872_v13 }
 0xc0e   :  { %v2935_v56 = vsel %vm153_vm8, %v2934_v16, %v2866_v35  ;;  %v2953_v29 = vrot.slane %v2933_v55, 4  ;;  %v3017_v43 = vrot.slane %v3004_v25, 4 }
 0xc0f   :  { %v2939_v45 = vperm.slane %v2935_v56, %v4861_v3  ;;  %v2966_v15 = vsel %vm153_vm8, %v2950_v50, %v2965_v52  ;;  %v3020_v11 = vsel %vm153_vm8, %v3004_v25, %v3019_v49  ;;  %v2963_v12 = vrot.slane %v2950_v50, 4 }
 0xc10   :  { %v2974_v4 = vperm.slane %v2966_v15, %v4872_v13  ;;  %v3028_v30 = vperm.slane %v3020_v11, %v4872_v13  ;;  %v3006_v14 = vsel %vm153_vm8, %v3005_v22, %v2987_v9  ;;  %v3018_v33 = vsel %vm153_vm8, %v3017_v43, %v2998_v5 }
 0xc11   :  { %v2954_v37 = vsel %vm153_vm8, %v2939_v45, %v2953_v29  ;;  %v2951_v26 = vrot.slane %v2939_v45, 4  ;;  %v2964_v31 = vsel %vm153_vm8, %v2963_v12, %v2944_v44  ;;  %v3012_v18 = vperm.slane %v3006_v14, %v4872_v13 }
 0xc12   :  { %v2962_v62 = vperm.slane %v2954_v37, %v4872_v13  ;;  %v2979_v1 = vrot.slane %v2974_v4, 4  ;;  %v3033_v41 = vrot.slane %v3028_v30, 4  ;;  %v2970_v42 = vperm.slane %v2964_v31, %v4872_v13 }
 0xc13   :  { %v2952_v34 = vsel %vm153_vm8, %v2951_v26, %v2933_v55  ;;  %v3024_v51 = vperm.slane %v3018_v33, %v4872_v13  ;;  %v3035_v7 = vrot.slane %v3016_v19, 4  ;;  %v3031_v44 = vrot.slane %v3012_v18, 4 }
 0xc14   :  { %v2980_v9 = vsel %vm153_vm8, %v2979_v1, %v2962_v62  ;;  %v2958_v5 = vperm.slane %v2952_v34, %v4872_v13  ;;  %v2975_v48 = vrot.slane %v2970_v42, 4  ;;  %v3034_v21 = vsel %vm153_vm8, %v3033_v41, %v3016_v19 }
 0xc15   :  { %3767 = vmatpush.msrb.mxu2 %v2980_v9  ;;  %v2981_v23 = vrot.slane %v2962_v62, 4  ;;  %v3029_v53 = vrot.slane %v3024_v51, 4  ;;  %v3036_v24 = vsel %vm153_vm8, %v3028_v30, %v3035_v7  ;;  %v3032_v55 = vsel %vm153_vm8, %v3024_v51, %v3031_v44 }
 0xc16   :  { %v2976_v25 = vsel %vm153_vm8, %v2975_v48, %v2958_v5  ;;  %v2977_v27 = vrot.slane %v2958_v5, 4 }
 0xc17   :  { %3859 = vmatpush.msra.mxu2 %v3034_v21  ;;  %3721 = vmatpush.msra.mxu0 %v2976_v25  ;;  %v2982_v40 = vsel %vm153_vm8, %v2974_v4, %v2981_v23  ;;  %v3030_v47 = vsel %vm153_vm8, %v3029_v53, %v3012_v18 }
 0xc18   :  { %3790 = vmatpush.msrb.mxu3 %v2982_v40  ;;  %v2978_v16 = vsel %vm153_vm8, %v2970_v42, %v2977_v27 }
 0xc19   :  { %3813 = vmatpush.msrb.mxu0 %v3030_v47  ;;  %3744 = vmatpush.msrb.mxu1 %v2978_v16 }
 0xc1a   :  { %3882 = vmatpush.msra.mxu3 %v3036_v24 }
 0xc1b   :  { %3836 = vmatpush.msra.mxu1 %v3032_v55 }
 0xc1e   :  { %v3311_v60 = vpop.xlane.xlu0 %3310 }
 0xc1f   :  { %4708 = vrcp.f32 %v3311_v60  ;;  %v3344_v22 = vand.u32 2147483648, %v3311_v60  ;;  %v3342_v29 = vand.u32 2147483647, %v3311_v60  ;;  %vm3338_vm4 = vweird.f32 %v3311_v60 }
 0xc21   :  { %v3345_v45 = vor.u32 1.1754944e-38, %v3344_v22  ;;  %vm3343_vm6 = vcmp.eq.f32.partialorder %v3342_v29, 8.507059e+37 }
 0xc25   :  { %v4709_v52 = vpop.eup %4708  ;;  %v3317_v35 = vpop.xlane.xlu2 %3316 }
 0xc26   :  { %v3334_v50 = vmul.f32 %v4709_v52, %v3311_v60  ;;  %4710 = vrcp.f32 %v3317_v35  ;;  %vm3339_vm3 = vweird.f32 %v4709_v52  ;;  %v3374_v30 = vand.u32 2147483648, %v3317_v35 }
 0xc27   :  { %vm3340_vm5 = vmor %vm3338_vm4, %vm3339_vm3  ;;  %v3372_v37 = vand.u32 2147483647, %v3317_v35  ;;  %vm3368_vm10 = vweird.f32 %v3317_v35 }
 0xc28   :  { %v3335_v49 = vsub.f32 1.0, %v3334_v50  ;;  %v3375_v31 = vor.u32 1.1754944e-38, %v3374_v30 }
 0xc29   :  { %vm3373_vm12 = vcmp.eq.f32.partialorder %v3372_v37, 8.507059e+37 }
 0xc2a   :  { %v3336_v56 = vmul.f32 %v4709_v52, %v3335_v49 }
 0xc2c   :  { %v4711_v19 = vpop.eup %4710  ;;  %v3337_v43 = vadd.f32 %v4709_v52, %v3336_v56 }
 0xc2d   :  { %v3364_v15 = vmul.f32 %v4711_v19, %v3317_v35  ;;  %vm3369_vm7 = vweird.f32 %v4711_v19 }
 0xc2e   :  { %v3341_v11 = vsel %vm3340_vm5, %v4709_v52, %v3337_v43  ;;  %vm3370_vm11 = vmor %vm3368_vm10, %vm3369_vm7 }
 0xc2f   :  { %v3346_v12 = vsel %vm3343_vm6, %v3345_v45, %v3341_v11  ;;  %v3365_v4 = vsub.f32 1.0, %v3364_v15 }
 0xc30   :  { %v3347_v14 = vmul.f32 %v5910_v57, %v3346_v12 }
 0xc31   :  { %v3366_v33 = vmul.f32 %v4711_v19, %v3365_v4 }
 0xc32   :  { %4548 = vmatmul.msk.f32.vlgmr.msra.gmra.mxu0 %vm861_vm9, %v3347_v14  ;;  %v3455_v1 = vrot.slane %v3347_v14, 4 }
 0xc33   :  { %v3367_v26 = vadd.f32 %v4711_v19, %v3366_v33 }
 0xc35   :  { %v3371_v18 = vsel %vm3370_vm11, %v4711_v19, %v3367_v26 }
 0xc36   :  { %v3376_v62 = vsel %vm3373_vm12, %v3375_v31, %v3371_v18 }
 0xc37   :  { %v3377_v41 = vmul.f32 %v5914_v8, %v3376_v62 }
 0xc39   :  { %v3453_v42 = vrot.slane %v3377_v41, 4  ;;  %v6029_v34 = vsel %vm153_vm8, %v3377_v41, %v3455_v1  ;;  %4550 = vmatmul.msk.f32.vlgmr.msrb.gmra.mxu2 %vm861_vm9, %v3377_v41 }
 0xc3b   :  { %v3454_v57 = vsel %vm153_vm8, %v3453_v42, %v3347_v14 }
 0xc3c   :  { %v6034_v23 = vperm.slane %v3454_v57, %v4861_v3 }
 0xc60   :  { %v3332_v51 = vpop.xlane.xlu0 %3331 }
 0xc61   :  { %4712 = vrcp.f32 %v3332_v51  ;;  %v3447_v48 = vand.u32 2147483647, %v3332_v51  ;;  %v3449_v7 = vand.u32 2147483648, %v3332_v51  ;;  %vm3443_vm13 = vweird.f32 %v3332_v51 }
 0xc62   :  { %v3329_v9 = vpop.xlane.xlu1 %3328 }
 0xc63   :  { %4714 = vrcp.f32 %v3329_v9  ;;  %vm6038_vm14 = vcmp.eq.f32.partialorder %v3447_v48, 8.507059e+37  ;;  %v3432_v27 = vand.u32 2147483647, %v3329_v9  ;;  %v3450_v47 = vor.u32 1.1754944e-38, %v3449_v7 }
 0xc64   :  { %v3320_v5 = vpop.xlane.xlu2 %3319  ;;  %vm3428_vm3 = vweird.f32 %v3329_v9  ;;  %v3434_v60 = vand.u32 2147483648, %v3329_v9 }
 0xc65   :  { %4716 = vrcp.f32 %v3320_v5  ;;  %v3387_v52 = vand.u32 2147483647, %v3320_v5  ;;  %v3389_v35 = vand.u32 2147483648, %v3320_v5  ;;  %vm6048_vm5 = vcmp.eq.f32.partialorder %v3432_v27, 8.507059e+37 }
 0xc66   :  { %vm3383_vm6 = vweird.f32 %v3320_v5  ;;  %v3435_v12 = vor.u32 1.1754944e-38, %v3434_v60 }
 0xc67   :  { %v4713_v21 = vpop.eup %4712  ;;  %vm6055_vm12 = vcmp.eq.f32.partialorder %v3387_v52, 8.507059e+37  ;;  %v3390_v30 = vor.u32 1.1754944e-38, %v3389_v35 }
 0xc68   :  { %v3439_v8 = vmul.f32 %v4713_v21, %v3332_v51  ;;  %v6036_v53 = vpop.xlane.xlu0 %3325  ;;  %vm3444_vm4 = vweird.f32 %v4713_v21 }
 0xc69   :  { %v4715_v44 = vpop.eup %4714  ;;  %4718 = vrcp.f32 %v6036_v53  ;;  %v3417_v19 = vand.u32 2147483647, %v6036_v53  ;;  %vm3445_vm10 = vmor %vm3443_vm13, %vm3444_vm4  ;;  %vm3413_vm13 = vweird.f32 %v6036_v53  ;;  %v3419_v1 = vand.u32 2147483648, %v6036_v53 }
 0xc6a   :  { %v3440_v40 = vsub.f32 1.0, %v3439_v8  ;;  %v3424_v24 = vmul.f32 %v4715_v44, %v3329_v9  ;;  %v6043_v16 = vpop.xlane.xlu1 %3322  ;;  %vm3429_vm7 = vweird.f32 %v4715_v44 }
 0xc6b   :  { %v4717_v55 = vpop.eup %4716  ;;  %4720 = vrcp.f32 %v6043_v16  ;;  %vm3430_vm15 = vmor %vm3428_vm3, %vm3429_vm7  ;;  %vm6064_vm4 = vcmp.eq.f32.partialorder %v3417_v19, 8.507059e+37  ;;  %v3402_v9 = vand.u32 2147483647, %v6043_v16 }
 0xc6c   :  { %v3441_v50 = vmul.f32 %v4713_v21, %v3440_v40  ;;  %v3425_v49 = vsub.f32 1.0, %v3424_v24  ;;  %v3379_v22 = vmul.f32 %v4717_v55, %v3320_v5  ;;  %v6046_v56 = vpop.xlane.xlu2 %3313  ;;  %vm3384_vm11 = vweird.f32 %v4717_v55 }
 0xc6d   :  { %4722 = vrcp.f32 %v6046_v56 }
 0xc6e   :  { %v3442_v43 = vadd.f32 %v4713_v21, %v3441_v50  ;;  %v3426_v45 = vmul.f32 %v4715_v44, %v3425_v49  ;;  %v3380_v15 = vsub.f32 1.0, %v3379_v22  ;;  %v3357_v50 = vand.u32 2147483647, %v6046_v56 }
 0xc6f   :  { %v4719_v11 = vpop.eup %4718  ;;  %v3359_v49 = vand.u32 2147483648, %v6046_v56 }
 0xc70   :  { %v3446_v14 = vsel %vm3445_vm10, %v4713_v21, %v3442_v43  ;;  %v3427_v33 = vadd.f32 %v4715_v44, %v3426_v45  ;;  %v3381_v37 = vmul.f32 %v4717_v55, %v3380_v15  ;;  %v3409_v26 = vmul.f32 %v4719_v11, %v6036_v53 }
 0xc71   :  { %v4721_v31 = vpop.eup %4720  ;;  %v3451_v18 = vsel %vm6038_vm14, %v3450_v47, %v3446_v14  ;;  %vm3385_vm14 = vmor %vm3383_vm6, %vm3384_vm11  ;;  %vm3414_vm3 = vweird.f32 %v4719_v11  ;;  %v3404_v21 = vand.u32 2147483648, %v6043_v16  ;;  %vm3398_vm6 = vweird.f32 %v6043_v16 }
 0xc72   :  { %v3431_v41 = vsel %vm3430_vm15, %v4715_v44, %v3427_v33  ;;  %v3382_v42 = vadd.f32 %v4717_v55, %v3381_v37  ;;  %v3410_v57 = vsub.f32 1.0, %v3409_v26  ;;  %v3394_v51 = vmul.f32 %v4721_v31, %v6043_v16 }
 0xc73   :  { %v4723_v48 = vpop.eup %4722  ;;  %v3436_v7 = vsel %vm6048_vm5, %v3435_v12, %v3431_v41  ;;  %vm3399_vm15 = vweird.f32 %v4721_v31  ;;  %v3452_v24 = vmul.f32 %v5919_v38, %v3451_v18  ;;  %vm3415_vm5 = vmor %vm3413_vm13, %vm3414_vm3  ;;  %vm3403_vm11 = vcmp.eq.f32.partialorder %v3402_v9, 8.507059e+37 }
 0xc74   :  { %v3386_v8 = vsel %vm3385_vm14, %v4717_v55, %v3382_v42  ;;  %v3411_v25 = vmul.f32 %v4719_v11, %v3410_v57  ;;  %v3395_v27 = vsub.f32 1.0, %v3394_v51  ;;  %v3349_v44 = vmul.f32 %v4723_v48, %v6046_v56  ;;  %vm3400_vm10 = vmor %vm3398_vm6, %vm3399_vm15 }
 0xc75   :  { %v3391_v40 = vsel %vm6055_vm12, %v3390_v30, %v3386_v8  ;;  %v3437_v47 = vmul.f32 %v5923_v2, %v3436_v7  ;;  %v3420_v55 = vor.u32 1.1754944e-38, %v3419_v1  ;;  %vm3354_vm7 = vweird.f32 %v4723_v48 }
 0xc76   :  { %v3412_v5 = vadd.f32 %v4719_v11, %v3411_v25  ;;  %v3396_v60 = vmul.f32 %v4721_v31, %v3395_v27  ;;  %v3350_v52 = vsub.f32 1.0, %v3349_v44  ;;  %v3392_v35 = vmul.f32 %v5927_v17, %v3391_v40 }
 0xc77   :  { %4554 = vmatmul.msk.f32.vlgmr.msra.gmra.mxu2 %vm861_vm9, %v3437_v47  ;;  %v3405_v53 = vor.u32 1.1754944e-38, %v3404_v21  ;;  %vm3353_vm12 = vweird.f32 %v6046_v56  ;;  %v3521_v19 = vrot.slane %v3452_v24, 4  ;;  %vm3358_vm14 = vcmp.eq.f32.partialorder %v3357_v50, 8.507059e+37 }
 0xc78   :  { %v3416_v2 = vsel %vm3415_vm5, %v4719_v11, %v3412_v5  ;;  %v3397_v38 = vadd.f32 %v4721_v31, %v3396_v60  ;;  %v3351_v22 = vmul.f32 %v4723_v48, %v3350_v52  ;;  %4551 = vmatmul.msk.f32.vlgmr.msrb.gmra.mxu3 %vm861_vm9, %v3392_v35  ;;  %vm3355_vm13 = vmor %vm3353_vm12, %vm3354_vm7  ;;  %v3360_v15 = vor.u32 1.1754944e-38, %v3359_v49 }
 0xc79   :  { %v3421_v17 = vsel %vm6064_vm4, %v3420_v55, %v3416_v2  ;;  %v3509_v11 = vrot.slane %v3437_v47, 4  ;;  %v3464_v33 = vperm.slane %v6029_v34, %v4861_v3  ;;  %v3465_v37 = vrot.slane %v3392_v35, 4 }
 0xc7a   :  { %v3401_v16 = vsel %vm3400_vm10, %v4721_v31, %v3397_v38  ;;  %v3352_v29 = vadd.f32 %v4723_v48, %v3351_v22  ;;  %v3422_v43 = vmul.f32 %v5929_v28, %v3421_v17  ;;  %v3479_v34 = vrot.slane %v6034_v23, 4 }
 0xc7b   :  { %v3406_v45 = vsel %vm3403_vm11, %v3405_v53, %v3401_v16  ;;  %v3491_v21 = vrot.slane %v3464_v33, 4 }
 0xc7c   :  { %v3356_v12 = vsel %vm3355_vm13, %v4723_v48, %v3352_v29  ;;  %v3407_v4 = vmul.f32 %v5933_v58, %v3406_v45  ;;  %v3522_v30 = vsel %vm153_vm8, %v3521_v19, %v3422_v43  ;;  %v3523_v14 = vrot.slane %v3422_v43, 4 }
 0xc7d   :  { %v3361_v56 = vsel %vm3358_vm14, %v3360_v15, %v3356_v12  ;;  %v3528_v26 = vperm.slane %v3522_v30, %v4861_v3 }
 0xc7e   :  { %v3510_v28 = vsel %vm153_vm8, %v3509_v11, %v3407_v4  ;;  %v3511_v31 = vrot.slane %v3407_v4, 4  ;;  %4552 = vmatmul.msk.f32.vlgmr.msrb.gmra.mxu0 %vm861_vm9, %v3407_v4  ;;  %v3362_v18 = vmul.f32 %v5937_v36, %v3361_v56  ;;  %v3524_v62 = vsel %vm153_vm8, %v3452_v24, %v3523_v14 }
 0xc7f   :  { %v3516_v58 = vperm.slane %v3510_v28, %v4861_v3  ;;  %v3532_v1 = vperm.slane %v3524_v62, %v4861_v3  ;;  %v3533_v41 = vrot.slane %v3528_v26, 4 }
 0xc80   :  { %v3512_v42 = vsel %vm153_vm8, %v3437_v47, %v3511_v31  ;;  %v3466_v57 = vsel %vm153_vm8, %v3465_v37, %v3362_v18  ;;  %v3467_v51 = vrot.slane %v3362_v18, 4  ;;  %4549 = vmatmul.msk.f32.vlgmr.msrb.gmra.mxu1 %vm861_vm9, %v3362_v18  ;;  %4555 = vmatmul.msk.f32.vlgmr.msra.gmra.mxu3 %vm861_vm9, %v3452_v24 }
 0xc81   :  { %v3520_v36 = vperm.slane %v3512_v42, %v4861_v3  ;;  %v3535_v48 = vrot.slane %v3516_v58, 4  ;;  %v3472_v7 = vperm.slane %v3466_v57, %v4861_v3  ;;  %v3545_v9 = vrot.slane %v3532_v1, 4 }
 0xc82   :  { %v3468_v8 = vsel %vm153_vm8, %v3392_v35, %v3467_v51  ;;  %v3534_v25 = vsel %vm153_vm8, %v3533_v41, %v3516_v58 }
 0xc83   :  { %v3547_v27 = vrot.slane %v3520_v36, 4  ;;  %v3476_v44 = vperm.slane %v3468_v8, %v4861_v3  ;;  %v3477_v40 = vrot.slane %v3472_v7, 4  ;;  %v3480_v47 = vsel %vm153_vm8, %v3472_v7, %v3479_v34 }
 0xc84   :  { %v3536_v5 = vsel %vm153_vm8, %v3528_v26, %v3535_v48  ;;  %v3540_v24 = vperm.slane %v3534_v25, %v4872_v13  ;;  %v3546_v60 = vsel %vm153_vm8, %v3545_v9, %v3520_v36  ;;  %v3488_v52 = vperm.slane %v3480_v47, %v4872_v13 }
 0xc85   :  { %v3489_v55 = vrot.slane %v3476_v44, 4  ;;  %v3544_v50 = vperm.slane %v3536_v5, %v4872_v13  ;;  %v3548_v35 = vsel %vm153_vm8, %v3532_v1, %v3547_v27  ;;  %v3552_v49 = vperm.slane %v3546_v60, %v4872_v13 }
 0xc86   :  { %v3556_v2 = vperm.slane %v3548_v35, %v4872_v13  ;;  %v3557_v38 = vrot.slane %v3540_v24, 4  ;;  %v3478_v22 = vsel %vm153_vm8, %v3477_v40, %v6034_v23  ;;  %v3492_v17 = vsel %vm153_vm8, %v3476_v44, %v3491_v21 }
 0xc87   :  { %v3559_v53 = vrot.slane %v3544_v50, 4  ;;  %v3561_v16 = vrot.slane %v3552_v49, 4  ;;  %v3484_v29 = vperm.slane %v3478_v22, %v4872_v13  ;;  %v3490_v19 = vsel %vm153_vm8, %v3489_v55, %v3464_v33 }
 0xc88   :  { %4553 = vmatmul.msk.f32.vlgmr.msra.gmra.mxu1 %vm861_vm9, %v3422_v43  ;;  %v3558_v45 = vsel %vm153_vm8, 0.0, %v3557_v38  ;;  %v3563_v15 = vrot.slane %v3556_v2, 4  ;;  %v3496_v11 = vperm.slane %v3490_v19, %v4872_v13  ;;  %v3500_v12 = vperm.slane %v3492_v17, %v4872_v13 }
 0xc89   :  { %v3560_v4 = vsel %vm153_vm8, 0.0, %v3559_v53  ;;  %v3562_v23 = vsel %vm153_vm8, 0.0, %v3561_v16  ;;  %v3619_v30 = vsel %vm153_vm8, %v3559_v53, %v3540_v24  ;;  %v3501_v14 = vrot.slane %v3484_v29, 4 }
 0xc8a   :  { %v3564_v56 = vsel %vm153_vm8, 0.0, %v3563_v15  ;;  %v3623_v33 = vperm.slane %v3619_v30, %v4861_v3  ;;  %v3624_v37 = vrot.slane %v3560_v4, 4  ;;  %v3630_v43 = vsel %vm153_vm8, %v3563_v15, %v3552_v49 }
 0xc8b   :  { %v3634_v26 = vperm.slane %v3630_v43, %v4861_v3  ;;  %v3635_v28 = vrot.slane %v3564_v56, 4  ;;  %v3502_v31 = vsel %vm153_vm8, 0.0, %v3501_v14  ;;  %v3503_v18 = vrot.slane %v3488_v52, 4 }
 0xc8c   :  { %v3625_v62 = vsel %vm153_vm8, %v3624_v37, %v3558_v45  ;;  %v3643_v58 = vrot.slane %v3623_v33, 4  ;;  %v3505_v1 = vrot.slane %v3496_v11, 4  ;;  %v3507_v41 = vrot.slane %v3500_v12, 4 }
 0xc8d   :  { %v3629_v34 = vperm.slane %v3625_v62, %v4861_v3  ;;  %v3636_v42 = vsel %vm153_vm8, %v3635_v28, %v3562_v23  ;;  %v3655_v57 = vrot.slane %v3634_v26, 4  ;;  %v3504_v51 = vsel %vm153_vm8, 0.0, %v3503_v18 }
 0xc8e   :  { %v3640_v36 = vperm.slane %v3636_v42, %v4861_v3  ;;  %v3506_v48 = vsel %vm153_vm8, 0.0, %v3505_v1  ;;  %v3508_v7 = vsel %vm153_vm8, 0.0, %v3507_v41  ;;  %v3565_v9 = vsel %vm153_vm8, %v3503_v18, %v3484_v29 }
 0xc8f   :  { %v3644_v21 = vsel %vm153_vm8, %v3629_v34, %v3643_v58  ;;  %v3569_v8 = vperm.slane %v3565_v9, %v4861_v3  ;;  %v3570_v25 = vrot.slane %v3504_v51, 4  ;;  %v3576_v27 = vsel %vm153_vm8, %v3507_v41, %v3496_v11 }
 0xc90   :  { %v3652_v44 = vperm.slane %v3644_v21, %v4872_v13  ;;  %v3656_v40 = vsel %vm153_vm8, %v3640_v36, %v3655_v57  ;;  %v3580_v47 = vperm.slane %v3576_v27, %v4861_v3  ;;  %v3581_v5 = vrot.slane %v3508_v7, 4 }
 0xc91   :  { %v3664_v24 = vperm.slane %v3656_v40, %v4872_v13  ;;  %v3571_v60 = vsel %vm153_vm8, %v3570_v25, %v3502_v31  ;;  %v3589_v52 = vrot.slane %v3569_v8, 4  ;;  %v3641_v55 = vrot.slane %v3629_v34, 4 }
 0xc92   :  { %v3575_v50 = vperm.slane %v3571_v60, %v4861_v3  ;;  %v3582_v35 = vsel %vm153_vm8, %v3581_v5, %v3506_v48  ;;  %v3601_v49 = vrot.slane %v3580_v47, 4  ;;  %v3671_v2 = vrot.slane %v3652_v44, 4 }
 0xc93   :  { %v3669_v38 = vrot.slane %v3664_v24, 4  ;;  %v3586_v22 = vperm.slane %v3582_v35, %v4861_v3  ;;  %v3642_v17 = vsel %vm153_vm8, %v3641_v55, %v3623_v33  ;;  %v3653_v53 = vrot.slane %v3640_v36, 4 }
 0xc94   :  { %v3590_v16 = vsel %vm153_vm8, %v3575_v50, %v3589_v52  ;;  %v6164_v29 = vsel %vm153_vm8, %v3664_v24, %v3671_v2  ;;  %v3648_v19 = vperm.slane %v3642_v17, %v4872_v13  ;;  %v3587_v45 = vrot.slane %v3575_v50, 4 }
 0xc95   :  { %v6168_v15 = vsel %vm153_vm8, %v3669_v38, %v3652_v44  ;;  %v3598_v11 = vperm.slane %v3590_v16, %v4872_v13  ;;  %v3602_v12 = vsel %vm153_vm8, %v3586_v22, %v3601_v49  ;;  %v3654_v4 = vsel %vm153_vm8, %v3653_v53, %v3634_v26 }
 0xc96   :  { %v3610_v23 = vperm.slane %v3602_v12, %v4872_v13  ;;  %v3660_v30 = vperm.slane %v3654_v4, %v4872_v13  ;;  %v3667_v14 = vrot.slane %v3648_v19, 4  ;;  %v3588_v56 = vsel %vm153_vm8, %v3587_v45, %v3569_v8 }
 0xc97   :  { %v3617_v33 = vrot.slane %v3598_v11, 4  ;;  %v3594_v37 = vperm.slane %v3588_v56, %v4872_v13  ;;  %v3599_v43 = vrot.slane %v3586_v22, 4 }
 0xc98   :  { %v3665_v28 = vrot.slane %v3660_v30, 4  ;;  %v6178_v31 = vsel %vm153_vm8, %v3660_v30, %v3667_v14  ;;  %v3615_v18 = vrot.slane %v3610_v23, 4 }
 0xc99   :  { %v6181_v62 = vsel %vm153_vm8, %v3610_v23, %v3617_v33  ;;  %v3600_v26 = vsel %vm153_vm8, %v3599_v43, %v3580_v47  ;;  %v3613_v58 = vrot.slane %v3594_v37, 4 }
 0xc9a   :  { %v3606_v1 = vperm.slane %v3600_v26, %v4872_v13  ;;  %v6186_v41 = vsel %vm153_vm8, %v3615_v18, %v3598_v11  ;;  %v6189_v34 = vsel %vm153_vm8, %v3665_v28, %v3648_v19 }
 0xc9c   :  { %v3611_v42 = vrot.slane %v3606_v1, 4  ;;  %v6192_v57 = vsel %vm153_vm8, %v3606_v1, %v3613_v58 }
 0xc9e   :  { %v6195_v51 = vsel %vm153_vm8, %v3611_v42, %v3594_v37 }
 0xcaf   :  { %v3723_v48 = vpop.f32.mrf.mxu0 }
 0xcb0   :  { %v3889_v9 = vrot.slane %v3723_v48, 4 }
 0xcbc   :  { %v3769_v36 = vpop.f32.mrf.mxu2 }
 0xcbd   :  { %v3887_v7 = vrot.slane %v3769_v36, 4  ;;  %v3890_v8 = vsel %vm153_vm8, %v3769_v36, %v3889_v9 }
 0xcbe   :  { %v3898_v5 = vperm.slane %v3890_v8, %v4861_v3 }
 0xcbf   :  { %v3888_v21 = vsel %vm153_vm8, %v3887_v7, %v3723_v48 }
 0xcc0   :  { %v3894_v27 = vperm.slane %v3888_v21, %v4861_v3  ;;  %v3925_v22 = vrot.slane %v3898_v5, 4 }
 0xcc2   :  { %v3913_v2 = vrot.slane %v3894_v27, 4 }
 0xcfa   :  { %v3861_v25 = vpop.f32.mrf.mxu2 }
 0xcfb   :  { %v3943_v44 = vrot.slane %v3861_v25, 4  ;;  %v3792_v40 = vpop.f32.mrf.mxu3  ;;  %v3815_v47 = vpop.f32.mrf.mxu0 }
 0xcfc   :  { %v3899_v24 = vrot.slane %v3792_v40, 4  ;;  %v3945_v60 = vrot.slane %v3815_v47, 4 }
 0xcfd   :  { %v3944_v52 = vsel %vm153_vm8, %v3943_v44, %v3815_v47  ;;  %v3746_v55 = vpop.f32.mrf.mxu1 }
 0xcfe   :  { %v3946_v50 = vsel %vm153_vm8, %v3861_v25, %v3945_v60  ;;  %v3900_v35 = vsel %vm153_vm8, %v3899_v24, %v3746_v55  ;;  %v3901_v49 = vrot.slane %v3746_v55, 4  ;;  %v3950_v17 = vperm.slane %v3944_v52, %v4861_v3 }
 0xcff   :  { %v3906_v38 = vperm.slane %v3900_v35, %v4861_v3  ;;  %v3954_v16 = vperm.slane %v3946_v50, %v4861_v3 }
 0xd00   :  { %v3902_v53 = vsel %vm153_vm8, %v3792_v40, %v3901_v49  ;;  %v3969_v28 = vrot.slane %v3950_v17, 4 }
 0xd01   :  { %v3910_v19 = vperm.slane %v3902_v53, %v4861_v3  ;;  %v3911_v45 = vrot.slane %v3906_v38, 4  ;;  %v3914_v11 = vsel %vm153_vm8, %v3906_v38, %v3913_v2  ;;  %v3981_v18 = vrot.slane %v3954_v16, 4 }
 0xd02   :  { %v3922_v12 = vperm.slane %v3914_v11, %v4872_v13 }
 0xd03   :  { %v3912_v4 = vsel %vm153_vm8, %v3911_v45, %v3894_v27  ;;  %v3923_v23 = vrot.slane %v3910_v19, 4  ;;  %v3926_v30 = vsel %vm153_vm8, %v3910_v19, %v3925_v22  ;;  %v3884_v14 = vpop.f32.mrf.mxu3 }
 0xd04   :  { %v3918_v56 = vperm.slane %v3912_v4, %v4872_v13  ;;  %v3934_v33 = vperm.slane %v3926_v30, %v4872_v13  ;;  %v3937_v37 = vrot.slane %v3922_v12, 4  ;;  %v3955_v43 = vrot.slane %v3884_v14, 4 }
 0xd05   :  { %v3924_v26 = vsel %vm153_vm8, %v3923_v23, %v3898_v5  ;;  %v3838_v58 = vpop.f32.mrf.mxu1 }
 0xd06   :  { %v3930_v1 = vperm.slane %v3924_v26, %v4872_v13  ;;  %v3935_v42 = vrot.slane %v3918_v56, 4  ;;  %v3938_v36 = vsel %vm153_vm8, 0.0, %v3937_v37  ;;  %v3941_v48 = vrot.slane %v3934_v33, 4 }
 0xd07   :  { %v3999_v7 = vsel %vm153_vm8, %v3937_v37, %v3918_v56  ;;  %v4004_v9 = vrot.slane %v3938_v36, 4  ;;  %v3956_v21 = vsel %vm153_vm8, %v3955_v43, %v3838_v58  ;;  %v3957_v8 = vrot.slane %v3838_v58, 4 }
 0xd08   :  { %v3936_v25 = vsel %vm153_vm8, 0.0, %v3935_v42  ;;  %v3939_v27 = vrot.slane %v3930_v1, 4  ;;  %v3942_v44 = vsel %vm153_vm8, 0.0, %v3941_v48  ;;  %v4003_v40 = vperm.slane %v3999_v7, %v4861_v3 }
 0xd09   :  { %v4015_v47 = vrot.slane %v3942_v44, 4  ;;  %v3958_v5 = vsel %vm153_vm8, %v3884_v14, %v3957_v8  ;;  %v3962_v24 = vperm.slane %v3956_v21, %v4861_v3  ;;  %v4005_v60 = vsel %vm153_vm8, %v4004_v9, %v3936_v25 }
 0xd0a   :  { %v3966_v52 = vperm.slane %v3958_v5, %v4861_v3  ;;  %v3940_v55 = vsel %vm153_vm8, 0.0, %v3939_v27  ;;  %v4009_v50 = vperm.slane %v4005_v60, %v4861_v3  ;;  %v4010_v35 = vsel %vm153_vm8, %v3941_v48, %v3930_v1 }
 0xd0b   :  { %v3967_v49 = vrot.slane %v3962_v24, 4  ;;  %v3970_v2 = vsel %vm153_vm8, %v3962_v24, %v3969_v28  ;;  %v4014_v38 = vperm.slane %v4010_v35, %v4861_v3  ;;  %v4016_v22 = vsel %vm153_vm8, %v4015_v47, %v3940_v55 }
 0xd0c   :  { %v3978_v53 = vperm.slane %v3970_v2, %v4872_v13  ;;  %v3979_v19 = vrot.slane %v3966_v52, 4  ;;  %v3982_v45 = vsel %vm153_vm8, %v3966_v52, %v3981_v18  ;;  %v4020_v11 = vperm.slane %v4016_v22, %v4861_v3 }
 0xd0d   :  { %v3968_v12 = vsel %vm153_vm8, %v3967_v49, %v3950_v17  ;;  %v3990_v4 = vperm.slane %v3982_v45, %v4872_v13  ;;  %v4023_v23 = vrot.slane %v4003_v40, 4  ;;  %v4035_v30 = vrot.slane %v4014_v38, 4 }
 0xd0e   :  { %v3974_v14 = vperm.slane %v3968_v12, %v4872_v13  ;;  %v3980_v56 = vsel %vm153_vm8, %v3979_v19, %v3954_v16  ;;  %v3993_v33 = vrot.slane %v3978_v53, 4  ;;  %v4021_v37 = vrot.slane %v4009_v50, 4 }
 0xd0f   :  { %v3986_v43 = vperm.slane %v3980_v56, %v4872_v13  ;;  %v3997_v28 = vrot.slane %v3990_v4, 4  ;;  %v4024_v26 = vsel %vm153_vm8, %v4009_v50, %v4023_v23  ;;  %v4036_v18 = vsel %vm153_vm8, %v4020_v11, %v4035_v30 }
 0xd10   :  { %v3991_v58 = vrot.slane %v3974_v14, 4  ;;  %v3994_v17 = vsel %vm153_vm8, 0.0, %v3993_v33  ;;  %v4053_v1 = vsel %vm153_vm8, %v3993_v33, %v3974_v14  ;;  %v4032_v42 = vperm.slane %v4024_v26, %v4872_v13 }
 0xd11   :  { %v3995_v36 = vrot.slane %v3986_v43, 4  ;;  %v3998_v48 = vsel %vm153_vm8, 0.0, %v3997_v28  ;;  %v4057_v16 = vperm.slane %v4053_v1, %v4861_v3  ;;  %v4058_v7 = vrot.slane %v3994_v17, 4 }
 0xd12   :  { %v3992_v9 = vsel %vm153_vm8, 0.0, %v3991_v58  ;;  %v4069_v21 = vrot.slane %v3998_v48, 4  ;;  %v4044_v8 = vperm.slane %v4036_v18, %v4872_v13  ;;  %v4051_v25 = vrot.slane %v4032_v42, 4 }
 0xd13   :  { %v4022_v27 = vsel %vm153_vm8, %v4021_v37, %v4003_v40  ;;  %v4033_v44 = vrot.slane %v4020_v11, 4  ;;  %v3996_v47 = vsel %vm153_vm8, 0.0, %v3995_v36  ;;  %v4059_v5 = vsel %vm153_vm8, %v4058_v7, %v3992_v9  ;;  %v4140_v7 = vld [vmem:[#allocation2 + $0x78] sm:$0xff]  ;;  %v4138_v9 = vld [vmem:[#allocation2 + $0x68] sm:$0xff] }
 0xd14   :  { %v4052_v24 = vsel %vm153_vm8, %v4044_v8, %v4051_v25  ;;  %v4049_v60 = vrot.slane %v4044_v8, 4  ;;  %v4028_v52 = vperm.slane %v4022_v27, %v4872_v13  ;;  %v4063_v55 = vperm.slane %v4059_v5, %v4861_v3  ;;  %4161 = vmatpush.msra.mxu0 %v4140_v7 }
 0xd15   :  { %4125 = vrot.lane.b32.xlu0 %v4052_v24, %s4773_s27  ;;  %v4034_v50 = vsel %vm153_vm8, %v4033_v44, %v4014_v38  ;;  %v4064_v35 = vsel %vm153_vm8, %v3997_v28, %v3986_v43  ;;  %v4070_v40 = vsel %vm153_vm8, %v4069_v21, %v3996_v47  ;;  %v4077_v49 = vrot.slane %v4057_v16, 4  ;;  %v4137_v21 = vld [vmem:[#allocation2 + $0x60] sm:$0xff] }
 0xd16   :  { %v4050_v2 = vsel %vm153_vm8, %v4049_v60, %v4032_v42  ;;  %v4040_v22 = vperm.slane %v4034_v50, %v4872_v13  ;;  %v4047_v53 = vrot.slane %v4028_v52, 4  ;;  %v4068_v19 = vperm.slane %v4064_v35, %v4861_v3 }
 0xd17   :  { %4117 = vrot.lane.b32.xlu2 %v4050_v2, %s4774_s28  ;;  %v4074_v45 = vperm.slane %v4070_v40, %v4861_v3  ;;  %v4078_v11 = vsel %vm153_vm8, %v4063_v55, %v4077_v49  ;;  %v4075_v12 = vrot.slane %v4063_v55, 4  ;;  %v4633_v40 = vld [vmem:[#allocation2 + $0x147] ss:$0 sm:$0xff] }
 0xd18   :  { %v4045_v38 = vrot.slane %v4040_v22, 4  ;;  %v4048_v4 = vsel %vm153_vm8, %v4040_v22, %v4047_v53  ;;  %v4086_v23 = vperm.slane %v4078_v11, %v4872_v13  ;;  %v4089_v30 = vrot.slane %v4068_v19, 4 }
 0xd19   :  { %4109 = vrot.lane.b32.xlu1 %v4048_v4, %s4764_s18  ;;  %v4076_v14 = vsel %vm153_vm8, %v4075_v12, %v4057_v16  ;;  %v4087_v56 = vrot.slane %v4074_v45, 4 }
 0xd1a   :  { %v4090_v33 = vsel %vm153_vm8, %v4074_v45, %v4089_v30  ;;  %v4105_v37 = vrot.slane %v4086_v23, 4  ;;  %v4082_v43 = vperm.slane %v4076_v14, %v4872_v13  ;;  %v4046_v3 = vsel %vm153_vm8, %v4045_v38, %v4028_v52 }
 0xd1b   :  { %v4098_v28 = vperm.slane %v4090_v33, %v4872_v13  ;;  %v4088_v26 = vsel %vm153_vm8, %v4087_v56, %v4068_v19 }
 0xd1c   :  { %v4094_v18 = vperm.slane %v4088_v26, %v4872_v13  ;;  %v4101_v58 = vrot.slane %v4082_v43, 4  ;;  %v4139_v13 = vld [vmem:[#allocation2 + $0x70] sm:$0xff]  ;;  %v4227_v26 = vld [vmem:[#allocation2 + $0xa8] sm:$0xff] }
 0xd1d   :  { %v4103_v17 = vrot.slane %v4098_v28, 4  ;;  %v4106_v1 = vsel %vm153_vm8, %v4098_v28, %v4105_v37  ;;  %4162 = vmatpush.msra.mxu0 %v4139_v13 }
 0xd1e   :  { %v4099_v42 = vrot.slane %v4094_v18, 4  ;;  %v4102_v36 = vsel %vm153_vm8, %v4094_v18, %v4101_v58  ;;  %v4226_v58 = vld [vmem:[#allocation2 + $0xa0] sm:$0xff] }
 0xd1f   :  { %4127 = vrot.lane.b32.xlu2 %v4106_v1, %s4773_s27  ;;  %v4104_v48 = vsel %vm153_vm8, %v4103_v17, %v4086_v23  ;;  %4163 = vmatpush.msra.mxu0 %v4138_v9 }
 0xd20   :  { %4119 = vrot.lane.b32.xlu0 %v4104_v48, %s4774_s28  ;;  %v4100_v16 = vsel %vm153_vm8, %v4099_v42, %v4082_v43 }
 0xd21   :  { %4111 = vrot.lane.b32.xlu1 %v4102_v36, %s4764_s18  ;;  %4164 = vmatpush.msra.mxu0 %v4137_v21 }
 0xd71   :  { %v4118_v25 = vpop.permute.xlu2 %4117 }
 0xd79   :  { %v4128_v55 = vpop.permute.xlu2 %4127 }
 0xd87   :  { %v4126_v8 = vpop.permute.xlu0 %4125 }
 0xd8b   :  { %v4110_v27 = vpop.permute.xlu1 %4109 }
 0xd8c   :  { %v4131_v44 = vsel %vm861_vm9, %v4046_v3, %v4110_v27  ;;  %v4228_v3 = vld [vmem:[#allocation2 + $0xb0] sm:$0xff] }
 0xd8d   :  { %v4133_v47 = vsel %vm1528_vm1, %v4131_v44, %v4118_v25  ;;  %v4634_v25 = vld [vmem:[#allocation2 + $0x14c] ss:$0 sm:$0xff] }
 0xd8e   :  { %v4135_v5 = vsel %vm1531_vm2, %v4133_v47, %v4126_v8 }
 0xd8f   :  { %4556 = vmatmul.msk.f32.vlgmr.msra.gmra.mxu0 %vm34_vm0, %v4135_v5  ;;  %v4635_v5 = vld [vmem:[#allocation2 + $0x14d] ss:$0 sm:$0xff] }
 0xd92   :  { %v4120_v24 = vpop.permute.xlu0 %4119 }
 0xd93   :  { %v4112_v60 = vpop.permute.xlu1 %4111 }
 0xd94   :  { %v4132_v52 = vsel %vm861_vm9, %v4100_v16, %v4112_v60 }
 0xd95   :  { %v4134_v50 = vsel %vm1528_vm1, %v4132_v52, %v4120_v24 }
 0xd96   :  { %v4136_v35 = vsel %vm1531_vm2, %v4134_v50, %v4128_v55 }
 0xd97   :  { %4557 = vmatmul.msk.f32.gmra.mxu0 %vm34_vm0, %v4136_v35 }
 0xe0c   :  { %v4166_v49 = vpop.f32.mrf.mxu0 }
 0xe0d   :  { %v4167_v2 = vadd.f32 %v4633_v40, %v4166_v49 }
 0xe0f   :  { %v4172_v22 = vadd.f32 %v4167_v2, %v5626_v46 }
 0xe11   :  { %v4176_v53 = vsel %vm34_vm0, %v4172_v22, 0.0 }
 0xe12   :  { %4177 = vadd.xlane.f32.xlu1 %v4176_v53 }
 0xe14   :  { %v4169_v19 = vpop.f32.mrf.mxu0 }
 0xe15   :  { %v4170_v45 = vadd.f32 %v4633_v40, %v4169_v19 }
 0xe17   :  { %v4173_v11 = vadd.f32 %v4170_v45, %v5631_v63  ;;  %v4229_v63 = vld [vmem:[#allocation2 + $0xb8] sm:$0xff] }
 0xe18   :  { %4259 = vmatpush.msrb.mxu1 %v4229_v63 }
 0xe19   :  { %v4179_v12 = vsel %vm34_vm0, %v4173_v11, 0.0 }
 0xe1a   :  { %4180 = vadd.xlane.f32.xlu0 %v4179_v12  ;;  %4260 = vmatpush.msrb.mxu1 %v4228_v3 }
 0xe1c   :  { %4261 = vmatpush.msrb.mxu1 %v4227_v26  ;;  %v4238_v26 = vld [vmem:[#allocation2 + $0x138] sm:$0xff] }
 0xe1d   :  { %4373 = vmatpush.msrb.mxu2 %v4238_v26 }
 0xe1e   :  { %4262 = vmatpush.msrb.mxu1 %v4226_v58 }
 0xe85   :  { %v4178_v38 = vpop.xlane.xlu1 %4177 }
 0xe86   :  { %v4182_v4 = vmul.f32 %v4178_v38, %v4809_v10 }
 0xe88   :  { %v4184_v23 = vsub.f32 %v4172_v22, %v4182_v4  ;;  %v4636_v22 = vld [vmem:[#allocation2 + $0x143] ss:$0 sm:$0xff] }
 0xe8a   :  { %v4186_v30 = vmul.f32 %v4184_v23, %v4184_v23 }
 0xe8c   :  { %v4188_v14 = vsel %vm34_vm0, %v4186_v30, 0.0 }
 0xe8d   :  { %4189 = vadd.xlane.f32.xlu2 %v4188_v14  ;;  %v4181_v56 = vpop.xlane.xlu0 %4180 }
 0xe8e   :  { %v4183_v46 = vmul.f32 %v4181_v56, %v4809_v10 }
 0xe90   :  { %v4185_v33 = vsub.f32 %v4173_v11, %v4183_v46 }
 0xe92   :  { %v4187_v37 = vmul.f32 %v4185_v33, %v4185_v33 }
 0xe94   :  { %v4191_v43 = vsel %vm34_vm0, %v4187_v37, 0.0 }
 0xe95   :  { %4192 = vadd.xlane.f32.xlu1 %v4191_v43 }
 0xeae   :  { %1506 = vrot.lane.b32.xlu1 %v5494_v61, %s4764_s18 }
 0xf00   :  { %v4190_v28 = vpop.xlane.xlu2 %4189 }
 0xf01   :  { %v4194_v18 = vmul.f32 %v4190_v28, %v4809_v10 }
 0xf03   :  { %v4196_v17 = vadd.f32 1e-12, %v4194_v18 }
 0xf05   :  { %4724 = vrsqrt.f32 %v4196_v17  ;;  %vm4204_vm4 = vweird.f32 %v4196_v17 }
 0xf08   :  { %v4193_v1 = vpop.xlane.xlu1 %4192 }
 0xf09   :  { %v4195_v42 = vmul.f32 %v4193_v1, %v4809_v10  ;;  %v4237_v1 = vld [vmem:[#allocation2 + $0x130] sm:$0xff] }
 0xf0a   :  { %4374 = vmatpush.msrb.mxu2 %v4237_v1 }
 0xf0b   :  { %v4725_v36 = vpop.eup %4724  ;;  %v4197_v48 = vadd.f32 1e-12, %v4195_v42 }
 0xf0c   :  { %v4199_v16 = vmul.f32 %v4725_v36, %v4196_v17  ;;  %vm4205_vm8 = vweird.f32 %v4725_v36 }
 0xf0d   :  { %4726 = vrsqrt.f32 %v4197_v48  ;;  %vm4206_vm3 = vmor %vm4204_vm4, %vm4205_vm8  ;;  %vm4214_vm5 = vweird.f32 %v4197_v48 }
 0xf0e   :  { %v4200_v61 = vmul.f32 %v4725_v36, %v4199_v16 }
 0xf10   :  { %v4201_v7 = vmul.f32 0.5, %v4200_v61  ;;  %v4236_v61 = vld [vmem:[#allocation2 + $0x128] sm:$0xff] }
 0xf11   :  { %4375 = vmatpush.msrb.mxu2 %v4236_v61 }
 0xf12   :  { %v4202_v13 = vsub.f32 1.5, %v4201_v7 }
 0xf13   :  { %v4727_v9 = vpop.eup %4726 }
 0xf14   :  { %v4203_v21 = vmul.f32 %v4725_v36, %v4202_v13  ;;  %v4209_v8 = vmul.f32 %v4727_v9, %v4197_v48  ;;  %vm4215_vm15 = vweird.f32 %v4727_v9 }
 0xf15   :  { %vm4216_vm6 = vmor %vm4214_vm5, %vm4215_vm15 }
 0xf16   :  { %v4207_v27 = vsel %vm4206_vm3, %v4725_v36, %v4203_v21  ;;  %v4210_v44 = vmul.f32 %v4727_v9, %v4209_v8  ;;  %v4235_v21 = vld [vmem:[#allocation2 + $0x120] sm:$0xff]  ;;  %vm6430_vm3 = vcmask 523264  }
 0xf17   :  { %v4218_v47 = vmul.f32 %v4207_v27, %v4184_v23  ;;  %4376 = vmatpush.msrb.mxu2 %v4235_v21  ;;  %vm6431_vm15 = vmmov %vm6430_vm3 }
 0xf18   :  { %v4211_v24 = vmul.f32 0.5, %v4210_v44 }
 0xf19   :  { %v4221_v60 = vmul.f32 %v4634_v25, %v4218_v47  ;;  %v4233_v47 = vld [vmem:[#allocation2 + $0x110] sm:$0xff] }
 0xf1a   :  { %v4212_v52 = vsub.f32 1.5, %v4211_v24 }
 0xf1b   :  { %v6303_v55 = vadd.f32 %v4635_v5, %v4221_v60 }
 0xf1c   :  { %v4213_v50 = vmul.f32 %v4727_v9, %v4212_v52  ;;  %v4232_v52 = vld [vmem:[#allocation2 + $0x108] sm:$0xff] }
 0xf1d   :  { %4558 = vmatmul.msk.f32.vlgmr.msrb.gmra.mxu1 %vm34_vm0, %v6303_v55 }
 0xf1e   :  { %v4217_v35 = vsel %vm4216_vm6, %v4727_v9, %v4213_v50 }
 0xf1f   :  { %v4219_v40 = vmul.f32 %v4217_v35, %v4185_v33 }
 0xf21   :  { %v4222_v49 = vmul.f32 %v4634_v25, %v4219_v40  ;;  %v4234_v25 = vld [vmem:[#allocation2 + $0x118] sm:$0xff] }
 0xf22   :  { %4377 = vmatpush.msrb.mxu2 %v4234_v25 }
 0xf23   :  { %v6307_v2 = vadd.f32 %v4635_v5, %v4222_v49  ;;  %v4231_v49 = vld [vmem:[#allocation2 + $0x100] sm:$0xff] }
 0xf24   :  { %4378 = vmatpush.msrb.mxu2 %v4233_v47 }
 0xf25   :  { %4559 = vmatmul.msk.f32.gmra.mxu1 %vm34_vm0, %v6307_v2 }
 0xf26   :  { %4379 = vmatpush.msrb.mxu2 %v4232_v52 }
 0xf28   :  { %4380 = vmatpush.msrb.mxu2 %v4231_v49 }
 0xf9a   :  { %v4264_v53 = vpop.f32.mrf.mxu1 }
 0xf9b   :  { %v6311_v19 = vadd.f32 %v4636_v22, %v4264_v53 }
 0xf9d   :  { %v6314_v45 = vmul.f32 0.70710677, %v6311_v19  ;;  %v4270_v47 = vmul.f32 0.5, %v6311_v19  ;;  %v4637_v19 = vld [vmem:[#allocation2 + $0x145] ss:$0 sm:$0xff] }
 0xf9f   :  { %v4274_v11 = vmul.f32 %v6314_v45, %v6314_v45 }
 0xfa1   :  { %v4275_v12 = vmin.f32 %v4274_v11, 16.0 }
 0xfa2   :  { %v4267_v38 = vpop.f32.mrf.mxu1 }
 0xfa3   :  { %v4276_v4 = vmul.f32 2.1237322e-06, %v4275_v12  ;;  %v4287_v23 = vmul.f32 3.8918573e-05, %v4275_v12  ;;  %v6318_v30 = vadd.f32 %v4636_v22, %v4267_v38 }
 0xfa5   :  { %v4277_v14 = vadd.f32 0.00028619796, %v4276_v4  ;;  %v4288_v56 = vadd.f32 0.001143296, %v4287_v23  ;;  %v6321_v46 = vmul.f32 0.70710677, %v6318_v30 }
 0xfa6   :  { %v4271_v49 = vmul.f32 0.5, %v6318_v30 }
 0xfa7   :  { %v4278_v33 = vmul.f32 %v4277_v14, %v4275_v12  ;;  %v4289_v37 = vmul.f32 %v4288_v56, %v4275_v12  ;;  %v4314_v43 = vmul.f32 %v6321_v46, %v6321_v46 }
 0xfa9   :  { %v4290_v63 = vadd.f32 0.014752088, %v4289_v37  ;;  %v4279_v3 = vadd.f32 0.0036580483, %v4278_v33  ;;  %v6325_v28 = vmin.f32 %v4314_v43, 16.0 }
 0xfab   :  { %v4291_v18 = vmul.f32 %v4290_v63, %v4275_v12  ;;  %v4316_v58 = vmul.f32 2.1237322e-06, %v6325_v28  ;;  %v4327_v17 = vmul.f32 3.8918573e-05, %v6325_v28  ;;  %v4280_v36 = vmul.f32 %v4279_v3, %v4275_v12 }
 0xfad   :  { %v4292_v42 = vadd.f32 0.112945676, %v4291_v18  ;;  %v4317_v48 = vadd.f32 0.00028619796, %v4316_v58  ;;  %v4328_v16 = vadd.f32 0.001143296, %v4327_v17 }
 0xfae   :  { %v4281_v27 = vadd.f32 0.05243302, %v4280_v36 }
 0xfaf   :  { %v4293_v7 = vmul.f32 %v4292_v42, %v4275_v12  ;;  %v4318_v13 = vmul.f32 %v4317_v48, %v6325_v28  ;;  %v4329_v9 = vmul.f32 %v4328_v16, %v6325_v28 }
 0xfb0   :  { %v4282_v35 = vmul.f32 %v4281_v27, %v4275_v12 }
 0xfb1   :  { %v4294_v8 = vadd.f32 0.4994258, %v4293_v7  ;;  %v4330_v44 = vadd.f32 0.014752088, %v4329_v9  ;;  %v4319_v24 = vadd.f32 0.0036580483, %v4318_v13 }
 0xfb2   :  { %v4283_v11 = vadd.f32 0.18741608, %v4282_v35 }
 0xfb3   :  { %v4295_v5 = vmul.f32 %v4294_v8, %v4275_v12  ;;  %v4331_v60 = vmul.f32 %v4330_v44, %v6325_v28  ;;  %v4320_v22 = vmul.f32 %v4319_v24, %v6325_v28 }
 0xfb4   :  { %v4284_v56 = vmul.f32 %v4283_v11, %v4275_v12 }
 0xfb5   :  { %v4296_v50 = vadd.f32 1.0, %v4295_v5  ;;  %v4332_v40 = vadd.f32 0.112945676, %v4331_v60  ;;  %v4321_v4 = vadd.f32 0.05243302, %v4320_v22 }
 0xfb6   :  { %v4285_v26 = vadd.f32 1.1283791, %v4284_v56 }
 0xfb7   :  { %4728 = vrcp.f32 %v4296_v50  ;;  %v4333_v53 = vmul.f32 %v4332_v40, %v6325_v28  ;;  %v4322_v43 = vmul.f32 %v4321_v4, %v6325_v28  ;;  %v4308_v3 = vand.u32 2147483648, %v4296_v50 }
 0xfb8   :  { %v4306_v58 = vand.u32 2147483647, %v4296_v50  ;;  %vm4302_vm10 = vweird.f32 %v4296_v50  ;;  %v4286_v48 = vmul.f32 %v4285_v26, %v6314_v45 }
 0xfb9   :  { %v4334_v38 = vadd.f32 0.4994258, %v4333_v53  ;;  %v4323_v17 = vadd.f32 0.18741608, %v4322_v43  ;;  %v4309_v42 = vor.u32 1.1754944e-38, %v4308_v3 }
 0xfba   :  { %vm4307_vm12 = vcmp.eq.f32.partialorder %v4306_v58, 8.507059e+37 }
 0xfbb   :  { %v4335_v23 = vmul.f32 %v4334_v38, %v6325_v28  ;;  %v4324_v61 = vmul.f32 %v4323_v17, %v6325_v28 }
 0xfbd   :  { %v4729_v14 = vpop.eup %4728  ;;  %v4336_v37 = vadd.f32 1.0, %v4335_v23  ;;  %v4325_v25 = vadd.f32 1.1283791, %v4324_v61 }
 0xfbe   :  { %v4298_v33 = vmul.f32 %v4729_v14, %v4296_v50  ;;  %vm4303_vm7 = vweird.f32 %v4729_v14 }
 0xfbf   :  { %4730 = vrcp.f32 %v4336_v37  ;;  %vm4304_vm11 = vmor %vm4302_vm10, %vm4303_vm7  ;;  %v4348_v8 = vand.u32 2147483648, %v4336_v37  ;;  %v4346_v44 = vand.u32 2147483647, %v4336_v37  ;;  %vm4342_vm14 = vweird.f32 %v4336_v37 }
 0xfc0   :  { %v4299_v63 = vsub.f32 1.0, %v4298_v33  ;;  %v4326_v52 = vmul.f32 %v4325_v25, %v6321_v46 }
 0xfc1   :  { %v4349_v60 = vor.u32 1.1754944e-38, %v4348_v8  ;;  %vm4347_vm4 = vcmp.eq.f32.partialorder %v4346_v44, 8.507059e+37 }
 0xfc2   :  { %v4300_v18 = vmul.f32 %v4729_v14, %v4299_v63  ;;  %v1507_v63 = vpop.permute.xlu1 %1506 }
 0xfc4   :  { %v4301_v1 = vadd.f32 %v4729_v14, %v4300_v18 }
 0xfc5   :  { %v4731_v36 = vpop.eup %4730 }
 0xfc6   :  { %v4305_v12 = vsel %vm4304_vm11, %v4729_v14, %v4301_v1  ;;  %v4338_v7 = vmul.f32 %v4731_v36, %v4336_v37  ;;  %vm4343_vm13 = vweird.f32 %v4731_v36 }
 0xfc7   :  { %v4310_v16 = vsel %vm4307_vm12, %v4309_v42, %v4305_v12  ;;  %vm4344_vm8 = vmor %vm4342_vm14, %vm4343_vm13 }
 0xfc8   :  { %v4311_v13 = vmul.f32 %v4310_v16, %v4286_v48  ;;  %v4339_v9 = vsub.f32 1.0, %v4338_v7 }
 0xfca   :  { %v4560_v21 = vclamps-f32 %v4311_v13, 1.0  ;;  %v4340_v27 = vmul.f32 %v4731_v36, %v4339_v9 }
 0xfcc   :  { %v4354_v5 = vadd.f32 1.0, %v4560_v21  ;;  %v4341_v24 = vadd.f32 %v4731_v36, %v4340_v27  ;;  %v4639_v27 = vld [vmem:[#allocation2 + $0x14f] ss:$0 sm:$0xff] }
 0xfce   :  { %v4356_v45 = vmul.f32 %v4354_v5, %v4270_v47  ;;  %v4345_v28 = vsel %vm4344_vm8, %v4731_v36, %v4341_v24  ;;  %v4640_v5 = vld [vmem:[#allocation2 + $0x152] ss:$0 sm:$0xff] }
 0xfcf   :  { %v4350_v50 = vsel %vm4347_vm4, %v4349_v60, %v4345_v28 }
 0xfd0   :  { %4562 = vmatmul.msk.f32.vlgmr.msrb.gmra.mxu2 %vm6430_vm3, %v4356_v45  ;;  %v4351_v35 = vmul.f32 %v4350_v50, %v4326_v52 }
 0xfd2   :  { %v4561_v40 = vclamps-f32 %v4351_v35, 1.0 }
 0xfd4   :  { %v4355_v22 = vadd.f32 1.0, %v4561_v40 }
 0xfd6   :  { %v4357_v53 = vmul.f32 %v4355_v22, %v4271_v49 }
 0xfd8   :  { %4563 = vmatmul.msk.f32.gmra.mxu2 %vm6431_vm15, %v4357_v53 }
0x1053   :  { %v4382_v11 = vpop.f32.mrf.mxu2 }
0x1054   :  { %v4383_v38 = vadd.f32 %v4637_v19, %v4382_v11 }
0x1056   :  { %v4388_v4 = vadd.f32 %v4383_v38, %v6303_v55 }
0x1058   :  { %v4392_v46 = vsel %vm34_vm0, %v4388_v4, 0.0 }
0x1059   :  { %4393 = vadd.xlane.f32.xlu0 %v4392_v46 }
0x105b   :  { %v4385_v23 = vpop.f32.mrf.mxu2 }
0x105c   :  { %v4386_v14 = vadd.f32 %v4637_v19, %v4385_v23 }
0x105e   :  { %v4389_v56 = vadd.f32 %v4386_v14, %v6307_v2 }
0x1060   :  { %v4395_v33 = vsel %vm34_vm0, %v4389_v56, 0.0 }
0x1061   :  { %4396 = vadd.xlane.f32.xlu2 %v4395_v33 }
0x106d   :  { %1512 = vrot.lane.b32.xlu0 %v5438_v20, %s4774_s28 }
0x1079   :  { %1504 = vrot.lane.b32.xlu2 %v5441_v59, %s4764_s18 }
0x1081   :  { %1514 = vrot.lane.b32.xlu2 %v5485_v32, %s4774_s28 }
0x1089   :  { %1520 = vrot.lane.b32.xlu2 %v5435_v54, %s4773_s27 }
0x1091   :  { %3685 = vrot.lane.b32.xlu2 %v6168_v15, %s4774_s28 }
0x1099   :  { %3691 = vrot.lane.b32.xlu2 %v6181_v62, %s4773_s27 }
0x10a1   :  { %3693 = vrot.lane.b32.xlu2 %v6164_v29, %s4773_s27  ;;  %v1527_v29 = vsel %vm861_vm9, %v5488_v0, %v1507_v63 }
0x10cc   :  { %v4394_v55 = vpop.xlane.xlu0 %4393 }
0x10cd   :  { %v4398_v20 = vmul.f32 %v4394_v55, %v4809_v10 }
0x10cf   :  { %v4400_v2 = vsub.f32 %v4388_v4, %v4398_v20 }
0x10d1   :  { %v4402_v59 = vmul.f32 %v4400_v2, %v4400_v2 }
0x10d3   :  { %v4404_v30 = vsel %vm34_vm0, %v4402_v59, 0.0 }
0x10d4   :  { %4405 = vadd.xlane.f32.xlu1 %v4404_v30  ;;  %v4397_v32 = vpop.xlane.xlu2 %4396 }
0x10d5   :  { %v4399_v54 = vmul.f32 %v4397_v32, %v4809_v10  ;;  %v4776_v32 = vmov 0  }
0x10d6   :  { %4619 = vset.pattern.permute.xlu1 %v4776_v32  ;;  %4620 = vset.pattern.permute.xlu2 %v4776_v32 }
0x10d7   :  { %v4401_v37 = vsub.f32 %v4389_v56, %v4399_v54  ;;  %4621 = vset.pattern.permute.xlu0 %v4776_v32 }
0x10d9   :  { %v4403_v43 = vmul.f32 %v4401_v37, %v4401_v37 }
0x10db   :  { %v4407_v15 = vsel %vm34_vm0, %v4403_v43, 0.0 }
0x10dc   :  { %4408 = vadd.xlane.f32.xlu0 %v4407_v15  ;;  %v1505_v62 = vpop.permute.xlu2 %1504 }
0x10dd   :  { %v1526_v58 = vsel %vm861_vm9, %v5444_v39, %v1505_v62 }
0x10df   :  { %v1513_v18 = vpop.permute.xlu0 %1512 }
0x10e0   :  { %v1529_v17 = vsel %vm1528_vm1, %v1526_v58, %v1513_v18 }
0x10e4   :  { %v1515_v3 = vpop.permute.xlu2 %1514 }
0x10e5   :  { %v1530_v26 = vsel %vm1528_vm1, %v1527_v29, %v1515_v3 }
0x10ec   :  { %v1521_v1 = vpop.permute.xlu2 %1520 }
0x10ed   :  { %3677 = vrot.lane.b32.xlu1 %v6178_v31, %s4764_s18  ;;  %v1532_v42 = vsel %vm1531_vm2, %v1529_v17, %v1521_v1 }
0x10ee   :  { %4468 = vrot.lane.b32.xlu2 %v1532_v42, %s4775_s29 }
0x10f0   :  { %3675 = vrot.lane.b32.xlu0 %v6192_v57, %s4764_s18 }
0x10f4   :  { %v3686_v35 = vpop.permute.xlu2 %3685 }
0x10f5   :  { %3683 = vrot.lane.b32.xlu1 %v6186_v41, %s4774_s28 }
0x10f8   :  { %1522 = vrot.lane.b32.xlu0 %v5491_v6, %s4773_s27  ;;  %v4638_v6 = vld [vmem:[#allocation2 + $0x14e] ss:$0 sm:$0xff] }
0x10fc   :  { %v3692_v23 = vpop.permute.xlu2 %3691 }
0x1104   :  { %v3694_v59 = vpop.permute.xlu2 %3693 }
0x1147   :  { %v4406_v39 = vpop.xlane.xlu1 %4405 }
0x1148   :  { %v4410_v0 = vmul.f32 %v4406_v39, %v4809_v10  ;;  %v4469_v15 = vpop.permute.xlu2 %4468 }
0x114a   :  { %v4412_v36 = vadd.f32 1e-12, %v4410_v0 }
0x114c   :  { %4732 = vrsqrt.f32 %v4412_v36  ;;  %vm4420_vm6 = vweird.f32 %v4412_v36 }
0x114f   :  { %v4409_v31 = vpop.xlane.xlu0 %4408 }
0x1150   :  { %v4411_v48 = vmul.f32 %v4409_v31, %v4809_v10 }
0x1152   :  { %v4733_v12 = vpop.eup %4732  ;;  %v4413_v61 = vadd.f32 1e-12, %v4411_v48 }
0x1153   :  { %v4415_v16 = vmul.f32 %v4733_v12, %v4412_v36  ;;  %vm4421_vm5 = vweird.f32 %v4733_v12 }
0x1154   :  { %4734 = vrsqrt.f32 %v4413_v61  ;;  %vm4422_vm7 = vmor %vm4420_vm6, %vm4421_vm5  ;;  %vm4430_vm11 = vweird.f32 %v4413_v61 }
0x1155   :  { %v4416_v7 = vmul.f32 %v4733_v12, %v4415_v16 }
0x1157   :  { %v4417_v57 = vmul.f32 0.5, %v4416_v7 }
0x1159   :  { %v4418_v13 = vsub.f32 1.5, %v4417_v57 }
0x115a   :  { %v4735_v41 = vpop.eup %4734 }
0x115b   :  { %v4419_v9 = vmul.f32 %v4733_v12, %v4418_v13  ;;  %v4425_v21 = vmul.f32 %v4735_v41, %v4413_v61  ;;  %vm4431_vm10 = vweird.f32 %v4735_v41 }
0x115c   :  { %vm4432_vm12 = vmor %vm4430_vm11, %vm4431_vm10 }
0x115d   :  { %v4423_v8 = vsel %vm4422_vm7, %v4733_v12, %v4419_v9  ;;  %v4426_v44 = vmul.f32 %v4735_v41, %v4425_v21 }
0x115e   :  { %v4434_v25 = vmul.f32 %v4423_v8, %v4400_v2 }
0x115f   :  { %v4427_v10 = vmul.f32 0.5, %v4426_v44  ;;  %v3678_v28 = vpop.permute.xlu1 %3677 }
0x1160   :  { %v4437_v47 = vmul.f32 %v4638_v6, %v4434_v25  ;;  %v3698_v55 = vsel %vm861_vm9, %v6189_v34, %v3678_v28 }
0x1161   :  { %v4428_v45 = vsub.f32 1.5, %v4427_v10  ;;  %v3700_v2 = vsel %vm1528_vm1, %v3698_v55, %v3686_v35 }
0x1162   :  { %v4440_v24 = vadd.f32 %v4639_v27, %v4437_v47  ;;  %v3676_v60 = vpop.permute.xlu0 %3675  ;;  %v3702_v30 = vsel %vm1531_vm2, %v3700_v2, %v3694_v59 }
0x1163   :  { %v4429_v52 = vmul.f32 %v4735_v41, %v4428_v45  ;;  %v3697_v56 = vsel %vm861_vm9, %v6195_v51, %v3676_v60  ;;  %v4641_v51 = vld [vmem:[#allocation2 + $0x153] ss:$0 sm:$0xff]  ;;  %vm4486_vm9 = vcmask 785408  }
0x1164   :  { %v4445_v50 = vmul.f32 %v4640_v5, %v4440_v24  ;;  %v4482_v17 = vsel %vm34_vm0, %v4440_v24, %v4469_v15 }
0x1165   :  { %v4433_v40 = vsel %vm4432_vm12, %v4735_v41, %v4429_v52 }
0x1166   :  { %v4447_v49 = vsel %vm34_vm0, %v4445_v50, 0.0  ;;  %v4435_v22 = vmul.f32 %v4433_v40, %v4401_v37 }
0x1167   :  { %4448 = vadd.xlane.f32.xlu0 %v4447_v49  ;;  %v3684_v46 = vpop.permute.xlu1 %3683 }
0x1168   :  { %v4438_v53 = vmul.f32 %v4638_v6, %v4435_v22  ;;  %v3699_v33 = vsel %vm1528_vm1, %v3697_v56, %v3684_v46  ;;  %vm6432_vm1 = vmmov %vm6430_vm3 }
0x1169   :  { %v3701_v20 = vsel %vm1531_vm2, %v3699_v33, %v3692_v23 }
0x116a   :  { %v1523_v19 = vpop.permute.xlu0 %1522  ;;  %v4441_v11 = vadd.f32 %v4639_v27, %v4438_v53 }
0x116b   :  { %v1533_v38 = vsel %vm1531_vm2, %v1530_v26, %v1523_v19  ;;  %vm6433_vm2 = vmmov %vm6432_vm1 }
0x116c   :  { %4470 = vrot.lane.b32.xlu2 %v1533_v38, %s4775_s29  ;;  %v4446_v4 = vmul.f32 %v4640_v5, %v4441_v11 }
0x116e   :  { %v4450_v14 = vsel %vm34_vm0, %v4446_v4, 0.0 }
0x116f   :  { %4451 = vadd.xlane.f32.xlu1 %v4450_v14 }
0x1174   :  { %4476 = vrot.lane.b32.xlu2 %v3701_v20, %s4772_s1 }
0x117b   :  { %4478 = vrot.lane.b32.xlu0 %v3702_v30, %s4772_s1 }
0x11c6   :  { %v4471_v62 = vpop.permute.xlu2 %4470 }
0x11c7   :  { %v4483_v3 = vsel %vm34_vm0, %v4441_v11, %v4471_v62 }
0x11ce   :  { %v4477_v63 = vpop.permute.xlu2 %4476 }
0x11cf   :  { %v4484_v1 = vsel %vm6433_vm2, %v4482_v17, %v4477_v63 }
0x11da   :  { %v4449_v54 = vpop.xlane.xlu0 %4448 }
0x11db   :  { %v4454_v37 = vadd.f32 %v4641_v51, %v4449_v54 }
0x11dd   :  { %4458 = vperm.xlu1 %4619, %v4454_v37  }
0x11e2   :  { %v4452_v34 = vpop.xlane.xlu1 %4451 }
0x11e3   :  { %v4455_v43 = vadd.f32 %v4641_v51, %v4452_v34 }
0x11e5   :  { %4463 = vperm.xlu2 %4620, %v4455_v43  }
0x11ed   :  { %v4479_v29 = vpop.permute.xlu0 %4478 }
0x11ee   :  { %v4485_v26 = vsel %vm6432_vm1, %v4483_v3, %v4479_v29 }
0x123f   :  { %v4464_v18 = vpop.permute.xlu2 %4463 }
0x1240   :  { %v4488_v58 = vsel %vm4486_vm9, %v4485_v26, %v4464_v18 }
0x1241   :  { %4490 = vst [vmem:[%s6410_s3 + $0x8] sm:$0xff] %v4488_v58 }
0x124f   :  { %v4459_v42 = vpop.permute.xlu1 %4458 }
0x1250   :  { %v4487_v39 = vsel %vm4486_vm9, %v4484_v1, %v4459_v42 }
0x1251   :  { %4489 = vst [vmem:[%s6410_s3] sm:$0xff] %v4487_v39 }
0x1252   :  { %4495 = vsyncpa [#allocation3], 1 }

</bundles_post_ra>
